<compile_context>
chip_gen: v5e
topology: v5e:2x2
jax: 0.10.0
libtpu: 0.0.40
codegen_flags: <defaults>
</compile_context>

<pallas_src>
import functools

import jax
import jax.numpy as jnp
from jax.experimental import pallas as pl
from jax.experimental.pallas import tpu as pltpu

LN_EPS = 1e-5                 # torch.nn.LayerNorm default
_INV_SQRT2 = 0.7071067811865476


def _layernorm(x, w, b):
    mean = jnp.mean(x, axis=-1, keepdims=True)
    var = jnp.mean((x - mean) ** 2, axis=-1, keepdims=True)
    return (x - mean) * jax.lax.rsqrt(var + LN_EPS) * w + b


def _gelu_exact(x):
    # torch.nn.GELU() default (erf formulation)
    return 0.5 * x * (1.0 + jax.lax.erf(x * _INV_SQRT2))


def _gelu_tanh(x):
    # EUP (tanh) approximation -- cheaper, but differs from torch default.
    return 0.5 * x * (1.0 + jnp.tanh(0.7978845608028654 * (x + 0.044715 * x * x * x)))


# -----------------------------------------------------------------------------
# Kernel: one grid step = (batch tile, layer).  Computes
#   y = x + Attn(LN1(x));  z = y + FF(LN2(y))
# with the activation carried across the depth axis in a VMEM scratch.
# -----------------------------------------------------------------------------
def transformer_layer_kernel(
        x_ref, ln1_w_ref, ln1_b_ref, wqkv_ref, wo_ref, bo_ref,
        ln2_w_ref, ln2_b_ref, w1_ref, b1_ref, w2_ref, b2_ref,
        o_ref, acc_ref, *,
        b_tile, n, dim, heads, matmul_dtype, approx_recip, approx_gelu):
    layer = pl.program_id(1)
    d = dim // heads
    rows = b_tile * n

    # Seed the f32 activation carry from HBM at layer 0 only; it then stays
    # resident in VMEM until the last layer.
    @pl.when(layer == 0)
    def _():
        acc_ref[...] = x_ref[...].reshape(rows, dim).astype(jnp.float32)

    x = acc_ref[...]                                          # (rows, dim) f32

    # ---------------- Residual(PreNorm(Attention)) ----------------
    xn = _layernorm(x, ln1_w_ref[0], ln1_b_ref[0]).astype(matmul_dtype)

    # Fused qkv projection: single lane-dense (dim, 3*dim) matmul at full MXU
    # width.  The softmax scale (dim**-0.5, as in the PyTorch module) has been
    # folded into the q columns of wqkv by the wrapper.
    qkv = jnp.dot(xn, wqkv_ref[0], preferred_element_type=matmul_dtype)

    head_out = []
    for h in range(heads):                 # static unroll; matmuls batched over b_tile
        q = qkv[:, h * d:(h + 1) * d].reshape(b_tile, n, d)
        k = qkv[:, dim + h * d:dim + (h + 1) * d].reshape(b_tile, n, d)
        v = qkv[:, 2 * dim + h * d:2 * dim + (h + 1) * d].reshape(b_tile, n, d)

        s = jnp.einsum("bqd,bkd->bqk", q, k,
                       preferred_element_type=jnp.float32)     # (b_tile, n, n) f32
        s = s - jnp.max(s, axis=-1, keepdims=True)
        p = jnp.exp(s)
        p = p * pl.reciprocal(jnp.sum(p, axis=-1, keepdims=True),
                              approx=approx_recip)

        oh = jnp.einsum("bqk,bkd->bqd", p.astype(matmul_dtype), v,
                        preferred_element_type=matmul_dtype)   # (b_tile, n, d)
        head_out.append(oh.reshape(rows, d))

    # Head concat along lanes -> ONE fused (dim, dim) output projection.
    ctx = jnp.concatenate(head_out, axis=-1)                   # (rows, dim)
    attn = jnp.dot(ctx, wo_ref[0], preferred_element_type=jnp.float32)
    y = attn + bo_ref[0] + x                                   # residual (f32)

    # ---------------- Residual(PreNorm(FeedForward)) ----------------
    yn = _layernorm(y, ln2_w_ref[0], ln2_b_ref[0]).astype(matmul_dtype)
    hmid = jnp.dot(yn, w1_ref[0], preferred_element_type=jnp.float32) + b1_ref[0]
    hmid = _gelu_tanh(hmid) if approx_gelu else _gelu_exact(hmid)
    z = jnp.dot(hmid.astype(matmul_dtype), w2_ref[0],
                preferred_element_type=jnp.float32) + b2_ref[0]
    out = y + z                                                # residual (f32)

    acc_ref[...] = out                                         # carry to layer+1

    @pl.when(layer == pl.num_programs(1) - 1)
    def _():
        o_ref[...] = out.reshape(b_tile, n, dim).astype(o_ref.dtype)


# -----------------------------------------------------------------------------
# Wrapper
# -----------------------------------------------------------------------------
def _vmem_limit_bytes():
    # ~85% of physical VMEM (v5e/v6e: 128 MiB -> ~108 MiB, v7x: 64 MiB -> ~54
    # MiB); conservative 32 MiB fallback if the query is unavailable.
    try:
        info = pltpu.get_tpu_info()
        cap = int(getattr(info, "vmem_capacity_bytes", 0) or 0)
        if cap > 0:
            return max(32 * 1024 * 1024, int(cap * 0.85))
    except Exception:
        pass
    return 32 * 1024 * 1024


def _pick_b_tile(b, n):
    # Largest divisor of b keeping the flattened row count (b_tile * n) at or
    # below ~512: amortizes per-layer weight DMA across the batch tile and
    # raises the matmul M-dim toward MXU-friendly sizes without blowing up the
    # activation / score footprint.
    cap = max(1, 512 // max(n, 1))
    for c in range(min(b, cap), 0, -1):
        if b % c == 0:
            return c
    return 1


def transformer_forward(x, params, *, heads, matmul_dtype=jnp.float32,
                        approx_gelu=False, b_tile=None):
    b, n, dim = x.shape
    depth = params["w_qkv"].shape[0]
    mlp_dim = params["w1"].shape[-1]
    assert dim % heads == 0, "dim must be divisible by heads"
    matmul_dtype = jnp.dtype(matmul_dtype)
    approx_recip = bool(matmul_dtype != jnp.dtype(jnp.float32))

    sub = 16 if matmul_dtype == jnp.dtype(jnp.bfloat16) else 8
    assert n % sub == 0, (
        f"seq len {n} must be a multiple of {sub}; pad tokens + mask upstream")

    if b_tile is None:
        b_tile = _pick_b_tile(b, n)
    assert b % b_tile == 0
    rows = b_tile * n
    d = dim // heads

    # Fold the softmax scale (dim**-0.5, as in the PyTorch module) into the q
    # columns of the fused qkv weight; cast matmul weights to the matmul dtype
    # (halves weight DMA in bf16 mode).  LayerNorm params / biases stay f32.
    scale = float(dim) ** (-0.5)
    col_scale = jnp.concatenate(
        [jnp.full((dim,), scale, jnp.float32), jnp.ones((2 * dim,), jnp.float32)])
    wqkv = (params["w_qkv"] * col_scale).astype(matmul_dtype)
    wo = params["w_out"].astype(matmul_dtype)
    w1 = params["w1"].astype(matmul_dtype)
    w2 = params["w2"].astype(matmul_dtype)

    kernel = functools.partial(
        transformer_layer_kernel, b_tile=b_tile, n=n, dim=dim, heads=heads,
        matmul_dtype=matmul_dtype, approx_recip=approx_recip,
        approx_gelu=approx_gelu)

    def x_map(i, l):
        return (i, 0, 0)

    def lmap(i, l):
        return (l, 0, 0)

    # Advisory cost estimate (per call): matmul FLOPs + softmax/GELU
    # transcendentals + HBM bytes (weights re-streamed once per batch tile).
    flops_pl = (2 * n * dim * 3 * dim          # qkv projection
                + 4 * heads * n * n * d        # scores + context
                + 2 * n * dim * dim            # output projection
                + 4 * n * dim * mlp_dim)       # FFN
    wbytes = matmul_dtype.itemsize * (3 * dim * dim + dim * dim + 2 * dim * mlp_dim)
    wbytes += 4 * (6 * dim + mlp_dim)          # LN params + biases (f32)
    cost = pl.CostEstimate(
        flops=int(b * depth * flops_pl),
        transcendentals=int(b * depth * (heads * n * n + n * mlp_dim)),
        bytes_accessed=int(2 * x.size * x.dtype.itemsize
                           + (b // b_tile) * depth * wbytes))

    return pl.pallas_call(
        kernel,
        out_shape=jax.ShapeDtypeStruct((b, n, dim), x.dtype),
        grid=(b // b_tile, depth),            # batch-tiles parallel, depth sequential
        in_specs=[
            pl.BlockSpec((b_tile, n, dim), x_map),           # x (used @ l=0)
            pl.BlockSpec((1, 1, dim), lmap),                 # ln1_w
            pl.BlockSpec((1, 1, dim), lmap),                 # ln1_b
            pl.BlockSpec((1, dim, 3 * dim), lmap),           # w_qkv (fused, lane-dense)
            pl.BlockSpec((1, dim, dim), lmap),               # w_out (fused)
            pl.BlockSpec((1, 1, dim), lmap),                 # b_out
            pl.BlockSpec((1, 1, dim), lmap),                 # ln2_w
            pl.BlockSpec((1, 1, dim), lmap),                 # ln2_b
            pl.BlockSpec((1, dim, mlp_dim), lmap),           # w1
            pl.BlockSpec((1, 1, mlp_dim), lmap),             # b1
            pl.BlockSpec((1, mlp_dim, dim), lmap),           # w2
            pl.BlockSpec((1, 1, dim), lmap),                 # b2
        ],
        out_specs=pl.BlockSpec((b_tile, n, dim), x_map),     # written @ last layer
        scratch_shapes=[pltpu.VMEM((rows, dim), jnp.float32)],  # activation carry
        compiler_params=pltpu.CompilerParams(
            dimension_semantics=("parallel", "arbitrary"),
            vmem_limit_bytes=_vmem_limit_bytes(),
        ),
        cost_estimate=cost,
    )(x, params["ln1_w"], params["ln1_b"], wqkv, wo, params["b_out"],
      params["ln2_w"], params["ln2_b"], w1, params["b1"], w2, params["b2"])


# -----------------------------------------------------------------------------
# Pure-JAX reference (same math / parameterization as the PyTorch module)
# -----------------------------------------------------------------------------
def transformer_reference(x, params, *, heads):
    b, n, dim = x.shape
    depth = params["w_qkv"].shape[0]
    d = dim // heads
    scale = float(dim) ** (-0.5)
    for l in range(depth):
        xn = _layernorm(x, params["ln1_w"][l], params["ln1_b"][l])
        qkv = xn @ params["w_qkv"][l]                         # (b, n, 3*dim)
        q, k, v = jnp.split(qkv, 3, axis=-1)
        q = q.reshape(b, n, heads, d)
        k = k.reshape(b, n, heads, d)
        v = v.reshape(b, n, heads, d)
        dots = jnp.einsum("bihd,bjhd->bhij", q, k) * scale
        attn = jax.nn.softmax(dots, axis=-1)
        out = jnp.einsum("bhij,bjhd->bihd", attn, v).reshape(b, n, dim)
        x = out @ params["w_out"][l] + params["b_out"][l] + x

        yn = _layernorm(x, params["ln2_w"][l], params["ln2_b"][l])
        hmid = _gelu_exact(yn @ params["w1"][l] + params["b1"][l])
        x = hmid @ params["w2"][l] + params["b2"][l] + x
    return x


# -----------------------------------------------------------------------------
# Deterministic parameter construction (per-layer weights stacked along depth,
# fused / lane-dense layouts: w_qkv == to_qkv.weight.T, w_out == to_out.weight.T)
# -----------------------------------------------------------------------------
def make_params(key, depth, dim, heads, mlp_dim):
    del heads  # layout is head-agnostic; columns ordered '(qkv h d)'
    ks = jax.random.split(key, 6)

    def init(k, shape):
        return 0.1 * jax.random.normal(k, shape, jnp.float32)

    return {
        "ln1_w": jnp.ones((depth, 1, dim), jnp.float32),
        "ln1_b": jnp.zeros((depth, 1, dim), jnp.float32),
        "w_qkv": init(ks[0], (depth, dim, 3 * dim)),
        "w_out": init(ks[1], (depth, dim, dim)),
        "b_out": init(ks[2], (depth, 1, dim)),
        "ln2_w": jnp.ones((depth, 1, dim), jnp.float32),
        "ln2_b": jnp.zeros((depth, 1, dim), jnp.float32),
        "w1": init(ks[3], (depth, dim, mlp_dim)),
        "b1": init(ks[4], (depth, 1, mlp_dim)),
        "w2": init(ks[5], (depth, mlp_dim, dim)),
        "b2": jnp.zeros((depth, 1, dim), jnp.float32),
    }


if __name__ == "__main__":
    # Small, lane-dense shapes consistent with Transformer(dim, depth, heads, mlp_dim)
    batch, seq, dim, heads, depth, mlp_dim = 2, 16, 128, 8, 2, 256

    key = jax.random.PRNGKey(0)
    kx, kp = jax.random.split(key)
    x = jax.random.normal(kx, (batch, seq, dim), jnp.float32)
    params = make_params(kp, depth, dim, heads, mlp_dim)

    # f32 path (matches torch semantics: erf GELU, exact softmax recip)
    fwd = jax.jit(functools.partial(transformer_forward, heads=heads))
    out = jax.block_until_ready(fwd(x, params))

    ref = transformer_reference(x, params, heads=heads)
    assert out.shape == (batch, seq, dim)
    err = float(jnp.max(jnp.abs(out - ref)))
    assert jnp.allclose(out, ref, atol=1e-4, rtol=1e-4), f"f32 max err {err}"

    # bf16 fast path: bf16 weights / MXU operands, f32 accumulation + f32
    # LayerNorm / softmax / GELU / residuals.
    fwd_bf16 = jax.jit(functools.partial(
        transformer_forward, heads=heads, matmul_dtype=jnp.bfloat16))
    out_bf16 = jax.block_until_ready(fwd_bf16(x, params))
    assert out_bf16.shape == (batch, seq, dim)
    assert bool(jnp.all(jnp.isfinite(out_bf16)))
    bf16_err = float(jnp.max(jnp.abs(out_bf16 - ref)))
    assert bf16_err < 5e-2 * (1.0 + float(jnp.max(jnp.abs(ref)))), \
        f"bf16 max err {bf16_err}"

    print("KERNEL_OK")
</pallas_src>

<mosaic_0001>
module attributes {stable_mosaic.version = 11 : i64} {
  func.func @transformer_layer_kernel(%arg0: i32, %arg1: i32, %arg2: memref<2x16x128xf32, #tpu.memory_space<vmem>>, %arg3: memref<1x1x128xf32, #tpu.memory_space<vmem>>, %arg4: memref<1x1x128xf32, #tpu.memory_space<vmem>>, %arg5: memref<1x128x384xf32, #tpu.memory_space<vmem>>, %arg6: memref<1x128x128xf32, #tpu.memory_space<vmem>>, %arg7: memref<1x1x128xf32, #tpu.memory_space<vmem>>, %arg8: memref<1x1x128xf32, #tpu.memory_space<vmem>>, %arg9: memref<1x1x128xf32, #tpu.memory_space<vmem>>, %arg10: memref<1x128x256xf32, #tpu.memory_space<vmem>>, %arg11: memref<1x1x256xf32, #tpu.memory_space<vmem>>, %arg12: memref<1x256x128xf32, #tpu.memory_space<vmem>>, %arg13: memref<1x1x128xf32, #tpu.memory_space<vmem>>, %arg14: memref<2x16x128xf32, #tpu.memory_space<vmem>>, %arg15: memref<32x128xf32, #tpu.memory_space<vmem>>) attributes {dimension_semantics = [#tpu.dimension_semantics<parallel>, #tpu.dimension_semantics<arbitrary>], iteration_bounds = array<i64: 1, 2>, scalar_prefetch = 0 : i64, scratch_operands = 1 : i64, tpu.core_type = #tpu.core_type<tc>, window_params = [{transform_indices = @transform_0, window_bounds = array<i64: 2, 16, 128>}, {transform_indices = @transform_1, window_bounds = array<i64: 1, 1, 128>}, {transform_indices = @transform_2, window_bounds = array<i64: 1, 1, 128>}, {transform_indices = @transform_3, window_bounds = array<i64: 1, 128, 384>}, {transform_indices = @transform_4, window_bounds = array<i64: 1, 128, 128>}, {transform_indices = @transform_5, window_bounds = array<i64: 1, 1, 128>}, {transform_indices = @transform_6, window_bounds = array<i64: 1, 1, 128>}, {transform_indices = @transform_7, window_bounds = array<i64: 1, 1, 128>}, {transform_indices = @transform_8, window_bounds = array<i64: 1, 128, 256>}, {transform_indices = @transform_9, window_bounds = array<i64: 1, 1, 256>}, {transform_indices = @transform_10, window_bounds = array<i64: 1, 256, 128>}, {transform_indices = @transform_11, window_bounds = array<i64: 1, 1, 128>}, {transform_indices = @transform_12, window_bounds = array<i64: 2, 16, 128>}]} {
    %c0_i32 = arith.constant 0 : i32
    %0 = arith.cmpi eq, %arg1, %c0_i32 : i32
    %1 = arith.extui %0 : i1 to i32
    %c0_i32_0 = arith.constant 0 : i32
    %2 = arith.cmpi ne, %1, %c0_i32_0 : i32
    scf.if %2 {
      %c0_86 = arith.constant 0 : index
      %c0_87 = arith.constant 0 : index
      %c0_88 = arith.constant 0 : index
      %247 = vector.load %arg2[%c0_86, %c0_87, %c0_88] : memref<2x16x128xf32, #tpu.memory_space<vmem>>, vector<2x16x128xf32>
      %248 = vector.shape_cast %247 : vector<2x16x128xf32> to vector<32x128xf32>
      %c0_89 = arith.constant 0 : index
      %c0_90 = arith.constant 0 : index
      %249 = vector.load %arg15[%c0_89, %c0_90] : memref<32x128xf32, #tpu.memory_space<vmem>>, vector<32x128xf32>
      tpu.vector_store %arg15[%c0_89, %c0_90], %248 {strides = array<i32>} : memref<32x128xf32, #tpu.memory_space<vmem>>, vector<32x128xf32>,
    } else {
    }
    %c0 = arith.constant 0 : index
    %c0_1 = arith.constant 0 : index
    %3 = vector.load %arg15[%c0, %c0_1] : memref<32x128xf32, #tpu.memory_space<vmem>>, vector<32x128xf32>
    %c0_2 = arith.constant 0 : index
    %c0_3 = arith.constant 0 : index
    %c0_4 = arith.constant 0 : index
    %4 = vector.load %arg3[%c0_2, %c0_3, %c0_4] : memref<1x1x128xf32, #tpu.memory_space<vmem>>, vector<1x1x128xf32>
    %5 = vector.shape_cast %4 : vector<1x1x128xf32> to vector<1x128xf32>
    %c0_5 = arith.constant 0 : index
    %c0_6 = arith.constant 0 : index
    %c0_7 = arith.constant 0 : index
    %6 = vector.load %arg4[%c0_5, %c0_6, %c0_7] : memref<1x1x128xf32, #tpu.memory_space<vmem>>, vector<1x1x128xf32>
    %7 = vector.shape_cast %6 : vector<1x1x128xf32> to vector<1x128xf32>
    %cst = arith.constant dense<0.000000e+00> : vector<32xf32>
    %8 = vector.multi_reduction <add>, %3, %cst [1] : vector<32x128xf32> to vector<32xf32>
    %9 = vector.shape_cast %8 : vector<32xf32> to vector<32x1xf32>
    %cst_8 = arith.constant 1.280000e+02 : f32
    %10 = vector.broadcast %cst_8 : f32 to vector<32x1xf32>
    %11 = arith.divf %9, %10 : vector<32x1xf32>
    %12 = vector.broadcast %11 : vector<32x1xf32> to vector<32x128xf32>
    %13 = arith.subf %3, %12 : vector<32x128xf32>
    %14 = arith.mulf %13, %13 : vector<32x128xf32>
    %cst_9 = arith.constant dense<0.000000e+00> : vector<32xf32>
    %15 = vector.multi_reduction <add>, %14, %cst_9 [1] : vector<32x128xf32> to vector<32xf32>
    %16 = vector.shape_cast %15 : vector<32xf32> to vector<32x1xf32>
    %cst_10 = arith.constant 1.280000e+02 : f32
    %17 = vector.broadcast %cst_10 : f32 to vector<32x1xf32>
    %18 = arith.divf %16, %17 : vector<32x1xf32>
    %19 = vector.broadcast %11 : vector<32x1xf32> to vector<32x128xf32>
    %20 = arith.subf %3, %19 : vector<32x128xf32>
    %cst_11 = arith.constant 9.99999974E-6 : f32
    %21 = vector.broadcast %cst_11 : f32 to vector<32x1xf32>
    %22 = arith.addf %18, %21 : vector<32x1xf32>
    %23 = math.rsqrt %22 : vector<32x1xf32>
    %24 = vector.broadcast %23 : vector<32x1xf32> to vector<32x128xf32>
    %25 = arith.mulf %20, %24 : vector<32x128xf32>
    %26 = vector.broadcast %5 : vector<1x128xf32> to vector<32x128xf32>
    %27 = arith.mulf %25, %26 : vector<32x128xf32>
    %28 = vector.broadcast %7 : vector<1x128xf32> to vector<32x128xf32>
    %29 = arith.addf %27, %28 : vector<32x128xf32>
    %c0_12 = arith.constant 0 : index
    %c0_13 = arith.constant 0 : index
    %c0_14 = arith.constant 0 : index
    %30 = vector.load %arg5[%c0_12, %c0_13, %c0_14] : memref<1x128x384xf32, #tpu.memory_space<vmem>>, vector<1x128x384xf32>
    %31 = vector.shape_cast %30 : vector<1x128x384xf32> to vector<128x384xf32>
    %cst_15 = arith.constant dense<0.000000e+00> : vector<32x384xf32>
    %32 = tpu.matmul %29, %31, %cst_15 {dimension_numbers = #tpu.dot_dimension_numbers<[1], [0], [0], [1], [0, 0, 1, 1], [], []>} : vector<32x128xf32>, vector<128x384xf32>, vector<32x384xf32> -> vector<32x384xf32>
    %33 = vector.extract_strided_slice %32 {offsets = [0, 0], sizes = [32, 16], strides = [1, 1]} : vector<32x384xf32> to vector<32x16xf32>
    %34 = vector.shape_cast %33 : vector<32x16xf32> to vector<2x16x16xf32>
    %35 = vector.extract_strided_slice %32 {offsets = [0, 128], sizes = [32, 16], strides = [1, 1]} : vector<32x384xf32> to vector<32x16xf32>
    %36 = vector.shape_cast %35 : vector<32x16xf32> to vector<2x16x16xf32>
    %37 = vector.extract_strided_slice %32 {offsets = [0, 256], sizes = [32, 16], strides = [1, 1]} : vector<32x384xf32> to vector<32x16xf32>
    %38 = vector.shape_cast %37 : vector<32x16xf32> to vector<2x16x16xf32>
    "tpu.trace_start"() <{level = 10 : i32, message = "bqd,bkd->bqk"}> : () -> ()
    %cst_16 = arith.constant dense<0.000000e+00> : vector<2x16x16xf32>
    %39 = tpu.matmul %34, %36, %cst_16 {dimension_numbers = #tpu.dot_dimension_numbers<[2], [2], [1], [1], [0, 0, 0, 1, 1, 1], [0], [0]>} : vector<2x16x16xf32>, vector<2x16x16xf32>, vector<2x16x16xf32> -> vector<2x16x16xf32>
    "tpu.trace_stop"() : () -> ()
    %cst_17 = arith.constant dense<0xFF800000> : vector<2x16xf32>
    %40 = vector.multi_reduction <maximumf>, %39, %cst_17 [2] : vector<2x16x16xf32> to vector<2x16xf32>
    %41 = vector.shape_cast %40 : vector<2x16xf32> to vector<2x16x1xf32>
    %42 = vector.broadcast %41 : vector<2x16x1xf32> to vector<2x16x16xf32>
    %43 = arith.subf %39, %42 : vector<2x16x16xf32>
    %44 = math.exp %43 : vector<2x16x16xf32>
    %cst_18 = arith.constant dense<0.000000e+00> : vector<2x16xf32>
    %45 = vector.multi_reduction <add>, %44, %cst_18 [2] : vector<2x16x16xf32> to vector<2x16xf32>
    %46 = vector.shape_cast %45 : vector<2x16xf32> to vector<2x16x1xf32>
    %47 = tpu.reciprocal %46 : vector<2x16x1xf32> -> vector<2x16x1xf32>
    %48 = vector.broadcast %47 : vector<2x16x1xf32> to vector<2x16x16xf32>
    %49 = arith.mulf %44, %48 : vector<2x16x16xf32>
    "tpu.trace_start"() <{level = 10 : i32, message = "bqk,bkd->bqd"}> : () -> ()
    %cst_19 = arith.constant dense<0.000000e+00> : vector<2x16x16xf32>
    %50 = tpu.matmul %49, %38, %cst_19 {dimension_numbers = #tpu.dot_dimension_numbers<[2], [1], [1], [2], [0, 0, 0, 1, 1, 2], [0], [0]>} : vector<2x16x16xf32>, vector<2x16x16xf32>, vector<2x16x16xf32> -> vector<2x16x16xf32>
    "tpu.trace_stop"() : () -> ()
    %51 = vector.shape_cast %50 : vector<2x16x16xf32> to vector<32x16xf32>
    %52 = vector.extract_strided_slice %32 {offsets = [0, 16], sizes = [32, 16], strides = [1, 1]} : vector<32x384xf32> to vector<32x16xf32>
    %53 = vector.shape_cast %52 : vector<32x16xf32> to vector<2x16x16xf32>
    %54 = vector.extract_strided_slice %32 {offsets = [0, 144], sizes = [32, 16], strides = [1, 1]} : vector<32x384xf32> to vector<32x16xf32>
    %55 = vector.shape_cast %54 : vector<32x16xf32> to vector<2x16x16xf32>
    %56 = vector.extract_strided_slice %32 {offsets = [0, 272], sizes = [32, 16], strides = [1, 1]} : vector<32x384xf32> to vector<32x16xf32>
    %57 = vector.shape_cast %56 : vector<32x16xf32> to vector<2x16x16xf32>
    "tpu.trace_start"() <{level = 10 : i32, message = "bqd,bkd->bqk"}> : () -> ()
    %cst_20 = arith.constant dense<0.000000e+00> : vector<2x16x16xf32>
    %58 = tpu.matmul %53, %55, %cst_20 {dimension_numbers = #tpu.dot_dimension_numbers<[2], [2], [1], [1], [0, 0, 0, 1, 1, 1], [0], [0]>} : vector<2x16x16xf32>, vector<2x16x16xf32>, vector<2x16x16xf32> -> vector<2x16x16xf32>
    "tpu.trace_stop"() : () -> ()
    %cst_21 = arith.constant dense<0xFF800000> : vector<2x16xf32>
    %59 = vector.multi_reduction <maximumf>, %58, %cst_21 [2] : vector<2x16x16xf32> to vector<2x16xf32>
    %60 = vector.shape_cast %59 : vector<2x16xf32> to vector<2x16x1xf32>
    %61 = vector.broadcast %60 : vector<2x16x1xf32> to vector<2x16x16xf32>
    %62 = arith.subf %58, %61 : vector<2x16x16xf32>
    %63 = math.exp %62 : vector<2x16x16xf32>
    %cst_22 = arith.constant dense<0.000000e+00> : vector<2x16xf32>
    %64 = vector.multi_reduction <add>, %63, %cst_22 [2] : vector<2x16x16xf32> to vector<2x16xf32>
    %65 = vector.shape_cast %64 : vector<2x16xf32> to vector<2x16x1xf32>
    %66 = tpu.reciprocal %65 : vector<2x16x1xf32> -> vector<2x16x1xf32>
    %67 = vector.broadcast %66 : vector<2x16x1xf32> to vector<2x16x16xf32>
    %68 = arith.mulf %63, %67 : vector<2x16x16xf32>
    "tpu.trace_start"() <{level = 10 : i32, message = "bqk,bkd->bqd"}> : () -> ()
    %cst_23 = arith.constant dense<0.000000e+00> : vector<2x16x16xf32>
    %69 = tpu.matmul %68, %57, %cst_23 {dimension_numbers = #tpu.dot_dimension_numbers<[2], [1], [1], [2], [0, 0, 0, 1, 1, 2], [0], [0]>} : vector<2x16x16xf32>, vector<2x16x16xf32>, vector<2x16x16xf32> -> vector<2x16x16xf32>
    "tpu.trace_stop"() : () -> ()
    %70 = vector.shape_cast %69 : vector<2x16x16xf32> to vector<32x16xf32>
    %71 = vector.extract_strided_slice %32 {offsets = [0, 32], sizes = [32, 16], strides = [1, 1]} : vector<32x384xf32> to vector<32x16xf32>
    %72 = vector.shape_cast %71 : vector<32x16xf32> to vector<2x16x16xf32>
    %73 = vector.extract_strided_slice %32 {offsets = [0, 160], sizes = [32, 16], strides = [1, 1]} : vector<32x384xf32> to vector<32x16xf32>
    %74 = vector.shape_cast %73 : vector<32x16xf32> to vector<2x16x16xf32>
    %75 = vector.extract_strided_slice %32 {offsets = [0, 288], sizes = [32, 16], strides = [1, 1]} : vector<32x384xf32> to vector<32x16xf32>
    %76 = vector.shape_cast %75 : vector<32x16xf32> to vector<2x16x16xf32>
    "tpu.trace_start"() <{level = 10 : i32, message = "bqd,bkd->bqk"}> : () -> ()
    %cst_24 = arith.constant dense<0.000000e+00> : vector<2x16x16xf32>
    %77 = tpu.matmul %72, %74, %cst_24 {dimension_numbers = #tpu.dot_dimension_numbers<[2], [2], [1], [1], [0, 0, 0, 1, 1, 1], [0], [0]>} : vector<2x16x16xf32>, vector<2x16x16xf32>, vector<2x16x16xf32> -> vector<2x16x16xf32>
    "tpu.trace_stop"() : () -> ()
    %cst_25 = arith.constant dense<0xFF800000> : vector<2x16xf32>
    %78 = vector.multi_reduction <maximumf>, %77, %cst_25 [2] : vector<2x16x16xf32> to vector<2x16xf32>
    %79 = vector.shape_cast %78 : vector<2x16xf32> to vector<2x16x1xf32>
    %80 = vector.broadcast %79 : vector<2x16x1xf32> to vector<2x16x16xf32>
    %81 = arith.subf %77, %80 : vector<2x16x16xf32>
    %82 = math.exp %81 : vector<2x16x16xf32>
    %cst_26 = arith.constant dense<0.000000e+00> : vector<2x16xf32>
    %83 = vector.multi_reduction <add>, %82, %cst_26 [2] : vector<2x16x16xf32> to vector<2x16xf32>
    %84 = vector.shape_cast %83 : vector<2x16xf32> to vector<2x16x1xf32>
    %85 = tpu.reciprocal %84 : vector<2x16x1xf32> -> vector<2x16x1xf32>
    %86 = vector.broadcast %85 : vector<2x16x1xf32> to vector<2x16x16xf32>
    %87 = arith.mulf %82, %86 : vector<2x16x16xf32>
    "tpu.trace_start"() <{level = 10 : i32, message = "bqk,bkd->bqd"}> : () -> ()
    %cst_27 = arith.constant dense<0.000000e+00> : vector<2x16x16xf32>
    %88 = tpu.matmul %87, %76, %cst_27 {dimension_numbers = #tpu.dot_dimension_numbers<[2], [1], [1], [2], [0, 0, 0, 1, 1, 2], [0], [0]>} : vector<2x16x16xf32>, vector<2x16x16xf32>, vector<2x16x16xf32> -> vector<2x16x16xf32>
    "tpu.trace_stop"() : () -> ()
    %89 = vector.shape_cast %88 : vector<2x16x16xf32> to vector<32x16xf32>
    %90 = vector.extract_strided_slice %32 {offsets = [0, 48], sizes = [32, 16], strides = [1, 1]} : vector<32x384xf32> to vector<32x16xf32>
    %91 = vector.shape_cast %90 : vector<32x16xf32> to vector<2x16x16xf32>
    %92 = vector.extract_strided_slice %32 {offsets = [0, 176], sizes = [32, 16], strides = [1, 1]} : vector<32x384xf32> to vector<32x16xf32>
    %93 = vector.shape_cast %92 : vector<32x16xf32> to vector<2x16x16xf32>
    %94 = vector.extract_strided_slice %32 {offsets = [0, 304], sizes = [32, 16], strides = [1, 1]} : vector<32x384xf32> to vector<32x16xf32>
    %95 = vector.shape_cast %94 : vector<32x16xf32> to vector<2x16x16xf32>
    "tpu.trace_start"() <{level = 10 : i32, message = "bqd,bkd->bqk"}> : () -> ()
    %cst_28 = arith.constant dense<0.000000e+00> : vector<2x16x16xf32>
    %96 = tpu.matmul %91, %93, %cst_28 {dimension_numbers = #tpu.dot_dimension_numbers<[2], [2], [1], [1], [0, 0, 0, 1, 1, 1], [0], [0]>} : vector<2x16x16xf32>, vector<2x16x16xf32>, vector<2x16x16xf32> -> vector<2x16x16xf32>
    "tpu.trace_stop"() : () -> ()
    %cst_29 = arith.constant dense<0xFF800000> : vector<2x16xf32>
    %97 = vector.multi_reduction <maximumf>, %96, %cst_29 [2] : vector<2x16x16xf32> to vector<2x16xf32>
    %98 = vector.shape_cast %97 : vector<2x16xf32> to vector<2x16x1xf32>
    %99 = vector.broadcast %98 : vector<2x16x1xf32> to vector<2x16x16xf32>
    %100 = arith.subf %96, %99 : vector<2x16x16xf32>
    %101 = math.exp %100 : vector<2x16x16xf32>
    %cst_30 = arith.constant dense<0.000000e+00> : vector<2x16xf32>
    %102 = vector.multi_reduction <add>, %101, %cst_30 [2] : vector<2x16x16xf32> to vector<2x16xf32>
    %103 = vector.shape_cast %102 : vector<2x16xf32> to vector<2x16x1xf32>
    %104 = tpu.reciprocal %103 : vector<2x16x1xf32> -> vector<2x16x1xf32>
    %105 = vector.broadcast %104 : vector<2x16x1xf32> to vector<2x16x16xf32>
    %106 = arith.mulf %101, %105 : vector<2x16x16xf32>
    "tpu.trace_start"() <{level = 10 : i32, message = "bqk,bkd->bqd"}> : () -> ()
    %cst_31 = arith.constant dense<0.000000e+00> : vector<2x16x16xf32>
    %107 = tpu.matmul %106, %95, %cst_31 {dimension_numbers = #tpu.dot_dimension_numbers<[2], [1], [1], [2], [0, 0, 0, 1, 1, 2], [0], [0]>} : vector<2x16x16xf32>, vector<2x16x16xf32>, vector<2x16x16xf32> -> vector<2x16x16xf32>
    "tpu.trace_stop"() : () -> ()
    %108 = vector.shape_cast %107 : vector<2x16x16xf32> to vector<32x16xf32>
    %109 = vector.extract_strided_slice %32 {offsets = [0, 64], sizes = [32, 16], strides = [1, 1]} : vector<32x384xf32> to vector<32x16xf32>
    %110 = vector.shape_cast %109 : vector<32x16xf32> to vector<2x16x16xf32>
    %111 = vector.extract_strided_slice %32 {offsets = [0, 192], sizes = [32, 16], strides = [1, 1]} : vector<32x384xf32> to vector<32x16xf32>
    %112 = vector.shape_cast %111 : vector<32x16xf32> to vector<2x16x16xf32>
    %113 = vector.extract_strided_slice %32 {offsets = [0, 320], sizes = [32, 16], strides = [1, 1]} : vector<32x384xf32> to vector<32x16xf32>
    %114 = vector.shape_cast %113 : vector<32x16xf32> to vector<2x16x16xf32>
    "tpu.trace_start"() <{level = 10 : i32, message = "bqd,bkd->bqk"}> : () -> ()
    %cst_32 = arith.constant dense<0.000000e+00> : vector<2x16x16xf32>
    %115 = tpu.matmul %110, %112, %cst_32 {dimension_numbers = #tpu.dot_dimension_numbers<[2], [2], [1], [1], [0, 0, 0, 1, 1, 1], [0], [0]>} : vector<2x16x16xf32>, vector<2x16x16xf32>, vector<2x16x16xf32> -> vector<2x16x16xf32>
    "tpu.trace_stop"() : () -> ()
    %cst_33 = arith.constant dense<0xFF800000> : vector<2x16xf32>
    %116 = vector.multi_reduction <maximumf>, %115, %cst_33 [2] : vector<2x16x16xf32> to vector<2x16xf32>
    %117 = vector.shape_cast %116 : vector<2x16xf32> to vector<2x16x1xf32>
    %118 = vector.broadcast %117 : vector<2x16x1xf32> to vector<2x16x16xf32>
    %119 = arith.subf %115, %118 : vector<2x16x16xf32>
    %120 = math.exp %119 : vector<2x16x16xf32>
    %cst_34 = arith.constant dense<0.000000e+00> : vector<2x16xf32>
    %121 = vector.multi_reduction <add>, %120, %cst_34 [2] : vector<2x16x16xf32> to vector<2x16xf32>
    %122 = vector.shape_cast %121 : vector<2x16xf32> to vector<2x16x1xf32>
    %123 = tpu.reciprocal %122 : vector<2x16x1xf32> -> vector<2x16x1xf32>
    %124 = vector.broadcast %123 : vector<2x16x1xf32> to vector<2x16x16xf32>
    %125 = arith.mulf %120, %124 : vector<2x16x16xf32>
    "tpu.trace_start"() <{level = 10 : i32, message = "bqk,bkd->bqd"}> : () -> ()
    %cst_35 = arith.constant dense<0.000000e+00> : vector<2x16x16xf32>
    %126 = tpu.matmul %125, %114, %cst_35 {dimension_numbers = #tpu.dot_dimension_numbers<[2], [1], [1], [2], [0, 0, 0, 1, 1, 2], [0], [0]>} : vector<2x16x16xf32>, vector<2x16x16xf32>, vector<2x16x16xf32> -> vector<2x16x16xf32>
    "tpu.trace_stop"() : () -> ()
    %127 = vector.shape_cast %126 : vector<2x16x16xf32> to vector<32x16xf32>
    %128 = vector.extract_strided_slice %32 {offsets = [0, 80], sizes = [32, 16], strides = [1, 1]} : vector<32x384xf32> to vector<32x16xf32>
    %129 = vector.shape_cast %128 : vector<32x16xf32> to vector<2x16x16xf32>
    %130 = vector.extract_strided_slice %32 {offsets = [0, 208], sizes = [32, 16], strides = [1, 1]} : vector<32x384xf32> to vector<32x16xf32>
    %131 = vector.shape_cast %130 : vector<32x16xf32> to vector<2x16x16xf32>
    %132 = vector.extract_strided_slice %32 {offsets = [0, 336], sizes = [32, 16], strides = [1, 1]} : vector<32x384xf32> to vector<32x16xf32>
    %133 = vector.shape_cast %132 : vector<32x16xf32> to vector<2x16x16xf32>
    "tpu.trace_start"() <{level = 10 : i32, message = "bqd,bkd->bqk"}> : () -> ()
    %cst_36 = arith.constant dense<0.000000e+00> : vector<2x16x16xf32>
    %134 = tpu.matmul %129, %131, %cst_36 {dimension_numbers = #tpu.dot_dimension_numbers<[2], [2], [1], [1], [0, 0, 0, 1, 1, 1], [0], [0]>} : vector<2x16x16xf32>, vector<2x16x16xf32>, vector<2x16x16xf32> -> vector<2x16x16xf32>
    "tpu.trace_stop"() : () -> ()
    %cst_37 = arith.constant dense<0xFF800000> : vector<2x16xf32>
    %135 = vector.multi_reduction <maximumf>, %134, %cst_37 [2] : vector<2x16x16xf32> to vector<2x16xf32>
    %136 = vector.shape_cast %135 : vector<2x16xf32> to vector<2x16x1xf32>
    %137 = vector.broadcast %136 : vector<2x16x1xf32> to vector<2x16x16xf32>
    %138 = arith.subf %134, %137 : vector<2x16x16xf32>
    %139 = math.exp %138 : vector<2x16x16xf32>
    %cst_38 = arith.constant dense<0.000000e+00> : vector<2x16xf32>
    %140 = vector.multi_reduction <add>, %139, %cst_38 [2] : vector<2x16x16xf32> to vector<2x16xf32>
    %141 = vector.shape_cast %140 : vector<2x16xf32> to vector<2x16x1xf32>
    %142 = tpu.reciprocal %141 : vector<2x16x1xf32> -> vector<2x16x1xf32>
    %143 = vector.broadcast %142 : vector<2x16x1xf32> to vector<2x16x16xf32>
    %144 = arith.mulf %139, %143 : vector<2x16x16xf32>
    "tpu.trace_start"() <{level = 10 : i32, message = "bqk,bkd->bqd"}> : () -> ()
    %cst_39 = arith.constant dense<0.000000e+00> : vector<2x16x16xf32>
    %145 = tpu.matmul %144, %133, %cst_39 {dimension_numbers = #tpu.dot_dimension_numbers<[2], [1], [1], [2], [0, 0, 0, 1, 1, 2], [0], [0]>} : vector<2x16x16xf32>, vector<2x16x16xf32>, vector<2x16x16xf32> -> vector<2x16x16xf32>
    "tpu.trace_stop"() : () -> ()
    %146 = vector.shape_cast %145 : vector<2x16x16xf32> to vector<32x16xf32>
    %147 = vector.extract_strided_slice %32 {offsets = [0, 96], sizes = [32, 16], strides = [1, 1]} : vector<32x384xf32> to vector<32x16xf32>
    %148 = vector.shape_cast %147 : vector<32x16xf32> to vector<2x16x16xf32>
    %149 = vector.extract_strided_slice %32 {offsets = [0, 224], sizes = [32, 16], strides = [1, 1]} : vector<32x384xf32> to vector<32x16xf32>
    %150 = vector.shape_cast %149 : vector<32x16xf32> to vector<2x16x16xf32>
    %151 = vector.extract_strided_slice %32 {offsets = [0, 352], sizes = [32, 16], strides = [1, 1]} : vector<32x384xf32> to vector<32x16xf32>
    %152 = vector.shape_cast %151 : vector<32x16xf32> to vector<2x16x16xf32>
    "tpu.trace_start"() <{level = 10 : i32, message = "bqd,bkd->bqk"}> : () -> ()
    %cst_40 = arith.constant dense<0.000000e+00> : vector<2x16x16xf32>
    %153 = tpu.matmul %148, %150, %cst_40 {dimension_numbers = #tpu.dot_dimension_numbers<[2], [2], [1], [1], [0, 0, 0, 1, 1, 1], [0], [0]>} : vector<2x16x16xf32>, vector<2x16x16xf32>, vector<2x16x16xf32> -> vector<2x16x16xf32>
    "tpu.trace_stop"() : () -> ()
    %cst_41 = arith.constant dense<0xFF800000> : vector<2x16xf32>
    %154 = vector.multi_reduction <maximumf>, %153, %cst_41 [2] : vector<2x16x16xf32> to vector<2x16xf32>
    %155 = vector.shape_cast %154 : vector<2x16xf32> to vector<2x16x1xf32>
    %156 = vector.broadcast %155 : vector<2x16x1xf32> to vector<2x16x16xf32>
    %157 = arith.subf %153, %156 : vector<2x16x16xf32>
    %158 = math.exp %157 : vector<2x16x16xf32>
    %cst_42 = arith.constant dense<0.000000e+00> : vector<2x16xf32>
    %159 = vector.multi_reduction <add>, %158, %cst_42 [2] : vector<2x16x16xf32> to vector<2x16xf32>
    %160 = vector.shape_cast %159 : vector<2x16xf32> to vector<2x16x1xf32>
    %161 = tpu.reciprocal %160 : vector<2x16x1xf32> -> vector<2x16x1xf32>
    %162 = vector.broadcast %161 : vector<2x16x1xf32> to vector<2x16x16xf32>
    %163 = arith.mulf %158, %162 : vector<2x16x16xf32>
    "tpu.trace_start"() <{level = 10 : i32, message = "bqk,bkd->bqd"}> : () -> ()
    %cst_43 = arith.constant dense<0.000000e+00> : vector<2x16x16xf32>
    %164 = tpu.matmul %163, %152, %cst_43 {dimension_numbers = #tpu.dot_dimension_numbers<[2], [1], [1], [2], [0, 0, 0, 1, 1, 2], [0], [0]>} : vector<2x16x16xf32>, vector<2x16x16xf32>, vector<2x16x16xf32> -> vector<2x16x16xf32>
    "tpu.trace_stop"() : () -> ()
    %165 = vector.shape_cast %164 : vector<2x16x16xf32> to vector<32x16xf32>
    %166 = vector.extract_strided_slice %32 {offsets = [0, 112], sizes = [32, 16], strides = [1, 1]} : vector<32x384xf32> to vector<32x16xf32>
    %167 = vector.shape_cast %166 : vector<32x16xf32> to vector<2x16x16xf32>
    %168 = vector.extract_strided_slice %32 {offsets = [0, 240], sizes = [32, 16], strides = [1, 1]} : vector<32x384xf32> to vector<32x16xf32>
    %169 = vector.shape_cast %168 : vector<32x16xf32> to vector<2x16x16xf32>
    %170 = vector.extract_strided_slice %32 {offsets = [0, 368], sizes = [32, 16], strides = [1, 1]} : vector<32x384xf32> to vector<32x16xf32>
    %171 = vector.shape_cast %170 : vector<32x16xf32> to vector<2x16x16xf32>
    "tpu.trace_start"() <{level = 10 : i32, message = "bqd,bkd->bqk"}> : () -> ()
    %cst_44 = arith.constant dense<0.000000e+00> : vector<2x16x16xf32>
    %172 = tpu.matmul %167, %169, %cst_44 {dimension_numbers = #tpu.dot_dimension_numbers<[2], [2], [1], [1], [0, 0, 0, 1, 1, 1], [0], [0]>} : vector<2x16x16xf32>, vector<2x16x16xf32>, vector<2x16x16xf32> -> vector<2x16x16xf32>
    "tpu.trace_stop"() : () -> ()
    %cst_45 = arith.constant dense<0xFF800000> : vector<2x16xf32>
    %173 = vector.multi_reduction <maximumf>, %172, %cst_45 [2] : vector<2x16x16xf32> to vector<2x16xf32>
    %174 = vector.shape_cast %173 : vector<2x16xf32> to vector<2x16x1xf32>
    %175 = vector.broadcast %174 : vector<2x16x1xf32> to vector<2x16x16xf32>
    %176 = arith.subf %172, %175 : vector<2x16x16xf32>
    %177 = math.exp %176 : vector<2x16x16xf32>
    %cst_46 = arith.constant dense<0.000000e+00> : vector<2x16xf32>
    %178 = vector.multi_reduction <add>, %177, %cst_46 [2] : vector<2x16x16xf32> to vector<2x16xf32>
    %179 = vector.shape_cast %178 : vector<2x16xf32> to vector<2x16x1xf32>
    %180 = tpu.reciprocal %179 : vector<2x16x1xf32> -> vector<2x16x1xf32>
    %181 = vector.broadcast %180 : vector<2x16x1xf32> to vector<2x16x16xf32>
    %182 = arith.mulf %177, %181 : vector<2x16x16xf32>
    "tpu.trace_start"() <{level = 10 : i32, message = "bqk,bkd->bqd"}> : () -> ()
    %cst_47 = arith.constant dense<0.000000e+00> : vector<2x16x16xf32>
    %183 = tpu.matmul %182, %171, %cst_47 {dimension_numbers = #tpu.dot_dimension_numbers<[2], [1], [1], [2], [0, 0, 0, 1, 1, 2], [0], [0]>} : vector<2x16x16xf32>, vector<2x16x16xf32>, vector<2x16x16xf32> -> vector<2x16x16xf32>
    "tpu.trace_stop"() : () -> ()
    %184 = vector.shape_cast %183 : vector<2x16x16xf32> to vector<32x16xf32>
    %185 = tpu.concatenate %51, %70, %89, %108, %127, %146, %165, %184 in 1 : vector<32x16xf32>, vector<32x16xf32>, vector<32x16xf32>, vector<32x16xf32>, vector<32x16xf32>, vector<32x16xf32>, vector<32x16xf32>, vector<32x16xf32> -> vector<32x128xf32>
    %c0_48 = arith.constant 0 : index
    %c0_49 = arith.constant 0 : index
    %c0_50 = arith.constant 0 : index
    %186 = vector.load %arg6[%c0_48, %c0_49, %c0_50] : memref<1x128x128xf32, #tpu.memory_space<vmem>>, vector<1x128x128xf32>
    %187 = vector.shape_cast %186 : vector<1x128x128xf32> to vector<128x128xf32>
    %cst_51 = arith.constant dense<0.000000e+00> : vector<32x128xf32>
    %188 = tpu.matmul %185, %187, %cst_51 {dimension_numbers = #tpu.dot_dimension_numbers<[1], [0], [0], [1], [0, 0, 1, 1], [], []>} : vector<32x128xf32>, vector<128x128xf32>, vector<32x128xf32> -> vector<32x128xf32>
    %c0_52 = arith.constant 0 : index
    %c0_53 = arith.constant 0 : index
    %c0_54 = arith.constant 0 : index
    %189 = vector.load %arg7[%c0_52, %c0_53, %c0_54] : memref<1x1x128xf32, #tpu.memory_space<vmem>>, vector<1x1x128xf32>
    %190 = vector.shape_cast %189 : vector<1x1x128xf32> to vector<1x128xf32>
    %191 = vector.broadcast %190 : vector<1x128xf32> to vector<32x128xf32>
    %192 = arith.addf %188, %191 : vector<32x128xf32>
    %193 = arith.addf %192, %3 : vector<32x128xf32>
    %c0_55 = arith.constant 0 : index
    %c0_56 = arith.constant 0 : index
    %c0_57 = arith.constant 0 : index
    %194 = vector.load %arg8[%c0_55, %c0_56, %c0_57] : memref<1x1x128xf32, #tpu.memory_space<vmem>>, vector<1x1x128xf32>
    %195 = vector.shape_cast %194 : vector<1x1x128xf32> to vector<1x128xf32>
    %c0_58 = arith.constant 0 : index
    %c0_59 = arith.constant 0 : index
    %c0_60 = arith.constant 0 : index
    %196 = vector.load %arg9[%c0_58, %c0_59, %c0_60] : memref<1x1x128xf32, #tpu.memory_space<vmem>>, vector<1x1x128xf32>
    %197 = vector.shape_cast %196 : vector<1x1x128xf32> to vector<1x128xf32>
    %cst_61 = arith.constant dense<0.000000e+00> : vector<32xf32>
    %198 = vector.multi_reduction <add>, %193, %cst_61 [1] : vector<32x128xf32> to vector<32xf32>
    %199 = vector.shape_cast %198 : vector<32xf32> to vector<32x1xf32>
    %cst_62 = arith.constant 1.280000e+02 : f32
    %200 = vector.broadcast %cst_62 : f32 to vector<32x1xf32>
    %201 = arith.divf %199, %200 : vector<32x1xf32>
    %202 = vector.broadcast %201 : vector<32x1xf32> to vector<32x128xf32>
    %203 = arith.subf %193, %202 : vector<32x128xf32>
    %204 = arith.mulf %203, %203 : vector<32x128xf32>
    %cst_63 = arith.constant dense<0.000000e+00> : vector<32xf32>
    %205 = vector.multi_reduction <add>, %204, %cst_63 [1] : vector<32x128xf32> to vector<32xf32>
    %206 = vector.shape_cast %205 : vector<32xf32> to vector<32x1xf32>
    %cst_64 = arith.constant 1.280000e+02 : f32
    %207 = vector.broadcast %cst_64 : f32 to vector<32x1xf32>
    %208 = arith.divf %206, %207 : vector<32x1xf32>
    %209 = vector.broadcast %201 : vector<32x1xf32> to vector<32x128xf32>
    %210 = arith.subf %193, %209 : vector<32x128xf32>
    %cst_65 = arith.constant 9.99999974E-6 : f32
    %211 = vector.broadcast %cst_65 : f32 to vector<32x1xf32>
    %212 = arith.addf %208, %211 : vector<32x1xf32>
    %213 = math.rsqrt %212 : vector<32x1xf32>
    %214 = vector.broadcast %213 : vector<32x1xf32> to vector<32x128xf32>
    %215 = arith.mulf %210, %214 : vector<32x128xf32>
    %216 = vector.broadcast %195 : vector<1x128xf32> to vector<32x128xf32>
    %217 = arith.mulf %215, %216 : vector<32x128xf32>
    %218 = vector.broadcast %197 : vector<1x128xf32> to vector<32x128xf32>
    %219 = arith.addf %217, %218 : vector<32x128xf32>
    %c0_66 = arith.constant 0 : index
    %c0_67 = arith.constant 0 : index
    %c0_68 = arith.constant 0 : index
    %220 = vector.load %arg10[%c0_66, %c0_67, %c0_68] : memref<1x128x256xf32, #tpu.memory_space<vmem>>, vector<1x128x256xf32>
    %221 = vector.shape_cast %220 : vector<1x128x256xf32> to vector<128x256xf32>
    %cst_69 = arith.constant dense<0.000000e+00> : vector<32x256xf32>
    %222 = tpu.matmul %219, %221, %cst_69 {dimension_numbers = #tpu.dot_dimension_numbers<[1], [0], [0], [1], [0, 0, 1, 1], [], []>} : vector<32x128xf32>, vector<128x256xf32>, vector<32x256xf32> -> vector<32x256xf32>
    %c0_70 = arith.constant 0 : index
    %c0_71 = arith.constant 0 : index
    %c0_72 = arith.constant 0 : index
    %223 = vector.load %arg11[%c0_70, %c0_71, %c0_72] : memref<1x1x256xf32, #tpu.memory_space<vmem>>, vector<1x1x256xf32>
    %224 = vector.shape_cast %223 : vector<1x1x256xf32> to vector<1x256xf32>
    %225 = vector.broadcast %224 : vector<1x256xf32> to vector<32x256xf32>
    %226 = arith.addf %222, %225 : vector<32x256xf32>
    %cst_73 = arith.constant 5.000000e-01 : f32
    %227 = vector.broadcast %cst_73 : f32 to vector<32x256xf32>
    %228 = arith.mulf %227, %226 : vector<32x256xf32>
    %cst_74 = arith.constant 0.707106769 : f32
    %229 = vector.broadcast %cst_74 : f32 to vector<32x256xf32>
    %230 = arith.mulf %226, %229 : vector<32x256xf32>
    %231 = math.erf %230 : vector<32x256xf32>
    %cst_75 = arith.constant 1.000000e+00 : f32
    %232 = vector.broadcast %cst_75 : f32 to vector<32x256xf32>
    %233 = arith.addf %232, %231 : vector<32x256xf32>
    %234 = arith.mulf %228, %233 : vector<32x256xf32>
    %c0_76 = arith.constant 0 : index
    %c0_77 = arith.constant 0 : index
    %c0_78 = arith.constant 0 : index
    %235 = vector.load %arg12[%c0_76, %c0_77, %c0_78] : memref<1x256x128xf32, #tpu.memory_space<vmem>>, vector<1x256x128xf32>
    %236 = vector.shape_cast %235 : vector<1x256x128xf32> to vector<256x128xf32>
    %cst_79 = arith.constant dense<0.000000e+00> : vector<32x128xf32>
    %237 = tpu.matmul %234, %236, %cst_79 {dimension_numbers = #tpu.dot_dimension_numbers<[1], [0], [0], [1], [0, 0, 1, 1], [], []>} : vector<32x256xf32>, vector<256x128xf32>, vector<32x128xf32> -> vector<32x128xf32>
    %c0_80 = arith.constant 0 : index
    %c0_81 = arith.constant 0 : index
    %c0_82 = arith.constant 0 : index
    %238 = vector.load %arg13[%c0_80, %c0_81, %c0_82] : memref<1x1x128xf32, #tpu.memory_space<vmem>>, vector<1x1x128xf32>
    %239 = vector.shape_cast %238 : vector<1x1x128xf32> to vector<1x128xf32>
    %240 = vector.broadcast %239 : vector<1x128xf32> to vector<32x128xf32>
    %241 = arith.addf %237, %240 : vector<32x128xf32>
    %242 = arith.addf %193, %241 : vector<32x128xf32>
    %c0_83 = arith.constant 0 : index
    %c0_84 = arith.constant 0 : index
    %243 = vector.load %arg15[%c0_83, %c0_84] : memref<32x128xf32, #tpu.memory_space<vmem>>, vector<32x128xf32>
    tpu.vector_store %arg15[%c0_83, %c0_84], %242 {strides = array<i32>} : memref<32x128xf32, #tpu.memory_space<vmem>>, vector<32x128xf32>,
    %c1_i32 = arith.constant 1 : i32
    %244 = arith.cmpi eq, %arg1, %c1_i32 : i32
    %245 = arith.extui %244 : i1 to i32
    %c0_i32_85 = arith.constant 0 : i32
    %246 = arith.cmpi ne, %245, %c0_i32_85 : i32
    scf.if %246 {
      %247 = vector.shape_cast %242 : vector<32x128xf32> to vector<2x16x128xf32>
      %c0_86 = arith.constant 0 : index
      %c0_87 = arith.constant 0 : index
      %c0_88 = arith.constant 0 : index
      %248 = vector.load %arg14[%c0_86, %c0_87, %c0_88] : memref<2x16x128xf32, #tpu.memory_space<vmem>>, vector<2x16x128xf32>
      tpu.vector_store %arg14[%c0_86, %c0_87, %c0_88], %247 {strides = array<i32>} : memref<2x16x128xf32, #tpu.memory_space<vmem>>, vector<2x16x128xf32>,
    } else {
    }
    return
  }
  func.func @transform_0(%arg0: i32, %arg1: i32) -> (i32, i32, i32) {
    %c0_i32 = arith.constant 0 : i32
    %c0_i32_0 = arith.constant 0 : i32
    %c0_i32_1 = arith.constant 0 : i32
    return %arg0, %c0_i32, %c0_i32_0 : i32, i32, i32
  }
  func.func @transform_1(%arg0: i32, %arg1: i32) -> (i32, i32, i32) {
    %c0_i32 = arith.constant 0 : i32
    %c0_i32_0 = arith.constant 0 : i32
    %c0_i32_1 = arith.constant 0 : i32
    return %arg1, %c0_i32, %c0_i32_0 : i32, i32, i32
  }
  func.func @transform_2(%arg0: i32, %arg1: i32) -> (i32, i32, i32) {
    %c0_i32 = arith.constant 0 : i32
    %c0_i32_0 = arith.constant 0 : i32
    %c0_i32_1 = arith.constant 0 : i32
    return %arg1, %c0_i32, %c0_i32_0 : i32, i32, i32
  }
  func.func @transform_3(%arg0: i32, %arg1: i32) -> (i32, i32, i32) {
    %c0_i32 = arith.constant 0 : i32
    %c0_i32_0 = arith.constant 0 : i32
    %c0_i32_1 = arith.constant 0 : i32
    return %arg1, %c0_i32, %c0_i32_0 : i32, i32, i32
  }
  func.func @transform_4(%arg0: i32, %arg1: i32) -> (i32, i32, i32) {
    %c0_i32 = arith.constant 0 : i32
    %c0_i32_0 = arith.constant 0 : i32
    %c0_i32_1 = arith.constant 0 : i32
    return %arg1, %c0_i32, %c0_i32_0 : i32, i32, i32
  }
  func.func @transform_5(%arg0: i32, %arg1: i32) -> (i32, i32, i32) {
    %c0_i32 = arith.constant 0 : i32
    %c0_i32_0 = arith.constant 0 : i32
    %c0_i32_1 = arith.constant 0 : i32
    return %arg1, %c0_i32, %c0_i32_0 : i32, i32, i32
  }
  func.func @transform_6(%arg0: i32, %arg1: i32) -> (i32, i32, i32) {
    %c0_i32 = arith.constant 0 : i32
    %c0_i32_0 = arith.constant 0 : i32
    %c0_i32_1 = arith.constant 0 : i32
    return %arg1, %c0_i32, %c0_i32_0 : i32, i32, i32
  }
  func.func @transform_7(%arg0: i32, %arg1: i32) -> (i32, i32, i32) {
    %c0_i32 = arith.constant 0 : i32
    %c0_i32_0 = arith.constant 0 : i32
    %c0_i32_1 = arith.constant 0 : i32
    return %arg1, %c0_i32, %c0_i32_0 : i32, i32, i32
  }
  func.func @transform_8(%arg0: i32, %arg1: i32) -> (i32, i32, i32) {
    %c0_i32 = arith.constant 0 : i32
    %c0_i32_0 = arith.constant 0 : i32
    %c0_i32_1 = arith.constant 0 : i32
    return %arg1, %c0_i32, %c0_i32_0 : i32, i32, i32
  }
  func.func @transform_9(%arg0: i32, %arg1: i32) -> (i32, i32, i32) {
    %c0_i32 = arith.constant 0 : i32
    %c0_i32_0 = arith.constant 0 : i32
    %c0_i32_1 = arith.constant 0 : i32
    return %arg1, %c0_i32, %c0_i32_0 : i32, i32, i32
  }
  func.func @transform_10(%arg0: i32, %arg1: i32) -> (i32, i32, i32) {
    %c0_i32 = arith.constant 0 : i32
    %c0_i32_0 = arith.constant 0 : i32
    %c0_i32_1 = arith.constant 0 : i32
    return %arg1, %c0_i32, %c0_i32_0 : i32, i32, i32
  }
  func.func @transform_11(%arg0: i32, %arg1: i32) -> (i32, i32, i32) {
    %c0_i32 = arith.constant 0 : i32
    %c0_i32_0 = arith.constant 0 : i32
    %c0_i32_1 = arith.constant 0 : i32
    return %arg1, %c0_i32, %c0_i32_0 : i32, i32, i32
  }
  func.func @transform_12(%arg0: i32, %arg1: i32) -> (i32, i32, i32) {
    %c0_i32 = arith.constant 0 : i32
    %c0_i32_0 = arith.constant 0 : i32
    %c0_i32_1 = arith.constant 0 : i32
    return %arg0, %c0_i32, %c0_i32_0 : i32, i32, i32
  }
}

</mosaic_0001>

<bundles_post_ra>
// kernel: transformer_forward.1
= control target key start
LH: loop header
LB: loop body
LE: loop exit
PB: predicated region body
PF: predicated region fallthrough
CT: control target
= control target key end

     0   :  { %s6102_s0 = inlined_call_operand.vmem [shape: f32[2,16,128], index: 0, kind: input, shape index: {}]   ;;  %s6103_s1 = inlined_call_operand.vmem [shape: f32[2,1,128], index: 1, kind: input, shape index: {}]   ;;  %s6104_s2 = inlined_call_operand.vmem [shape: f32[2,1,128], index: 2, kind: input, shape index: {}]   ;;  %s6105_s3 = inlined_call_operand.vmem [shape: f32[2,128,384], index: 3, kind: input, shape index: {}]   ;;  %s6106_s4 = inlined_call_operand.vmem [shape: f32[2,128,128], index: 4, kind: input, shape index: {}]   ;;  %s6107_s5 = inlined_call_operand.vmem [shape: f32[2,1,128], index: 5, kind: input, shape index: {}]   ;;  %s6108_s6 = inlined_call_operand.vmem [shape: f32[2,1,128], index: 6, kind: input, shape index: {}]   ;;  %s6109_s7 = inlined_call_operand.vmem [shape: f32[2,1,128], index: 7, kind: input, shape index: {}]   ;;  %s6110_s8 = inlined_call_operand.vmem [shape: f32[2,128,256], index: 8, kind: input, shape index: {}]   ;;  %s6111_s9 = inlined_call_operand.vmem [shape: f32[2,1,256], index: 9, kind: input, shape index: {}]   ;;  %s6112_s10 = inlined_call_operand.vmem [shape: f32[2,256,128], index: 10, kind: input, shape index: {}]   ;;  %s6113_s11 = inlined_call_operand.vmem [shape: f32[2,1,128], index: 11, kind: input, shape index: {}]   ;;  %s6114_s12 = inlined_call_operand.hbm [shape: f32[2,16,128], index: 12, kind: output, shape index: {}]  }
   0x1   :  { %6117 = sst [smem:[#allocation9_spill]] %s6106_s4 }
   0x2   :  { %6118 = sst [smem:[#allocation10_spill]] %s6114_s12 }
   0x3   :  { %17 = vsyncpa [#allocation4], 0  ;;  %s4429_s21 = smov 0   ;;  %s4431_s22 = smov 0  }
   0x4   :  { %s4433_s23 = smov 0  }
   0x5 LB: > { %6119 = sst [smem:[#allocation6_spill]] %s4347_s22  ;;  %s32_s25 = sadd.s32 1, %s4347_s22  ;;  %s4351_s23 = sphi %s4433_s23, %s23_s23   ;;  %s4347_s22 = sphi %s4431_s22, %s6160_s22   ;;  %s4343_s21 = sphi %s4429_s21, %s6159_s21  }
   0x6   : > { %6120 = sst [smem:[#allocation7_spill]] %s4351_s23  ;;  %p33_p0 = scmp.ge.s32.totalorder %s32_s25, 2 }
   0x7   : > { %p3834_p1 = scmp.ge.s32.totalorder %s4351_s23, 1  ;;  %p474_p2 = scmp.lt.s32.totalorder %s4351_s23, 3 }
   0x8   : > { %s6162_s25 = smov (%p33_p0, %s32_s25), 0 }
   0x9   : > { %6121 = sst [smem:[#allocation8_spill]] %s6162_s25  ;;  %p475_p3 = pnand %p3834_p1, %p474_p2 }
   0xa   : > { %p561_p4 = scmp.lt.s32.totalorder (!%p475_p3), %s4343_s21, 1  ;;  %s6122_s4 = sld [smem:[#allocation9_spill]] (!%p475_p3) }
   0xb   : > { %478 = sbr.rel (%p475_p3) target bundleno = 2525 (0x9dd), region = 68  ;;  %p3843_p5 = scmp.ne.s32.totalorder (!%p475_p3), %s4343_s21, 0 }
  0x10   : > { %s4452_s26 = scalar_select %p561_p4, %s4343_s21, 1 }
  0x12   : > { %s3958_s15 = smul.u32 384, %s4452_s26  ;;  %s3953_s16 = sshll.u32 %s4452_s26, 7 }
  0x13   : > { %s4467_s19 = scalar_lea.vmem %s6122_s4, %s3953_s16  ;;  %s582_s30 = scalar_lea.vmem %s6108_s6, %s4452_s26 }
  0x14   : > { %s4476_s22 = scalar_lea.vmem %s6105_s3, %s3958_s15  ;;  %s3954_s17 = sshll.u32 %s4452_s26, 8 }
  0x15   : > { %s4490_s4 = scalar_lea.vmem %s6110_s8, %s3954_s17  ;;  %s3840_s20 = sshll.u32 %s4452_s26, 1 }
  0x16   : > { %s4496_s24 = scalar_lea.vmem %s6111_s9, %s3840_s20  ;;  %s4501_s12 = scalar_lea.vmem %s6112_s10, %s3954_s17 }
  0x17   : > { %s602_s13 = scalar_lea.vmem %s6113_s11, %s4452_s26  ;;  %607 = sbr.rel (%p3843_p5) target bundleno = 33 (0x21), region = 72 }
  0x1c   : > { %v608_v0 = vld [vmem:[%s6102_s0] sm:$0xff]  ;;  %v609_v1 = vld [vmem:[%s6102_s0 + $0x8] sm:$0xff]  ;;  %v610_v2 = vld [vmem:[%s6102_s0 + $0x10] sm:$0xff] }
  0x1d   : > { %612 = vst [vmem:[#allocation2 + $0x10] sm:$0xff] %v608_v0  ;;  %v611_v3 = vld [vmem:[%s6102_s0 + $0x18] sm:$0xff] }
  0x1e   : > { %613 = vst [vmem:[#allocation2] sm:$0xff] %v609_v1 }
  0x1f   : > { %614 = vst [vmem:[#allocation2 + $0x18] sm:$0xff] %v610_v2 }
  0x20   : > { %615 = vst [vmem:[#allocation2 + $0x8] sm:$0xff] %v611_v3 }
  0x21 PF: > { %v4353_v8 = vmov 128.0   ;;  %v768_v13 = vld [vmem:[%s4476_s22 + $0x168] sm:$0xff]  ;;  %v769_v14 = vld [vmem:[%s4476_s22 + $0x170] sm:$0xff]  ;;  %v770_v15 = vld [vmem:[%s4476_s22 + $0x178] sm:$0xff]  ;;  %s6123_s15 = scalar_lea.vmem %s6103_s1, %s4452_s26  ;;  %s6124_s16 = scalar_lea.vmem %s6104_s2, %s4452_s26  ;;  %vm858_vm13 = vcmask 130048  }
  0x22   : > { %4131 = vrcp.f32 %v4353_v8  ;;  %771 = vmatpush.msra.mxu0 %v768_v13  ;;  %800 = vmatpush.msra.mxu1 %v769_v14  ;;  %v765_v16 = vld [vmem:[%s4476_s22 + $0x150] sm:$0xff]  ;;  %v766_v17 = vld [vmem:[%s4476_s22 + $0x158] sm:$0xff]  ;;  %v767_v18 = vld [vmem:[%s4476_s22 + $0x160] sm:$0xff]  ;;  %s4354_s18 = smov 112   ;;  %s4355_s28 = smov 96  }
  0x23   : > { %829 = vmatpush.msra.mxu2 %v770_v15  ;;  %v762_v37 = vld [vmem:[%s4476_s22 + $0x138] sm:$0xff]  ;;  %v763_v38 = vld [vmem:[%s4476_s22 + $0x140] sm:$0xff]  ;;  %v764_v39 = vld [vmem:[%s4476_s22 + $0x148] sm:$0xff]  ;;  %s4356_s20 = smov 80   ;;  %s4357_s27 = smov 64  }
  0x24   : > { %v616_v4 = vld [vmem:[#allocation2 + $0x10] sm:$0xff]  ;;  %772 = vmatpush.msra.mxu0 %v765_v16  ;;  %801 = vmatpush.msra.mxu1 %v766_v17  ;;  %v759_v40 = vld [vmem:[%s4476_s22 + $0x120] sm:$0xff]  ;;  %v760_v41 = vld [vmem:[%s4476_s22 + $0x128] sm:$0xff]  ;;  %s4358_s17 = smov 48   ;;  %s4359_s25 = smov 32  }
  0x25   : > { %622 = vadd.xlane.f32.xlu0 %v616_v4  ;;  %v617_v6 = vld [vmem:[#allocation2] sm:$0xff]  ;;  %830 = vmatpush.msra.mxu2 %v767_v18  ;;  %v761_v42 = vld [vmem:[%s4476_s22 + $0x130] sm:$0xff]  ;;  %v756_v43 = vld [vmem:[%s4476_s22 + $0x108] sm:$0xff]  ;;  %p3948_p6 = scmp.ne.s32.totalorder %s4343_s21, 1 }
  0x26   : > { %v618_v5 = vld [vmem:[#allocation2 + $0x18] sm:$0xff]  ;;  %773 = vmatpush.msra.mxu0 %v762_v37  ;;  %802 = vmatpush.msra.mxu1 %v763_v38  ;;  %v757_v44 = vld [vmem:[%s4476_s22 + $0x110] sm:$0xff]  ;;  %v755_v48 = vld [vmem:[%s4476_s22 + $0x100] sm:$0xff] }
  0x27   : > { %626 = vadd.xlane.f32.xlu2 %v618_v5  ;;  %v619_v7 = vld [vmem:[#allocation2 + $0x8] sm:$0xff]  ;;  %831 = vmatpush.msra.mxu2 %v764_v39  ;;  %v758_v45 = vld [vmem:[%s4476_s22 + $0x118] sm:$0xff]  ;;  %v753_v46 = vld [vmem:[%s4476_s22 + $0xf0] sm:$0xff] }
  0x28   : > { %v4132_v9 = vpop.eup %4131  ;;  %774 = vmatpush.msra.mxu0 %v759_v40  ;;  %803 = vmatpush.msra.mxu1 %v760_v41  ;;  %v754_v47 = vld [vmem:[%s4476_s22 + $0xf8] sm:$0xff]  ;;  %v751_v50 = vld [vmem:[%s4476_s22 + $0xe0] sm:$0xff]  ;;  %v752_v51 = vld [vmem:[%s4476_s22 + $0xe8] sm:$0xff] }
  0x29   : > { %v631_v10 = vmul.f32 128.0, %v4132_v9  ;;  %vm635_vm0 = vweird.f32 %v4132_v9  ;;  %832 = vmatpush.msra.mxu2 %v761_v42  ;;  %v750_v49 = vld [vmem:[%s4476_s22 + $0xd8] sm:$0xff]  ;;  %v747_v52 = vld [vmem:[%s4476_s22 + $0xc0] sm:$0xff]  ;;  %v748_v53 = vld [vmem:[%s4476_s22 + $0xc8] sm:$0xff] }
  0x2a   : > { %775 = vmatpush.msra.mxu0 %v756_v43  ;;  %804 = vmatpush.msra.mxu1 %v757_v44  ;;  %v749_v54 = vld [vmem:[%s4476_s22 + $0xd0] sm:$0xff]  ;;  %v744_v55 = vld [vmem:[%s4476_s22 + $0xa8] sm:$0xff]  ;;  %v746_v57 = vld [vmem:[%s4476_s22 + $0xb8] sm:$0xff] }
  0x2b   : > { %v632_v11 = vsub.f32 1.0, %v631_v10  ;;  %833 = vmatpush.msra.mxu2 %v758_v45  ;;  %v745_v56 = vld [vmem:[%s4476_s22 + $0xb0] sm:$0xff]  ;;  %v742_v59 = vld [vmem:[%s4476_s22 + $0x98] sm:$0xff]  ;;  %v743_v60 = vld [vmem:[%s4476_s22 + $0xa0] sm:$0xff] }
  0x2c   : > { %776 = vmatpush.msra.mxu0 %v753_v46  ;;  %805 = vmatpush.msra.mxu1 %v754_v47  ;;  %v741_v58 = vld [vmem:[%s4476_s22 + $0x90] sm:$0xff]  ;;  %v738_v61 = vld [vmem:[%s4476_s22 + $0x78] sm:$0xff]  ;;  %v739_v62 = vld [vmem:[%s4476_s22 + $0x80] sm:$0xff] }
  0x2d   : > { %624 = vadd.xlane.f32.xlu0 %v617_v6  ;;  %v633_v12 = vmul.f32 %v4132_v9, %v632_v11  ;;  %834 = vmatpush.msra.mxu2 %v755_v48  ;;  %v740_v63 = vld [vmem:[%s4476_s22 + $0x88] sm:$0xff]  ;;  %v735_v0 = vld [vmem:[%s4476_s22 + $0x60] sm:$0xff]  ;;  %v737_v2 = vld [vmem:[%s4476_s22 + $0x70] sm:$0xff] }
  0x2e   : > { %777 = vmatpush.msra.mxu0 %v750_v49  ;;  %806 = vmatpush.msra.mxu1 %v751_v50  ;;  %v736_v1 = vld [vmem:[%s4476_s22 + $0x68] sm:$0xff]  ;;  %v731_v8 = vld [vmem:[%s4476_s22 + $0x40] sm:$0xff]  ;;  %v725_v14 = vld [vmem:[%s4476_s22 + $0x10] sm:$0xff] }
  0x2f   : > { %628 = vadd.xlane.f32.xlu2 %v619_v7  ;;  %v634_v19 = vadd.f32 %v4132_v9, %v633_v12  ;;  %835 = vmatpush.msra.mxu2 %v752_v51  ;;  %v732_v3 = vld [vmem:[%s4476_s22 + $0x48] sm:$0xff]  ;;  %v727_v10 = vld [vmem:[%s4476_s22 + $0x20] sm:$0xff] }
  0x30   : > { %778 = vmatpush.msra.mxu0 %v747_v52  ;;  %807 = vmatpush.msra.mxu1 %v748_v53  ;;  %v728_v11 = vld [vmem:[%s4476_s22 + $0x28] sm:$0xff]  ;;  %v723_v12 = vld [vmem:[%s4476_s22] sm:$0xff] }
  0x31   : > { %v4526_v20 = vsel %vm635_vm0, %v4132_v9, %v634_v19  ;;  %836 = vmatpush.msra.mxu2 %v749_v54  ;;  %v726_v9 = vld [vmem:[%s4476_s22 + $0x18] sm:$0xff]  ;;  %v724_v13 = vld [vmem:[%s4476_s22 + $0x8] sm:$0xff]  ;;  %v4125_v44 = vld [vmem:[%s6123_s15] ss:$0 sm:$0xff]  ;;  %s6147_s15 = scalar_lea.vmem %s6107_s5, %s4452_s26 }
  0x32   : > { %779 = vmatpush.msra.mxu0 %v744_v55  ;;  %808 = vmatpush.msra.mxu1 %v745_v56  ;;  %v4126_v49 = vld [vmem:[%s6124_s16] ss:$0 sm:$0xff] }
  0x33   : > { %837 = vmatpush.msra.mxu2 %v746_v57 }
  0x34   : > { %780 = vmatpush.msra.mxu0 %v741_v58  ;;  %809 = vmatpush.msra.mxu1 %v742_v59 }
  0x35   : > { %838 = vmatpush.msra.mxu2 %v743_v60 }
  0x36   : > { %781 = vmatpush.msra.mxu0 %v738_v61  ;;  %810 = vmatpush.msra.mxu1 %v739_v62 }
  0x37   : > { %839 = vmatpush.msra.mxu2 %v740_v63 }
  0x38   : > { %782 = vmatpush.msra.mxu0 %v735_v0  ;;  %811 = vmatpush.msra.mxu1 %v736_v1 }
  0x39   : > { %840 = vmatpush.msra.mxu2 %v737_v2 }
  0x3a   : > { %783 = vmatpush.msra.mxu0 %v732_v3 }
  0x98   : > { %v623_v21 = vpop.xlane.xlu0 %622 }
  0x99   : > { %v637_v23 = vmul.f32 %v4526_v20, %v623_v21 }
  0x9a   : > { %v627_v22 = vpop.xlane.xlu2 %626 }
  0x9b   : > { %v639_v24 = vmul.f32 %v4526_v20, %v627_v22  ;;  %v4530_v25 = vsub.f32 %v616_v4, %v637_v23  ;;  %v733_v4 = vld [vmem:[%s4476_s22 + $0x50] sm:$0xff] }
  0x9c   : > { %812 = vmatpush.msra.mxu1 %v733_v4 }
  0x9d   : > { %v4532_v26 = vsub.f32 %v618_v5, %v639_v24  ;;  %v645_v27 = vmul.f32 %v4530_v25, %v4530_v25  ;;  %v734_v5 = vld [vmem:[%s4476_s22 + $0x58] sm:$0xff] }
  0x9e   : > { %841 = vmatpush.msra.mxu2 %v734_v5 }
  0x9f   : > { %v647_v28 = vmul.f32 %v4532_v26, %v4532_v26  ;;  %649 = vadd.xlane.f32.xlu1 %v645_v27 }
  0xa0   : > { %v625_v29 = vpop.xlane.xlu0 %624  ;;  %842 = vmatpush.msra.mxu2 %v731_v8 }
  0xa1   : > { %653 = vadd.xlane.f32.xlu0 %v647_v28  ;;  %v638_v31 = vmul.f32 %v4526_v20, %v625_v29 }
  0xa2   : > { %v629_v30 = vpop.xlane.xlu2 %628  ;;  %843 = vmatpush.msra.mxu2 %v728_v11 }
  0xa3   : > { %v4539_v32 = vsub.f32 %v617_v6, %v638_v31  ;;  %v640_v33 = vmul.f32 %v4526_v20, %v629_v30  ;;  %v729_v6 = vld [vmem:[%s4476_s22 + $0x30] sm:$0xff] }
  0xa4   : > { %784 = vmatpush.msra.mxu0 %v729_v6  ;;  %844 = vmatpush.msra.mxu2 %v725_v14 }
  0xa5   : > { %v646_v34 = vmul.f32 %v4539_v32, %v4539_v32  ;;  %v4544_v35 = vsub.f32 %v619_v7, %v640_v33  ;;  %v730_v7 = vld [vmem:[%s4476_s22 + $0x38] sm:$0xff]  ;;  %s4360_s22 = smov 16  }
  0xa6   : > { %813 = vmatpush.msra.mxu1 %v730_v7  ;;  %785 = vmatpush.msra.mxu0 %v726_v9 }
  0xa7   : > { %651 = vadd.xlane.f32.xlu1 %v646_v34  ;;  %v648_v36 = vmul.f32 %v4544_v35, %v4544_v35 }
  0xa8   : > { %814 = vmatpush.msra.mxu1 %v727_v10  ;;  %786 = vmatpush.msra.mxu0 %v723_v12 }
  0xaa   : > { %815 = vmatpush.msra.mxu1 %v724_v13 }
  0xaf   : > { %655 = vadd.xlane.f32.xlu1 %v648_v36 }
 0x112   : > { %v650_v15 = vpop.xlane.xlu1 %649 }
 0x113   : > { %v657_v17 = vmul.f32 %v650_v15, %v4526_v20 }
 0x114   : > { %v654_v16 = vpop.xlane.xlu0 %653 }
 0x115   : > { %v659_v18 = vmul.f32 %v654_v16, %v4526_v20  ;;  %v661_v19 = vadd.f32 1e-05, %v657_v17 }
 0x117   : > { %v663_v21 = vadd.f32 1e-05, %v659_v18  ;;  %4133 = vrsqrt.f32 %v661_v19  ;;  %vm671_vm2 = vweird.f32 %v661_v19 }
 0x119   : > { %4135 = vrsqrt.f32 %v663_v21  ;;  %vm691_vm4 = vweird.f32 %v663_v21 }
 0x11a   : > { %v652_v22 = vpop.xlane.xlu1 %651 }
 0x11b   : > { %v658_v23 = vmul.f32 %v652_v22, %v4526_v20 }
 0x11d   : > { %v4134_v24 = vpop.eup %4133  ;;  %v662_v27 = vadd.f32 1e-05, %v658_v23 }
 0x11e   : > { %v666_v29 = vmul.f32 %v4134_v24, %v661_v19  ;;  %vm672_vm1 = vweird.f32 %v4134_v24 }
 0x11f   : > { %v4136_v28 = vpop.eup %4135  ;;  %4137 = vrsqrt.f32 %v662_v27  ;;  %vm673_vm3 = vmor %vm671_vm2, %vm672_vm1  ;;  %vm681_vm6 = vweird.f32 %v662_v27 }
 0x120   : > { %v686_v30 = vmul.f32 %v4136_v28, %v663_v21  ;;  %v667_v31 = vmul.f32 %v4134_v24, %v666_v29  ;;  %vm692_vm5 = vweird.f32 %v4136_v28 }
 0x121   : > { %vm4605_vm8 = vmor %vm691_vm4, %vm692_vm5 }
 0x122   : > { %v687_v33 = vmul.f32 %v4136_v28, %v686_v30  ;;  %v668_v34 = vmul.f32 0.5, %v667_v31  ;;  %v656_v36 = vpop.xlane.xlu1 %655 }
 0x123   : > { %v660_v37 = vmul.f32 %v656_v36, %v4526_v20 }
 0x124   : > { %v669_v38 = vsub.f32 1.5, %v668_v34  ;;  %v688_v39 = vmul.f32 0.5, %v687_v33 }
 0x125   : > { %v4138_v40 = vpop.eup %4137  ;;  %v664_v41 = vadd.f32 1e-05, %v660_v37 }
 0x126   : > { %v670_v42 = vmul.f32 %v4134_v24, %v669_v38  ;;  %v676_v43 = vmul.f32 %v4138_v40, %v662_v27  ;;  %v689_v46 = vsub.f32 1.5, %v688_v39  ;;  %vm682_vm7 = vweird.f32 %v4138_v40 }
 0x127   : > { %4139 = vrsqrt.f32 %v664_v41  ;;  %vm683_vm9 = vmor %vm681_vm6, %vm682_vm7  ;;  %vm701_vm10 = vweird.f32 %v664_v41 }
 0x128   : > { %v677_v45 = vmul.f32 %v4138_v40, %v676_v43  ;;  %v674_v47 = vsel %vm673_vm3, %v4134_v24, %v670_v42  ;;  %v690_v53 = vmul.f32 %v4136_v28, %v689_v46 }
 0x129   : > { %v705_v48 = vmul.f32 %v674_v47, %v4530_v25 }
 0x12a   : > { %v678_v50 = vmul.f32 0.5, %v677_v45  ;;  %v694_v60 = vsel %vm4605_vm8, %v4136_v28, %v690_v53 }
 0x12b   : > { %v712_v51 = vmul.f32 %v4125_v44, %v705_v48  ;;  %v707_v0 = vmul.f32 %v694_v60, %v4532_v26 }
 0x12c   : > { %v679_v52 = vsub.f32 1.5, %v678_v50 }
 0x12d   : > { %v4140_v54 = vpop.eup %4139  ;;  %v719_v56 = vadd.f32 %v4126_v49, %v712_v51  ;;  %v714_v4 = vmul.f32 %v4125_v44, %v707_v0 }
 0x12e   : > { %v680_v25 = vmul.f32 %v4138_v40, %v679_v52  ;;  %v696_v57 = vmul.f32 %v4140_v54, %v664_v41  ;;  %vm702_vm11 = vweird.f32 %v4140_v54 }
 0x12f   : > { %787 = vmatmul.f32.vlgmr.msra.gmra.mxu0 %v719_v56  ;;  %816 = vmatmul.f32.vlgmr.msra.gmra.mxu1 %v719_v56  ;;  %vm703_vm12 = vmor %vm701_vm10, %vm702_vm11  ;;  %v721_v6 = vadd.f32 %v4126_v49, %v714_v4 }
 0x130   : > { %v697_v58 = vmul.f32 %v4140_v54, %v696_v57  ;;  %845 = vmatmul.f32.vlgmr.msra.gmra.mxu2 %v719_v56  ;;  %v684_v59 = vsel %vm683_vm9, %v4138_v40, %v680_v25 }
 0x131   : > { %v706_v61 = vmul.f32 %v684_v59, %v4539_v32 }
 0x132   : > { %v698_v62 = vmul.f32 0.5, %v697_v58 }
 0x133   : > { %v713_v63 = vmul.f32 %v4125_v44, %v706_v61 }
 0x134   : > { %v699_v1 = vsub.f32 1.5, %v698_v62 }
 0x135   : > { %v720_v2 = vadd.f32 %v4126_v49, %v713_v63 }
 0x136   : > { %v700_v3 = vmul.f32 %v4140_v54, %v699_v1 }
 0x137   : > { %790 = vmatmul.f32.gmra.mxu0 %v720_v2  ;;  %819 = vmatmul.f32.gmra.mxu1 %v720_v2 }
 0x138   : > { %848 = vmatmul.f32.gmra.mxu2 %v720_v2  ;;  %v704_v5 = vsel %vm703_vm12, %v4140_v54, %v700_v3 }
 0x139   : > { %v708_v7 = vmul.f32 %v704_v5, %v4544_v35 }
 0x13b   : > { %v715_v32 = vmul.f32 %v4125_v44, %v708_v7 }
 0x13d   : > { %v722_v8 = vadd.f32 %v4126_v49, %v715_v32 }
 0x13f   : > { %822 = vmatmul.f32.gmra.mxu1 %v721_v6  ;;  %793 = vmatmul.f32.gmra.mxu0 %v721_v6 }
 0x140   : > { %851 = vmatmul.f32.gmra.mxu2 %v721_v6 }
 0x147   : > { %825 = vmatmul.f32.gmra.mxu1 %v722_v8  ;;  %796 = vmatmul.f32.gmra.mxu0 %v722_v8 }
 0x148   : > { %854 = vmatmul.f32.gmra.mxu2 %v722_v8 }
 0x1ac   : > { %v788_v26 = vpop.f32.mrf.mxu0  ;;  %v817_v9 = vpop.f32.mrf.mxu1 }
 0x1ad   : > { %1087 = vrot.lane.b32.xlu0 %v817_v9, %s4354_s18  ;;  %1331 = vrot.lane.b32.xlu2 %v788_v26, %s4355_s28 }
 0x1ae   : > { %1083 = vrot.lane.b32.xlu1 %v788_v26, %s4354_s18 }
 0x1b3   : > { %v846_v10 = vpop.f32.mrf.mxu2 }
 0x1b4   : > { %v820_v35 = vpop.f32.mrf.mxu1  ;;  %v791_v14 = vpop.f32.mrf.mxu0 }
 0x1b5   : > { %1335 = vrot.lane.b32.xlu0 %v817_v9, %s4355_s28  ;;  %1089 = vrot.lane.b32.xlu2 %v820_v35, %s4354_s18 }
 0x1b6   : > { %1575 = vrot.lane.b32.xlu1 %v788_v26, %s4356_s20  ;;  %3844 = vmatpush.xpose.msk.msra.mxu3 %vm858_vm13, %v820_v35 }
 0x1ba   : > { %3845 = vmatpush.xpose.msk.msra.mxu3 %vm858_vm13, %v817_v9 }
 0x1bb   : > { %v849_v11 = vpop.f32.mrf.mxu2 }
 0x1bc   : > { %v4622_v12 = vpop.f32.mrf.mxu1  ;;  %v4624_v13 = vpack.i.bf16 %v846_v10, %v849_v11  ;;  %v4640_v17 = vpop.f32.mrf.mxu0 }
 0x1bd   : > { %3846 = vmatmul.msk.f32.vlgmr.msra.gmra.mxu3 %vm858_vm13, %v788_v26  ;;  %1819 = vrot.lane.b32.xlu0 %v788_v26, %s4357_s27 }
 0x1be   : > { %1823 = vrot.lane.b32.xlu1 %v817_v9, %s4357_s27  ;;  %1579 = vrot.lane.b32.xlu2 %v817_v9, %s4356_s20 }
 0x1c3   : > { %v4634_v16 = vpop.f32.mrf.mxu2 }
 0x1c4   : > { %v4630_v15 = vpop.f32.mrf.mxu1  ;;  %v4653_v19 = vpop.f32.mrf.mxu0 }
 0x1c5   : > { %3847 = vmatmul.msk.f32.gmra.mxu3 %vm858_vm13, %v791_v14  ;;  %2067 = vrot.lane.b32.xlu0 %v817_v9, %s4358_s17 }
 0x1c6   : > { %2307 = vrot.lane.b32.xlu1 %v788_v26, %s4359_s25  ;;  %1085 = vrot.lane.b32.xlu2 %v791_v14, %s4354_s18 }
 0x1c7   : > { %3848 = vmatpush.xpose.msk.msrb.mxu3 %vm858_vm13, %v4630_v15 }
 0x1cb   : > { %3849 = vmatpush.xpose.msk.msrb.mxu3 %vm858_vm13, %v4622_v12  ;;  %v4649_v18 = vpop.f32.mrf.mxu2 }
 0x1cd   : > { %2551 = vrot.lane.b32.xlu0 %v788_v26, %s4360_s22 }
 0x1ce   : > { %3850 = vmatmul.msk.f32.vlgmr.msrb.gmra.mxu3 %vm858_vm13, %v4640_v17  ;;  %2555 = vrot.lane.b32.xlu1 %v817_v9, %s4360_s22 }
 0x1cf   : > { %1045 = vmatpush.msra.mxu3 %v849_v11  ;;  %2063 = vrot.lane.b32.xlu2 %v788_v26, %s4358_s17 }
 0x1d1   : > { %1046 = vmatpush.msra.mxu3 %v846_v10 }
 0x1d3   : > { %1074 = vmatpush.msrb.mxu3 %v4649_v18 }
 0x1d5   : > { %1075 = vmatpush.msrb.mxu3 %v4634_v16  ;;  %1337 = vrot.lane.b32.xlu0 %v820_v35, %s4355_s28 }
 0x1d6   : > { %2069 = vrot.lane.b32.xlu1 %v820_v35, %s4358_s17  ;;  %3851 = vmatmul.msk.f32.gmra.mxu3 %vm858_vm13, %v4653_v19 }
 0x1d7   : > { %2311 = vrot.lane.b32.xlu2 %v817_v9, %s4359_s25 }
 0x1dd   : > { %1333 = vrot.lane.b32.xlu0 %v791_v14, %s4355_s28 }
 0x1de   : > { %2065 = vrot.lane.b32.xlu1 %v791_v14, %s4358_s17 }
 0x1df   : > { %1825 = vrot.lane.b32.xlu2 %v820_v35, %s4357_s27 }
 0x1e5   : > { %1581 = vrot.lane.b32.xlu0 %v820_v35, %s4356_s20 }
 0x1e6   : > { %1122 = vrot.lane.b32.xlu1 %v4640_v17, %s4354_s18 }
 0x1e7   : > { %1821 = vrot.lane.b32.xlu2 %v791_v14, %s4357_s27 }
 0x1ed   : > { %1577 = vrot.lane.b32.xlu0 %v791_v14, %s4356_s20 }
 0x1ee   : > { %1374 = vrot.lane.b32.xlu1 %v4622_v12, %s4355_s28 }
 0x1ef   : > { %2557 = vrot.lane.b32.xlu2 %v820_v35, %s4360_s22 }
 0x1f5   : > { %2313 = vrot.lane.b32.xlu0 %v820_v35, %s4359_s25 }
 0x1f6   : > { %1858 = vrot.lane.b32.xlu1 %v4640_v17, %s4357_s27 }
 0x1f7   : > { %2553 = vrot.lane.b32.xlu2 %v791_v14, %s4360_s22 }
 0x1fd   : > { %2309 = vrot.lane.b32.xlu0 %v791_v14, %s4359_s25 }
 0x1fe   : > { %2106 = vrot.lane.b32.xlu1 %v4622_v12, %s4358_s17 }
 0x1ff   : > { %4001 = vrot.lane.b32.xlu2 %v4624_v13, %s4354_s18 }
 0x205   : > { %1370 = vrot.lane.b32.xlu0 %v4640_v17, %s4355_s28 }
 0x206   : > { %1128 = vrot.lane.b32.xlu1 %v4630_v15, %s4354_s18 }
 0x207   : > { %1126 = vrot.lane.b32.xlu2 %v4622_v12, %s4354_s18  ;;  %v1332_v21 = vpop.permute.xlu2 %1331 }
 0x20d   : > { %1618 = vrot.lane.b32.xlu0 %v4622_v12, %s4356_s20 }
 0x20e   : > { %1124 = vrot.lane.b32.xlu1 %v4653_v19, %s4354_s18 }
 0x20f   : > { %1614 = vrot.lane.b32.xlu2 %v4640_v17, %s4356_s20  ;;  %v1090_v22 = vpop.permute.xlu2 %1089 }
 0x210   : > { %3856 = vmatpush.xpose.msk.msrb.mxu1 %vm858_vm13, %v1090_v22 }
 0x215   : > { %2102 = vrot.lane.b32.xlu0 %v4640_v17, %s4358_s17 }
 0x216   : > { %1620 = vrot.lane.b32.xlu1 %v4630_v15, %s4356_s20 }
 0x217   : > { %1862 = vrot.lane.b32.xlu2 %v4622_v12, %s4357_s27 }
 0x218   : > { %v1580_v23 = vpop.permute.xlu2 %1579 }
 0x21d   : > { %2350 = vrot.lane.b32.xlu0 %v4622_v12, %s4359_s25 }
 0x21e   : > { %1616 = vrot.lane.b32.xlu1 %v4653_v19, %s4356_s20 }
 0x21f   : > { %2346 = vrot.lane.b32.xlu2 %v4640_v17, %s4359_s25  ;;  %v1088_v24 = vpop.permute.xlu0 %1087 }
 0x220   : > { %v1086_v27 = vpop.permute.xlu2 %1085  ;;  %v1084_v28 = vpop.permute.xlu1 %1083  ;;  %3857 = vmatpush.xpose.msk.msrb.mxu1 %vm858_vm13, %v1088_v24 }
 0x223   : > { %3858 = vmatmul.msk.f32.vlgmr.msrb.gmra.mxu1 %vm858_vm13, %v1084_v28 }
 0x225   : > { %1864 = vrot.lane.b32.xlu0 %v4630_v15, %s4357_s27 }
 0x226   : > { %2352 = vrot.lane.b32.xlu1 %v4630_v15, %s4359_s25 }
 0x227   : > { %1376 = vrot.lane.b32.xlu2 %v4630_v15, %s4355_s28  ;;  %v1336_v29 = vpop.permute.xlu0 %1335 }
 0x228   : > { %v1576_v30 = vpop.permute.xlu1 %1575 }
 0x229   : > { %v2064_v31 = vpop.permute.xlu2 %2063 }
 0x22b   : > { %3859 = vmatmul.msk.f32.gmra.mxu1 %vm858_vm13, %v1086_v27 }
 0x22d   : > { %1860 = vrot.lane.b32.xlu0 %v4653_v19, %s4357_s27 }
 0x22e   : > { %2348 = vrot.lane.b32.xlu1 %v4653_v19, %s4359_s25 }
 0x22f   : > { %1372 = vrot.lane.b32.xlu2 %v4653_v19, %s4355_s28  ;;  %v1820_v33 = vpop.permute.xlu0 %1819 }
 0x230   : > { %v1824_v34 = vpop.permute.xlu1 %1823 }
 0x231   : > { %v2312_v36 = vpop.permute.xlu2 %2311 }
 0x236   : > { %2594 = vrot.lane.b32.xlu1 %v4622_v12, %s4360_s22 }
 0x237   : > { %2108 = vrot.lane.b32.xlu2 %v4630_v15, %s4358_s17  ;;  %v2068_v37 = vpop.permute.xlu0 %2067 }
 0x238   : > { %v4724_v38 = vpop.permute.xlu1 %2307 }
 0x239   : > { %v1826_v39 = vpop.permute.xlu2 %1825 }
 0x23f   : > { %2104 = vrot.lane.b32.xlu2 %v4653_v19, %s4358_s17  ;;  %v4728_v40 = vpop.permute.xlu0 %2551 }
 0x240   : > { %v2556_v41 = vpop.permute.xlu1 %2555 }
 0x241   : > { %v1822_v42 = vpop.permute.xlu2 %1821 }
 0x247   : > { %v1338_v43 = vpop.permute.xlu0 %1337 }
 0x248   : > { %v2070_v44 = vpop.permute.xlu1 %2069  ;;  %3868 = vmatpush.xpose.msk.msrb.mxu0 %vm858_vm13, %v1338_v43 }
 0x249   : > { %v2558_v45 = vpop.permute.xlu2 %2557 }
 0x24c   : > { %3869 = vmatpush.xpose.msk.msrb.mxu0 %vm858_vm13, %v1336_v29 }
 0x24f   : > { %3870 = vmatmul.msk.f32.vlgmr.msrb.gmra.mxu0 %vm858_vm13, %v1332_v21  ;;  %v4733_v46 = vpop.permute.xlu0 %1333 }
 0x250   : > { %v2066_v47 = vpop.permute.xlu1 %2065 }
 0x251   : > { %v4735_v48 = vpop.permute.xlu2 %2553 }
 0x257   : > { %v1582_v49 = vpop.permute.xlu0 %1581 }
 0x258   : > { %v1123_v50 = vpop.permute.xlu1 %1122  ;;  %3880 = vmatpush.xpose.msk.msra.mxu0 %vm858_vm13, %v1582_v49 }
 0x259   : > { %v4002_v51 = vpop.permute.xlu2 %4001 }
 0x25a   : > { %v4003_v52 = vunpack.i.l.bf16 %v4002_v51  ;;  %v4004_v53 = vunpack.i.h.bf16 %v4002_v51 }
 0x25c   : > { %1285 = vmatpush.msrb.mxu2 %v4003_v52  ;;  %3881 = vmatpush.xpose.msk.msra.mxu0 %vm858_vm13, %v1580_v23  ;;  %v4792_v23 = vpop.f32.mrf.mxu3 }
 0x25e   : > { %1286 = vmatpush.msrb.mxu2 %v4004_v53 }
 0x25f   : > { %3882 = vmatmul.msk.f32.vlgmr.msra.gmra.mxu0 %vm858_vm13, %v1576_v30  ;;  %v1578_v54 = vpop.permute.xlu0 %1577 }
 0x260   : > { %3892 = vmatpush.xpose.msk.msrb.mxu0 %vm858_vm13, %v1826_v39  ;;  %3956 = vmatpush.xpose.msk.msra.mxu2 %vm858_vm13, %v1338_v43  ;;  %v1375_v55 = vpop.permute.xlu1 %1374 }
 0x261   : > { %v1127_v56 = vpop.permute.xlu2 %1126 }
 0x264   : > { %3893 = vmatpush.xpose.msk.msrb.mxu0 %vm858_vm13, %v1824_v34  ;;  %3957 = vmatpush.xpose.msk.msra.mxu2 %vm858_vm13, %v1336_v29  ;;  %v4794_v24 = vpop.f32.mrf.mxu3 }
 0x267   : > { %3883 = vmatmul.msk.f32.gmra.mxu0 %vm858_vm13, %v1578_v54  ;;  %v2314_v25 = vpop.permute.xlu0 %2313 }
 0x268   : > { %3904 = vmatpush.xpose.msk.msra.mxu0 %vm858_vm13, %v2070_v44  ;;  %v1859_v57 = vpop.permute.xlu1 %1858 }
 0x269   : > { %v1615_v58 = vpop.permute.xlu2 %1614 }
 0x26c   : > { %3905 = vmatpush.xpose.msk.msra.mxu0 %vm858_vm13, %v2068_v37 }
 0x26f   : > { %3894 = vmatmul.msk.f32.vlgmr.msrb.gmra.mxu0 %vm858_vm13, %v1820_v33  ;;  %v2310_v59 = vpop.permute.xlu0 %2309 }
 0x270   : > { %v2107_v60 = vpop.permute.xlu1 %2106  ;;  %3916 = vmatpush.xpose.msk.msrb.mxu0 %vm858_vm13, %v2314_v25 }
 0x271   : > { %v1863_v61 = vpop.permute.xlu2 %1862 }
 0x274   : > { %3917 = vmatpush.xpose.msk.msrb.mxu0 %vm858_vm13, %v2312_v36 }
 0x277   : > { %3895 = vmatmul.msk.f32.gmra.mxu0 %vm858_vm13, %v1822_v42  ;;  %v1371_v62 = vpop.permute.xlu0 %1370  ;;  %v929_v42 = vsel %vm858_vm13, %v4792_v23, -inf }
 0x278   : > { %v1129_v63 = vpop.permute.xlu1 %1128 }
 0x279   : > { %v2347_v0 = vpop.permute.xlu2 %2346  ;;  %3860 = vmatpush.xpose.msk.msra.mxu1 %vm858_vm13, %v1129_v63 }
 0x27d   : > { %3861 = vmatpush.xpose.msk.msra.mxu1 %vm858_vm13, %v1127_v56 }
 0x27f   : > { %3906 = vmatmul.msk.f32.vlgmr.msra.gmra.mxu0 %vm858_vm13, %v2064_v31  ;;  %v1619_v1 = vpop.permute.xlu0 %1618 }
 0x280   : > { %v1125_v2 = vpop.permute.xlu1 %1124  ;;  %3862 = vmatmul.msk.f32.vlgmr.msra.gmra.mxu1 %vm858_vm13, %v1123_v50  ;;  %3928 = vmatpush.xpose.msk.msra.mxu0 %vm858_vm13, %v2558_v45 }
 0x281   : > { %v1377_v3 = vpop.permute.xlu2 %1376 }
 0x282   : > { %3872 = vmatpush.xpose.msk.msrb.mxu1 %vm858_vm13, %v1377_v3 }
 0x284   : > { %3929 = vmatpush.xpose.msk.msra.mxu0 %vm858_vm13, %v2556_v41 }
 0x286   : > { %3873 = vmatpush.xpose.msk.msrb.mxu1 %vm858_vm13, %v1375_v55 }
 0x287   : > { %3907 = vmatmul.msk.f32.gmra.mxu0 %vm858_vm13, %v2066_v47  ;;  %v2103_v4 = vpop.permute.xlu0 %2102 }
 0x288   : > { %v1621_v5 = vpop.permute.xlu1 %1620  ;;  %3863 = vmatmul.msk.f32.gmra.mxu1 %vm858_vm13, %v1125_v2 }
 0x289   : > { %v1373_v7 = vpop.permute.xlu2 %1372 }
 0x28a   : > { %3884 = vmatpush.xpose.msk.msra.mxu1 %vm858_vm13, %v1621_v5 }
 0x28e   : > { %3885 = vmatpush.xpose.msk.msra.mxu1 %vm858_vm13, %v1619_v1 }
 0x28f   : > { %3918 = vmatmul.msk.f32.vlgmr.msrb.gmra.mxu0 %vm858_vm13, %v4724_v38  ;;  %v2351_v6 = vpop.permute.xlu0 %2350  ;;  %v4806_v38 = vpop.f32.mrf.mxu3 }
 0x290   : > { %3874 = vmatmul.msk.f32.vlgmr.msrb.gmra.mxu1 %vm858_vm13, %v1371_v62  ;;  %v1617_v10 = vpop.permute.xlu1 %1616  ;;  %v935_v1 = vsel %vm858_vm13, %v4806_v38, -inf }
 0x291   : > { %v2109_v8 = vpop.permute.xlu2 %2108 }
 0x297   : > { %3919 = vmatmul.msk.f32.gmra.mxu0 %vm858_vm13, %v2310_v59  ;;  %v1865_v32 = vpop.permute.xlu0 %1864  ;;  %v4818_v45 = vpop.f32.mrf.mxu3 }
 0x298   : > { %3875 = vmatmul.msk.f32.gmra.mxu1 %vm858_vm13, %v1373_v7  ;;  %v2353_v12 = vpop.permute.xlu1 %2352  ;;  %v938_v49 = vsel %vm858_vm13, %v4818_v45, -inf }
 0x299   : > { %3896 = vmatpush.xpose.msk.msrb.mxu1 %vm858_vm13, %v1865_v32  ;;  %v2105_v21 = vpop.permute.xlu2 %2104 }
 0x29d   : > { %3897 = vmatpush.xpose.msk.msrb.mxu1 %vm858_vm13, %v1863_v61 }
 0x29f   : > { %3930 = vmatmul.msk.f32.vlgmr.msra.gmra.mxu0 %vm858_vm13, %v4728_v40  ;;  %v1861_v14 = vpop.permute.xlu0 %1860 }
 0x2a0   : > { %3886 = vmatmul.msk.f32.vlgmr.msra.gmra.mxu1 %vm858_vm13, %v1615_v58  ;;  %v1116_v26 = vpop.f32.mrf.mxu1  ;;  %v2349_v22 = vpop.permute.xlu1 %2348 }
 0x2a1   : > { %3908 = vmatpush.xpose.msk.msra.mxu1 %vm858_vm13, %v2109_v8  ;;  %v1161_v9 = vsel %vm858_vm13, %v1116_v26, -inf }
 0x2a2   : > { %1162 = vmax.xlane.f32.xlu0 %v1161_v9 }
 0x2a5   : > { %3909 = vmatpush.xpose.msk.msra.mxu1 %vm858_vm13, %v2107_v60 }
 0x2a7   : > { %3931 = vmatmul.msk.f32.gmra.mxu0 %vm858_vm13, %v4735_v48 }
 0x2a8   : > { %3887 = vmatmul.msk.f32.gmra.mxu1 %vm858_vm13, %v1617_v10  ;;  %v1119_v35 = vpop.f32.mrf.mxu1  ;;  %v2595_v44 = vpop.permute.xlu1 %2594 }
 0x2a9   : > { %v1164_v11 = vsel %vm858_vm13, %v1119_v35, -inf }
 0x2aa   : > { %1165 = vmax.xlane.f32.xlu2 %v1164_v11 }
 0x2b0   : > { %3898 = vmatmul.msk.f32.vlgmr.msrb.gmra.mxu1 %vm858_vm13, %v1859_v57 }
 0x2b1   : > { %3920 = vmatpush.xpose.msk.msrb.mxu1 %vm858_vm13, %v2353_v12 }
 0x2b5   : > { %3921 = vmatpush.xpose.msk.msrb.mxu1 %vm858_vm13, %v2351_v6 }
 0x2b6   : > { %2596 = vrot.lane.b32.xlu0 %v4630_v15, %s4360_s22  ;;  %v932_v15 = vsel %vm858_vm13, %v4794_v24, -inf }
 0x2b8   : > { %3899 = vmatmul.msk.f32.gmra.mxu1 %vm858_vm13, %v1861_v14 }
 0x2c0   : > { %3910 = vmatmul.msk.f32.vlgmr.msra.gmra.mxu1 %vm858_vm13, %v2103_v4 }
 0x2c2   : > { %2590 = vrot.lane.b32.xlu2 %v4640_v17, %s4360_s22 }
 0x2c8   : > { %3911 = vmatmul.msk.f32.gmra.mxu1 %vm858_vm13, %v2105_v21 }
 0x2cc   : > { %v4820_v47 = vpop.f32.mrf.mxu0 }
 0x2cd   : > { %v1409_v3 = vsel %vm858_vm13, %v4820_v47, -inf }
 0x2d0   : > { %3922 = vmatmul.msk.f32.vlgmr.msrb.gmra.mxu1 %vm858_vm13, %v2347_v0 }
 0x2d8   : > { %3923 = vmatmul.msk.f32.gmra.mxu1 %vm858_vm13, %v2349_v22 }
 0x2dc   : > { %v4827_v51 = vpop.f32.mrf.mxu0 }
 0x2dd   : > { %v1653_v55 = vsel %vm858_vm13, %v4827_v51, -inf }
 0x2e4   : > { %v4835_v54 = vpop.f32.mrf.mxu0 }
 0x2e5   : > { %v1656_v25 = vsel %vm858_vm13, %v4835_v54, -inf }
 0x2eb   : > { %933 = vmax.xlane.f32.xlu2 %v932_v15 }
 0x2ec   : > { %v4843_v57 = vpop.f32.mrf.mxu0 }
 0x2ed   : > { %v1897_v58 = vsel %vm858_vm13, %v4843_v57, -inf }
 0x2fd   : > { %v4798_v27 = vpop.f32.mrf.mxu1 }
 0x2fe   : > { %v1167_v17 = vsel %vm858_vm13, %v4798_v27, -inf }
 0x2ff   : > { %1168 = vmax.xlane.f32.xlu2 %v1167_v17 }
 0x305   : > { %v4815_v43 = vpop.f32.mrf.mxu1 }
 0x306   : > { %v1170_v52 = vsel %vm858_vm13, %v4815_v43, -inf }
 0x30d   : > { %v4825_v50 = vpop.f32.mrf.mxu1 }
 0x30e   : > { %v1415_v4 = vsel %vm858_vm13, %v4825_v50, -inf }
 0x315   : > { %v1163_v28 = vpop.xlane.xlu0 %1162  ;;  %v4831_v53 = vpop.f32.mrf.mxu1 }
 0x316   : > { %v1173_v29 = vsub.f32 %v1116_v26, %v1163_v28  ;;  %v1418_v5 = vsel %vm858_vm13, %v4831_v53, -inf }
 0x318   : > { %v1177_v30 = vmul.f32 1.442695, %v1173_v29 }
 0x31a   : > { %4141 = vpow2.f32 %v1177_v30 }
 0x31d   : > { %v1166_v31 = vpop.xlane.xlu2 %1165  ;;  %v4839_v56 = vpop.f32.mrf.mxu1 }
 0x31e   : > { %v1174_v33 = vsub.f32 %v1119_v35, %v1166_v31  ;;  %v1659_v6 = vsel %vm858_vm13, %v4839_v56, -inf }
 0x320   : > { %v4802_v34 = vpop.eup %4141  ;;  %v1179_v36 = vmul.f32 1.442695, %v1174_v33 }
 0x321   : > { %v1185_v37 = vsel %vm858_vm13, %v4802_v34, 0.0 }
 0x322   : > { %4143 = vpow2.f32 %v1179_v36  ;;  %1186 = vadd.xlane.f32.xlu1 %v1185_v37 }
 0x325   : > { %v2591_v48 = vpop.permute.xlu2 %2590  ;;  %v4847_v59 = vpop.f32.mrf.mxu1 }
 0x326   : > { %v1662_v7 = vsel %vm858_vm13, %v4847_v59, -inf }
 0x328   : > { %v4808_v39 = vpop.eup %4143  ;;  %v2597_v40 = vpop.permute.xlu0 %2596 }
 0x329   : > { %3932 = vmatpush.xpose.msk.msra.mxu1 %vm858_vm13, %v2597_v40  ;;  %v1188_v41 = vsel %vm858_vm13, %v4808_v39, 0.0 }
 0x32a   : > { %1189 = vadd.xlane.f32.xlu0 %v1188_v41  ;;  %930 = vmax.xlane.f32.xlu1 %v929_v42 }
 0x32d   : > { %3933 = vmatpush.xpose.msk.msra.mxu1 %vm858_vm13, %v2595_v44  ;;  %v4853_v61 = vpop.f32.mrf.mxu1 }
 0x32e   : > { %v1903_v9 = vsel %vm858_vm13, %v4853_v61, -inf }
 0x330   : > { %3934 = vmatmul.msk.f32.vlgmr.msra.gmra.mxu1 %vm858_vm13, %v2591_v48 }
 0x332   : > { %939 = vmax.xlane.f32.xlu1 %v938_v49 }
 0x335   : > { %v4859_v0 = vpop.f32.mrf.mxu1 }
 0x336   : > { %v1906_v2 = vsel %vm858_vm13, %v4859_v0, -inf }
 0x33a   : > { %1171 = vmax.xlane.f32.xlu1 %v1170_v52 }
 0x33d   : > { %v4879_v8 = vpop.f32.mrf.mxu1 }
 0x33e   : > { %2592 = vrot.lane.b32.xlu0 %v4653_v19, %s4360_s22  ;;  %v4849_v19 = vpop.f32.mrf.mxu0 }
 0x33f   : > { %v1900_v60 = vsel %vm858_vm13, %v4849_v19, -inf }
 0x342   : > { %1654 = vmax.xlane.f32.xlu1 %v1653_v55 }
 0x345   : > { %v4885_v11 = vpop.f32.mrf.mxu1 }
 0x346   : > { %v4855_v62 = vpop.f32.mrf.mxu0 }
 0x347   : > { %v2141_v63 = vsel %vm858_vm13, %v4855_v62, -inf }
 0x34a   : > { %1657 = vmax.xlane.f32.xlu1 %v1656_v25 }
 0x34d   : > { %v4891_v49 = vpop.f32.mrf.mxu1 }
 0x34e   : > { %v4877_v32 = vpop.f32.mrf.mxu0 }
 0x352   : > { %1898 = vmax.xlane.f32.xlu1 %v1897_v58 }
 0x356   : > { %v4883_v10 = vpop.f32.mrf.mxu0 }
 0x35a   : > { %1901 = vmax.xlane.f32.xlu1 %v1900_v60 }
 0x35e   : > { %v934_v12 = vpop.xlane.xlu2 %933  ;;  %v4889_v42 = vpop.f32.mrf.mxu0 }
 0x35f   : > { %v942_v28 = vsub.f32 %v4794_v24, %v934_v12 }
 0x361   : > { %v947_v40 = vmul.f32 1.442695, %v942_v28 }
 0x362   : > { %2142 = vmax.xlane.f32.xlu1 %v2141_v63 }
 0x368   : > { %936 = vmax.xlane.f32.xlu0 %v935_v1 }
 0x36a   : > { %1907 = vmax.xlane.f32.xlu1 %v1906_v2 }
 0x370   : > { %1410 = vmax.xlane.f32.xlu0 %v1409_v3 }
 0x378   : > { %1416 = vmax.xlane.f32.xlu0 %v1415_v4  ;;  %v2391_v4 = vsel %vm858_vm13, %v4891_v49, -inf }
 0x380   : > { %1419 = vmax.xlane.f32.xlu0 %v1418_v5 }
 0x383   : > { %4011 = vrot.lane.b32.xlu1 %v4624_v13, %s4355_s28 }
 0x388   : > { %1660 = vmax.xlane.f32.xlu0 %v1659_v6 }
 0x390   : > { %1663 = vmax.xlane.f32.xlu0 %v1662_v7  ;;  %v4903_v7 = vpop.f32.mrf.mxu0 }
 0x395   : > { %v1187_v26 = vpop.xlane.xlu1 %1186 }
 0x396   : > { %4145 = vrcp.f32 %v1187_v26  ;;  %v1208_v29 = vand.u32 2147483648, %v1187_v26  ;;  %v1206_v33 = vand.u32 2147483647, %v1187_v26  ;;  %vm1202_vm15 = vweird.f32 %v1187_v26 }
 0x398   : > { %1904 = vmax.xlane.f32.xlu0 %v1903_v9  ;;  %v1209_v41 = vor.u32 1.1754944e-38, %v1208_v29  ;;  %vm1207_vm1 = vcmp.eq.f32.partialorder %v1206_v33, 8.507059e+37 }
 0x39c   : > { %v4146_v35 = vpop.eup %4145 }
 0x39d   : > { %v1198_v14 = vmul.f32 %v4146_v35, %v1187_v26  ;;  %v931_v21 = vpop.xlane.xlu1 %930  ;;  %v1190_v22 = vpop.xlane.xlu0 %1189  ;;  %vm1203_vm14 = vweird.f32 %v4146_v35 }
 0x39e   : > { %v941_v15 = vsub.f32 %v4792_v23, %v931_v21  ;;  %4147 = vrcp.f32 %v1190_v22  ;;  %vm1204_vm0 = vmor %vm1202_vm15, %vm1203_vm14  ;;  %v1222_v58 = vand.u32 2147483648, %v1190_v22  ;;  %v1220_v1 = vand.u32 2147483647, %v1190_v22 }
 0x39f   : > { %v1199_v17 = vsub.f32 1.0, %v1198_v14  ;;  %vm1216_vm3 = vweird.f32 %v1190_v22 }
 0x3a0   : > { %v945_v30 = vmul.f32 1.442695, %v941_v15  ;;  %v1223_v3 = vor.u32 1.1754944e-38, %v1222_v58  ;;  %vm1221_vm5 = vcmp.eq.f32.partialorder %v1220_v1, 8.507059e+37 }
 0x3a1   : > { %v1200_v31 = vmul.f32 %v4146_v35, %v1199_v17 }
 0x3a2   : > { %4149 = vpow2.f32 %v945_v30 }
 0x3a3   : > { %v1201_v36 = vadd.f32 %v4146_v35, %v1200_v31  ;;  %4151 = vpow2.f32 %v947_v40 }
 0x3a4   : > { %v4148_v37 = vpop.eup %4147 }
 0x3a5   : > { %v1212_v23 = vmul.f32 %v4148_v37, %v1190_v22  ;;  %v1205_v44 = vsel %vm1204_vm0, %v4146_v35, %v1201_v36  ;;  %v940_v52 = vpop.xlane.xlu1 %939  ;;  %vm1217_vm2 = vweird.f32 %v4148_v37  ;;  %v4906_v35 = vpop.f32.mrf.mxu1  ;;  %v4937_v36 = vpack.i.bf16 %v4634_v16, %v4649_v18 }
 0x3a6   : > { %v1210_v48 = vsel %vm1207_vm1, %v1209_v41, %v1205_v44  ;;  %vm1218_vm4 = vmor %vm1216_vm3, %vm1217_vm2  ;;  %v2394_v21 = vsel %vm858_vm13, %v4906_v35, -inf  ;;  %v4916_v22 = vpop.f32.mrf.mxu0 }
 0x3a7   : > { %v1213_v24 = vsub.f32 1.0, %v1212_v23  ;;  %v1253_v55 = vmul.f32 %v4802_v34, %v1210_v48  ;;  %v2632_v15 = vsel %vm858_vm13, %v4916_v22, -inf }
 0x3a8   : > { %v4894_v25 = vpop.eup %4149 }
 0x3a9   : > { %v1214_v60 = vmul.f32 %v4148_v37, %v1213_v24  ;;  %3864 = vmatmul.msk.f32.vlgmr.msrb.gmra.mxu2 %vm858_vm13, %v1253_v55  ;;  %v953_v63 = vsel %vm858_vm13, %v4894_v25, 0.0  ;;  %v4901_v5 = vpop.eup %4151 }
 0x3aa   : > { %954 = vadd.xlane.f32.xlu2 %v953_v63  ;;  %v956_v14 = vsel %vm858_vm13, %v4901_v5, 0.0 }
 0x3ab   : > { %v1215_v2 = vadd.f32 %v4148_v37, %v1214_v60 }
 0x3ad   : > { %2392 = vmax.xlane.f32.xlu1 %v2391_v4  ;;  %v1219_v34 = vsel %vm1218_vm4, %v4148_v37, %v1215_v2  ;;  %v4908_v12 = vpop.xlane.xlu1 %1171  ;;  %v4924_v17 = vpop.f32.mrf.mxu1  ;;  %v944_v37 = vsub.f32 %v4818_v45, %v940_v52 }
 0x3ae   : > { %v1224_v6 = vsel %vm1221_vm5, %v1223_v3, %v1219_v34  ;;  %v2635_v28 = vsel %vm858_vm13, %v4924_v17, -inf  ;;  %v2144_v3 = vsel %vm858_vm13, %v4877_v32, -inf  ;;  %v2385_v34 = vsel %vm858_vm13, %v4883_v10, -inf }
 0x3af   : > { %v1254_v26 = vmul.f32 %v4808_v39, %v1224_v6  ;;  %v951_v41 = vmul.f32 1.442695, %v944_v37 }
 0x3b0   : > { %v2593_v9 = vpop.permute.xlu0 %2592 }
 0x3b1   : > { %3865 = vmatmul.msk.f32.gmra.mxu2 %vm858_vm13, %v1254_v26  ;;  %3935 = vmatmul.msk.f32.gmra.mxu1 %vm858_vm13, %v2593_v9 }
 0x3b2   : > { %957 = vadd.xlane.f32.xlu2 %v956_v14 }
 0x3b5   : > { %2395 = vmax.xlane.f32.xlu1 %v2394_v21  ;;  %v4920_v39 = vpop.xlane.xlu1 %1654 }
 0x3b9   : > { %3871 = vmatmul.msk.f32.vlgmr.msra.gmra.mxu2 %vm858_vm13, %v4733_v46 }
 0x3bd   : > { %2633 = vmax.xlane.f32.xlu1 %v2632_v15  ;;  %v4928_v29 = vpop.xlane.xlu1 %1657 }
 0x3c5   : > { %2636 = vmax.xlane.f32.xlu1 %v2635_v28  ;;  %v4930_v30 = vpop.xlane.xlu1 %1898  ;;  %v2150_v28 = vsel %vm858_vm13, %v4885_v11, -inf }
 0x3cd   : > { %v4932_v31 = vpop.xlane.xlu1 %1901 }
 0x3d5   : > { %v2143_v23 = vpop.xlane.xlu1 %2142 }
 0x3d6   : > { %v2153_v9 = vsub.f32 %v4855_v62, %v2143_v23 }
 0x3d8   : > { %v2157_v14 = vmul.f32 1.442695, %v2153_v9 }
 0x3db   : > { %v937_v33 = vpop.xlane.xlu0 %936 }
 0x3dc   : > { %v943_v46 = vsub.f32 %v4806_v38, %v937_v33 }
 0x3dd   : > { %v4949_v52 = vpop.xlane.xlu1 %1907 }
 0x3de   : > { %v949_v40 = vmul.f32 1.442695, %v943_v46  ;;  %4026 = vrot.lane.b32.xlu1 %v4937_v36, %s4356_s20 }
 0x3e0   : > { %4153 = vpow2.f32 %v949_v40 }
 0x3e1   : > { %4155 = vpow2.f32 %v951_v41  ;;  %v2388_v41 = vsel %vm858_vm13, %v4889_v42, -inf }
 0x3e3   : > { %v1411_v44 = vpop.xlane.xlu0 %1410 }
 0x3e4   : > { %v1421_v48 = vsub.f32 %v4820_v47, %v1411_v44  ;;  %v4986_v44 = vpop.xlane.xlu2 %1168 }
 0x3e6   : > { %v4943_v24 = vpop.eup %4153  ;;  %v1425_v38 = vmul.f32 1.442695, %v1421_v48 }
 0x3e7   : > { %v959_v16 = vsel %vm858_vm13, %v4943_v24, 0.0  ;;  %v4947_v45 = vpop.eup %4155 }
 0x3e8   : > { %4157 = vpow2.f32 %v1425_v38  ;;  %960 = vadd.xlane.f32.xlu2 %v959_v16  ;;  %v962_v58 = vsel %vm858_vm13, %v4947_v45, 0.0 }
 0x3eb   : > { %v1417_v18 = vpop.xlane.xlu0 %1416 }
 0x3ec   : > { %v1423_v1 = vsub.f32 %v4825_v50, %v1417_v18  ;;  %v2147_v50 = vsel %vm858_vm13, %v4879_v8, -inf }
 0x3ee   : > { %v4951_v55 = vpop.eup %4157  ;;  %v1429_v6 = vmul.f32 1.442695, %v1423_v1 }
 0x3ef   : > { %v1433_v47 = vsel %vm858_vm13, %v4951_v55, 0.0 }
 0x3f0   : > { %963 = vadd.xlane.f32.xlu2 %v962_v58  ;;  %1434 = vadd.xlane.f32.xlu0 %v1433_v47  ;;  %4159 = vpow2.f32 %v1429_v6  ;;  %v1176_v6 = vsub.f32 %v4815_v43, %v4908_v12 }
 0x3f1   : > { %4161 = vpow2.f32 %v2157_v14 }
 0x3f3   : > { %v4957_v60 = vpop.xlane.xlu0 %1419 }
 0x3f5   : > { %v4012_v63 = vpop.permute.xlu1 %4011 }
 0x3f6   : > { %v4013_v2 = vunpack.i.l.bf16 %v4012_v63  ;;  %v4014_v4 = vunpack.i.h.bf16 %v4012_v63  ;;  %v4971_v15 = vpop.eup %4159 }
 0x3f7   : > { %v1439_v33 = vsel %vm858_vm13, %v4971_v15, 0.0  ;;  %v4977_v46 = vpop.eup %4161 }
 0x3f8   : > { %1531 = vmatpush.msrb.mxu2 %v4013_v2  ;;  %2145 = vmax.xlane.f32.xlu2 %v2144_v3  ;;  %v2165_v23 = vsel %vm858_vm13, %v4977_v46, 0.0 }
 0x3f9   : > { %2386 = vmax.xlane.f32.xlu0 %v2385_v34 }
 0x3fa   : > { %1532 = vmatpush.msrb.mxu2 %v4014_v4 }
 0x3fb   : > { %v4964_v26 = vpop.xlane.xlu0 %1660 }
 0x400   : > { %2148 = vmax.xlane.f32.xlu2 %v2147_v50 }
 0x403   : > { %v4969_v21 = vpop.xlane.xlu0 %1663 }
 0x408   : > { %2151 = vmax.xlane.f32.xlu2 %v2150_v28  ;;  %1440 = vadd.xlane.f32.xlu1 %v1439_v33 }
 0x40b   : > { %v1905_v62 = vpop.xlane.xlu0 %1904 }
 0x40c   : > { %v1911_v37 = vsub.f32 %v4853_v61, %v1905_v62  ;;  %v2629_v61 = vsel %vm858_vm13, %v4903_v7, -inf }
 0x40d   : > { %4006 = vrot.lane.b32.xlu0 %v4937_v36, %s4354_s18 }
 0x40e   : > { %v1917_v40 = vmul.f32 1.442695, %v1911_v37 }
 0x410   : > { %4163 = vpow2.f32 %v1917_v40  ;;  %2389 = vmax.xlane.f32.xlu2 %v2388_v41  ;;  %2166 = vadd.xlane.f32.xlu1 %v2165_v23  ;;  %v1183_v40 = vmul.f32 1.442695, %v1176_v6 }
 0x415   : > { %4021 = vrot.lane.b32.xlu0 %v4624_v13, %s4356_s20 }
 0x416   : > { %v4990_v48 = vpop.eup %4163 }
 0x417   : > { %v1927_v38 = vsel %vm858_vm13, %v4990_v48, 0.0 }
 0x418   : > { %2630 = vmax.xlane.f32.xlu2 %v2629_v61  ;;  %1928 = vadd.xlane.f32.xlu1 %v1927_v38 }
 0x41d   : > { %v955_v16 = vpop.xlane.xlu2 %954 }
 0x41e   : > { %4165 = vrcp.f32 %v955_v16  ;;  %v976_v1 = vand.u32 2147483648, %v955_v16  ;;  %v974_v3 = vand.u32 2147483647, %v955_v16  ;;  %vm970_vm7 = vweird.f32 %v955_v16 }
 0x420   : > { %v977_v9 = vor.u32 1.1754944e-38, %v976_v1  ;;  %vm975_vm9 = vcmp.eq.f32.partialorder %v974_v3, 8.507059e+37 }
 0x424   : > { %v4166_v18 = vpop.eup %4165 }
 0x425   : > { %v966_v58 = vmul.f32 %v4166_v18, %v955_v16  ;;  %v958_v47 = vpop.xlane.xlu2 %957  ;;  %vm971_vm6 = vweird.f32 %v4166_v18 }
 0x426   : > { %4167 = vrcp.f32 %v958_v47  ;;  %vm972_vm8 = vmor %vm970_vm7, %vm971_vm6  ;;  %v990_v41 = vand.u32 2147483648, %v958_v47  ;;  %v988_v43 = vand.u32 2147483647, %v958_v47  ;;  %vm984_vm11 = vweird.f32 %v958_v47 }
 0x427   : > { %v967_v63 = vsub.f32 1.0, %v966_v58  ;;  %4169 = vpow2.f32 %v1183_v40 }
 0x428   : > { %v991_v61 = vor.u32 1.1754944e-38, %v990_v41  ;;  %vm989_vm14 = vcmp.eq.f32.partialorder %v988_v43, 8.507059e+37 }
 0x429   : > { %v968_v2 = vmul.f32 %v4166_v18, %v967_v63 }
 0x42b   : > { %v969_v4 = vadd.f32 %v4166_v18, %v968_v2  ;;  %v1424_v2 = vsub.f32 %v4831_v53, %v4957_v60  ;;  %v1912_v53 = vsub.f32 %v4859_v0, %v4949_v52  ;;  %v1666_v0 = vsub.f32 %v4835_v54, %v4928_v29 }
 0x42c   : > { %v4168_v34 = vpop.eup %4167  ;;  %v4998_v50 = vpop.f32.mrf.mxu2 }
 0x42d   : > { %v973_v14 = vsel %vm972_vm8, %v4166_v18, %v969_v4  ;;  %v980_v28 = vmul.f32 %v4168_v34, %v958_v47  ;;  %vm985_vm10 = vweird.f32 %v4168_v34  ;;  %v5012_v47 = vpop.eup %4169  ;;  %v1665_v4 = vsub.f32 %v4827_v51, %v4920_v39 }
 0x42e   : > { %v978_v33 = vsel %vm975_vm9, %v977_v9, %v973_v14  ;;  %vm986_vm12 = vmor %vm984_vm11, %vm985_vm10  ;;  %v1175_v9 = vsub.f32 %v4798_v27, %v4986_v44  ;;  %v1919_v14 = vmul.f32 1.442695, %v1912_v53  ;;  %v1671_v44 = vmul.f32 1.442695, %v1666_v0 }
 0x42f   : > { %v981_v62 = vsub.f32 1.0, %v980_v28  ;;  %v1021_v37 = vmul.f32 %v4894_v25, %v978_v33  ;;  %v1910_v25 = vsub.f32 %v4849_v19, %v4932_v31  ;;  %v1194_v19 = vsel %vm858_vm13, %v5012_v47, 0.0  ;;  %v5032_v33 = vpop.f32.mrf.mxu1 }
 0x430   : > { %4016 = vrot.lane.b32.xlu2 %v4937_v36, %s4355_s28  ;;  %v1431_v31 = vmul.f32 1.442695, %v1424_v2  ;;  %v1669_v6 = vmul.f32 1.442695, %v1665_v4  ;;  %v1181_v28 = vmul.f32 1.442695, %v1175_v9 }
 0x431   : > { %v982_v23 = vmul.f32 %v4168_v34, %v981_v62  ;;  %3852 = vmatmul.msk.f32.vlgmr.msra.gmra.mxu3 %vm858_vm13, %v1021_v37  ;;  %v1915_v1 = vmul.f32 1.442695, %v1910_v25  ;;  %v2638_v39 = vsel %vm858_vm13, %v5032_v33, -inf  ;;  %v1909_v62 = vsub.f32 %v4843_v57, %v4930_v30 }
 0x432   : > { %v1667_v30 = vsub.f32 %v4839_v56, %v4964_v26 }
 0x433   : > { %v983_v12 = vadd.f32 %v4168_v34, %v982_v23  ;;  %4171 = vpow2.f32 %v1915_v1  ;;  %v1913_v54 = vmul.f32 1.442695, %v1909_v62 }
 0x434   : > { %v5004_v38 = vpop.f32.mrf.mxu2  ;;  %4173 = vpow2.f32 %v1431_v31 }
 0x435   : > { %v4070_v16 = vpack.i.bf16 %v5004_v38, %v4998_v50  ;;  %v987_v18 = vsel %vm986_vm12, %v4168_v34, %v983_v12  ;;  %4175 = vpow2.f32 %v1669_v6 }
 0x436   : > { %v992_v58 = vsel %vm989_vm14, %v991_v61, %v987_v18  ;;  %4177 = vpow2.f32 %v1919_v14 }
 0x437   : > { %v1022_v63 = vmul.f32 %v4901_v5, %v992_v58  ;;  %4179 = vpow2.f32 %v1181_v28 }
 0x439   : > { %3853 = vmatmul.msk.f32.gmra.mxu3 %vm858_vm13, %v1022_v63  ;;  %v5018_v3 = vpop.eup %4171 }
 0x43a   : > { %v1924_v5 = vsel %vm858_vm13, %v5018_v3, 0.0  ;;  %v5024_v34 = vpop.eup %4173 }
 0x43b   : > { %v1442_v60 = vsel %vm858_vm13, %v5024_v34, 0.0  ;;  %v5034_v51 = vpop.eup %4175 }
 0x43c   : > { %v1677_v27 = vsel %vm858_vm13, %v5034_v51, 0.0  ;;  %v5042_v52 = vpop.eup %4177 }
 0x43d   : > { %v5046_v40 = vpop.eup %4179  ;;  %v1930_v41 = vsel %vm858_vm13, %v5042_v52, 0.0 }
 0x43e   : > { %v1191_v29 = vsel %vm858_vm13, %v5046_v40, 0.0 }
 0x43f   : > { %1195 = vadd.xlane.f32.xlu0 %v1194_v19  ;;  %v1673_v19 = vmul.f32 1.442695, %v1667_v30 }
 0x447   : > { %1925 = vadd.xlane.f32.xlu0 %v1924_v5 }
 0x44f   : > { %1443 = vadd.xlane.f32.xlu0 %v1442_v60 }
 0x457   : > { %2639 = vmax.xlane.f32.xlu0 %v2638_v39 }
 0x459   : > { %1678 = vadd.xlane.f32.xlu2 %v1677_v27  ;;  %v1668_v27 = vsub.f32 %v4847_v59, %v4969_v21 }
 0x45b   : > { %v961_v37 = vpop.xlane.xlu2 %960  ;;  %v1675_v21 = vmul.f32 1.442695, %v1668_v27 }
 0x45c   : > { %4181 = vrcp.f32 %v961_v37  ;;  %v1004_v18 = vand.u32 2147483648, %v961_v37  ;;  %v1002_v63 = vand.u32 2147483647, %v961_v37  ;;  %vm998_vm0 = vweird.f32 %v961_v37 }
 0x45d   : > { %4183 = vpow2.f32 %v1671_v44 }
 0x45e   : > { %4185 = vpow2.f32 %v1913_v54  ;;  %v1005_v4 = vor.u32 1.1754944e-38, %v1004_v18  ;;  %vm1003_vm2 = vcmp.eq.f32.partialorder %v1002_v63, 8.507059e+37 }
 0x45f   : > { %1931 = vadd.xlane.f32.xlu0 %v1930_v41 }
 0x461   : > { %1192 = vadd.xlane.f32.xlu2 %v1191_v29 }
 0x462   : > { %v4182_v23 = vpop.eup %4181 }
 0x463   : > { %v994_v43 = vmul.f32 %v4182_v23, %v961_v37  ;;  %v964_v12 = vpop.xlane.xlu2 %963  ;;  %v1435_v61 = vpop.xlane.xlu0 %1434  ;;  %vm999_vm15 = vweird.f32 %v4182_v23 }
 0x464   : > { %4187 = vrcp.f32 %v964_v12  ;;  %v5052_v57 = vpop.eup %4183  ;;  %vm1000_vm1 = vmor %vm998_vm0, %vm999_vm15  ;;  %v1018_v44 = vand.u32 2147483648, %v964_v12  ;;  %v1456_v54 = vand.u32 2147483648, %v1435_v61  ;;  %v1016_v29 = vand.u32 2147483647, %v964_v12 }
 0x465   : > { %v995_v25 = vsub.f32 1.0, %v994_v43  ;;  %4189 = vrcp.f32 %v1435_v61  ;;  %v1680_v1 = vsel %vm858_vm13, %v5052_v57, 0.0  ;;  %v5058_v2 = vpop.eup %4185  ;;  %vm1012_vm5 = vweird.f32 %v964_v12 }
 0x466   : > { %4191 = vpow2.f32 %v1673_v19  ;;  %v1921_v0 = vsel %vm858_vm13, %v5058_v2, 0.0  ;;  %v1019_v43 = vor.u32 1.1754944e-38, %v1018_v44  ;;  %vm1450_vm6 = vweird.f32 %v1435_v61 }
 0x467   : > { %v996_v58 = vmul.f32 %v4182_v23, %v995_v25  ;;  %v1457_v25 = vor.u32 1.1754944e-38, %v1456_v54  ;;  %vm1017_vm9 = vcmp.eq.f32.partialorder %v1016_v29, 8.507059e+37 }
 0x469   : > { %v997_v31 = vadd.f32 %v4182_v23, %v996_v58  ;;  %1681 = vadd.xlane.f32.xlu2 %v1680_v1 }
 0x46a   : > { %v4188_v5 = vpop.eup %4187 }
 0x46b   : > { %v4190_v6 = vpop.eup %4189  ;;  %v1001_v56 = vsel %vm1000_vm1, %v4182_v23, %v997_v31  ;;  %v1008_v26 = vmul.f32 %v4188_v5, %v964_v12  ;;  %v2146_v53 = vpop.xlane.xlu2 %2145  ;;  %vm1013_vm3 = vweird.f32 %v4188_v5  ;;  %v1454_v23 = vand.u32 2147483647, %v1435_v61 }
 0x46c   : > { %v1006_v60 = vsel %vm1003_vm2, %v1005_v4, %v1001_v56  ;;  %v1446_v9 = vmul.f32 %v4190_v6, %v1435_v61  ;;  %v2154_v14 = vsub.f32 %v4877_v32, %v2146_v53  ;;  %vm1451_vm4 = vweird.f32 %v4190_v6  ;;  %vm1014_vm7 = vmor %vm1012_vm5, %vm1013_vm3  ;;  %v5067_v59 = vpop.eup %4191 }
 0x46d   : > { %v1009_v28 = vsub.f32 1.0, %v1008_v26  ;;  %v1023_v39 = vmul.f32 %v4943_v24, %v1006_v60  ;;  %vm1452_vm8 = vmor %vm1450_vm6, %vm1451_vm4  ;;  %vm1455_vm10 = vcmp.eq.f32.partialorder %v1454_v23, 8.507059e+37  ;;  %v2387_v26 = vpop.xlane.xlu0 %2386  ;;  %v5096_v23 = vpop.xlane.xlu1 %2392 }
 0x46e   : > { %v1447_v62 = vsub.f32 1.0, %v1446_v9  ;;  %v2159_v37 = vmul.f32 1.442695, %v2154_v14 }
 0x46f   : > { %v1010_v41 = vmul.f32 %v4188_v5, %v1009_v28  ;;  %3854 = vmatmul.msk.f32.vlgmr.msrb.gmra.mxu3 %vm858_vm13, %v1023_v39 }
 0x470   : > { %v1448_v32 = vmul.f32 %v4190_v6, %v1447_v62  ;;  %4193 = vpow2.f32 %v2159_v37 }
 0x471   : > { %1922 = vadd.xlane.f32.xlu2 %v1921_v0  ;;  %v1011_v24 = vadd.f32 %v4188_v5, %v1010_v41  ;;  %4195 = vpow2.f32 %v1675_v21  ;;  %v5090_v0 = vpop.f32.mrf.mxu2  ;;  %v2397_v21 = vsub.f32 %v4883_v10, %v2387_v26 }
 0x472   : > { %v1449_v30 = vadd.f32 %v4190_v6, %v1448_v32  ;;  %v1412_v62 = vsel %vm858_vm13, %v5090_v0, -inf }
 0x473   : > { %v2149_v18 = vpop.xlane.xlu2 %2148  ;;  %v1015_v58 = vsel %vm1014_vm7, %v4188_v5, %v1011_v24 }
 0x474   : > { %v1453_v63 = vsel %vm1452_vm8, %v4190_v6, %v1449_v30  ;;  %v2155_v1 = vsub.f32 %v4879_v8, %v2149_v18  ;;  %v1020_v19 = vsel %vm1017_vm9, %v1019_v43, %v1015_v58  ;;  %v1683_v8 = vsel %vm858_vm13, %v5067_v59, 0.0 }
 0x475   : > { %v1458_v12 = vsel %vm1455_vm10, %v1457_v25, %v1453_v63  ;;  %v1024_v31 = vmul.f32 %v4947_v45, %v1020_v19  ;;  %v5102_v24 = vpop.xlane.xlu1 %2395  ;;  %v2401_v63 = vmul.f32 1.442695, %v2397_v21 }
 0x476   : > { %v5071_v4 = vpop.eup %4193  ;;  %v2161_v61 = vmul.f32 1.442695, %v2155_v1  ;;  %v1501_v56 = vmul.f32 %v4951_v55, %v1458_v12 }
 0x477   : > { %3855 = vmatmul.msk.f32.gmra.mxu3 %vm858_vm13, %v1024_v31  ;;  %v2168_v5 = vsel %vm858_vm13, %v5071_v4, 0.0  ;;  %v5080_v6 = vpop.eup %4195 }
 0x478   : > { %4197 = vpow2.f32 %v2161_v61  ;;  %3876 = vmatmul.msk.f32.vlgmr.msrb.gmra.mxu2 %vm858_vm13, %v1501_v56  ;;  %2169 = vadd.xlane.f32.xlu1 %v2168_v5  ;;  %v1686_v14 = vsel %vm858_vm13, %v5080_v6, 0.0 }
 0x479   : > { %1684 = vadd.xlane.f32.xlu2 %v1683_v8 }
 0x47b   : > { %v2152_v45 = vpop.xlane.xlu2 %2151 }
 0x47c   : > { %v2156_v30 = vsub.f32 %v4885_v11, %v2152_v45 }
 0x47d   : > { %v5104_v43 = vpop.xlane.xlu1 %2633 }
 0x47e   : > { %v5082_v53 = vpop.eup %4197  ;;  %v2163_v25 = vmul.f32 1.442695, %v2156_v30 }
 0x47f   : > { %v4007_v55 = vpop.permute.xlu0 %4006  ;;  %v2171_v60 = vsel %vm858_vm13, %v5082_v53, 0.0 }
 0x480   : > { %v4008_v9 = vunpack.i.l.bf16 %v4007_v55  ;;  %2172 = vadd.xlane.f32.xlu0 %v2171_v60  ;;  %v4009_v28 = vunpack.i.h.bf16 %v4007_v55  ;;  %4199 = vpow2.f32 %v2163_v25 }
 0x481   : > { %1687 = vadd.xlane.f32.xlu2 %v1686_v14  ;;  %4201 = vpow2.f32 %v2401_v63 }
 0x482   : > { %1322 = vmatpush.msra.mxu3 %v4008_v9 }
 0x483   : > { %v5088_v39 = vpop.xlane.xlu2 %2389 }
 0x484   : > { %1323 = vmatpush.msra.mxu3 %v4009_v28 }
 0x485   : > { %v2637_v18 = vpop.xlane.xlu1 %2636 }
 0x486   : > { %v2643_v58 = vsub.f32 %v4924_v17, %v2637_v18  ;;  %v5110_v12 = vpop.eup %4199 }
 0x487   : > { %v4022_v27 = vpop.permute.xlu0 %4021  ;;  %v2174_v61 = vsel %vm858_vm13, %v5110_v12, 0.0  ;;  %v5114_v11 = vpop.eup %4201 }
 0x488   : > { %v4023_v44 = vunpack.i.l.bf16 %v4022_v27  ;;  %v4024_v37 = vunpack.i.h.bf16 %v4022_v27  ;;  %v2649_v1 = vmul.f32 1.442695, %v2643_v58  ;;  %v2409_v17 = vsel %vm858_vm13, %v5114_v11, 0.0 }
 0x489   : > { %1413 = vmax.xlane.f32.xlu2 %v1412_v62 }
 0x48a   : > { %1775 = vmatpush.msra.mxu2 %v4023_v44  ;;  %4203 = vpow2.f32 %v2649_v1 }
 0x48b   : > { %v2631_v41 = vpop.xlane.xlu2 %2630 }
 0x48c   : > { %1776 = vmatpush.msra.mxu2 %v4024_v37  ;;  %v2641_v19 = vsub.f32 %v4903_v7, %v2631_v41 }
 0x48d   : > { %v4027_v26 = vpop.permute.xlu1 %4026 }
 0x48e   : > { %v2645_v31 = vmul.f32 1.442695, %v2641_v19 }
 0x490   : > { %4205 = vpow2.f32 %v2645_v31  ;;  %v5118_v56 = vpop.eup %4203 }
 0x491   : > { %v2659_v5 = vsel %vm858_vm13, %v5118_v56, 0.0 }
 0x493   : > { %v4017_v54 = vpop.permute.xlu2 %4016 }
 0x494   : > { %v4018_v29 = vunpack.i.l.bf16 %v4017_v54  ;;  %4036 = vrot.lane.b32.xlu0 %v4937_v36, %s4357_s27  ;;  %v4019_v32 = vunpack.i.h.bf16 %v4017_v54 }
 0x495   : > { %v5130_v60 = vpop.xlane.xlu1 %1440 }
 0x496   : > { %1566 = vmatpush.msrb.mxu3 %v4018_v29  ;;  %v5124_v8 = vpop.eup %4205  ;;  %vm1478_vm5 = vweird.f32 %v5130_v60 }
 0x497   : > { %v2653_v45 = vsel %vm858_vm13, %v5124_v8, 0.0 }
 0x498   : > { %1567 = vmatpush.msrb.mxu3 %v4019_v32 }
 0x49c   : > { %4041 = vrot.lane.b32.xlu0 %v4624_v13, %s4358_s17 }
 0x4a1   : > { %4031 = vrot.lane.b32.xlu2 %v4624_v13, %s4357_s27 }
 0x4b2   : > { %v1196_v10 = vpop.xlane.xlu0 %1195 }
 0x4b3   : > { %4207 = vrcp.f32 %v1196_v10  ;;  %vm1244_vm1 = vweird.f32 %v1196_v10 }
 0x4b9   : > { %v4208_v14 = vpop.eup %4207 }
 0x4ba   : > { %v5128_v55 = vpop.xlane.xlu0 %1925  ;;  %v1240_v28 = vmul.f32 %v4208_v14, %v1196_v10  ;;  %vm1245_vm0 = vweird.f32 %v4208_v14 }
 0x4bb   : > { %vm1246_vm2 = vmor %vm1244_vm1, %vm1245_vm0 }
 0x4bc   : > { %v1241_v62 = vsub.f32 1.0, %v1240_v28 }
 0x4be   : > { %v1242_v21 = vmul.f32 %v4208_v14, %v1241_v62  ;;  %v1248_v62 = vand.u32 2147483647, %v1196_v10 }
 0x4c0   : > { %vm1249_vm3 = vcmp.eq.f32.partialorder %v1248_v62, 8.507059e+37 }
 0x4c2   : > { %v5135_v37 = vpop.xlane.xlu0 %1443 }
 0x4c3   : > { %vm1492_vm9 = vweird.f32 %v5135_v37 }
 0x4c6   : > { %2175 = vadd.xlane.f32.xlu0 %v2174_v61  ;;  %v1243_v61 = vadd.f32 %v4208_v14, %v1242_v21  ;;  %v5150_v21 = vpop.xlane.xlu1 %2166 }
 0x4ca   : > { %2410 = vadd.xlane.f32.xlu2 %v2409_v17 }
 0x4cc   : > { %v5120_v7 = vpop.xlane.xlu2 %1678 }
 0x4ce   : > { %2660 = vadd.xlane.f32.xlu0 %v2659_v5  ;;  %v1250_v5 = vand.u32 2147483648, %v1196_v10 }
 0x4d2   : > { %2654 = vadd.xlane.f32.xlu2 %v2653_v45 }
 0x4d4   : > { %v1193_v9 = vpop.xlane.xlu2 %1192 }
 0x4d5   : > { %4209 = vrcp.f32 %v1193_v9  ;;  %v1236_v30 = vand.u32 2147483648, %v1193_v9  ;;  %v1234_v18 = vand.u32 2147483647, %v1193_v9  ;;  %vm1230_vm12 = vweird.f32 %v1193_v9 }
 0x4d6   : > { %4211 = vrcp.f32 %v5130_v60 }
 0x4d7   : > { %4213 = vrcp.f32 %v5135_v37  ;;  %v1237_v1 = vor.u32 1.1754944e-38, %v1236_v30  ;;  %vm1235_vm15 = vcmp.eq.f32.partialorder %v1234_v18, 8.507059e+37  ;;  %v1251_v30 = vor.u32 1.1754944e-38, %v1250_v5 }
 0x4db   : > { %v4210_v27 = vpop.eup %4209 }
 0x4dc   : > { %v5133_v44 = vpop.eup %4211  ;;  %v1226_v41 = vmul.f32 %v4210_v27, %v1193_v9  ;;  %v5137_v54 = vpop.xlane.xlu2 %1681  ;;  %vm1231_vm11 = vweird.f32 %v4210_v27  ;;  %v4028_v9 = vunpack.i.l.bf16 %v4027_v26 }
 0x4dd   : > { %v1474_v32 = vmul.f32 %v5133_v44, %v5130_v60  ;;  %vm1232_vm14 = vmor %vm1230_vm12, %vm1231_vm11  ;;  %v4214_v17 = vpop.eup %4213  ;;  %vm1479_vm4 = vweird.f32 %v5133_v44 }
 0x4de   : > { %v1227_v29 = vsub.f32 1.0, %v1226_v41  ;;  %vm1480_vm6 = vmor %vm1478_vm5, %vm1479_vm4  ;;  %vm1493_vm8 = vweird.f32 %v4214_v17 }
 0x4df   : > { %v1475_v63 = vsub.f32 1.0, %v1474_v32  ;;  %v4029_v32 = vunpack.i.h.bf16 %v4027_v26  ;;  %vm1494_vm10 = vmor %vm1492_vm9, %vm1493_vm8 }
 0x4e0   : > { %v1228_v25 = vmul.f32 %v4210_v27, %v1227_v29  ;;  %v1488_v29 = vmul.f32 %v4214_v17, %v5135_v37 }
 0x4e1   : > { %v1476_v41 = vmul.f32 %v5133_v44, %v1475_v63 }
 0x4e2   : > { %v1229_v58 = vadd.f32 %v4210_v27, %v1228_v25  ;;  %4056 = vrot.lane.b32.xlu0 %v4937_v36, %s4359_s25  ;;  %v1489_v26 = vsub.f32 1.0, %v1488_v29  ;;  %v5159_v25 = vpop.xlane.xlu0 %2639  ;;  %v1496_v29 = vand.u32 2147483647, %v5135_v37 }
 0x4e4   : > { %v1233_v19 = vsel %vm1232_vm14, %v4210_v27, %v1229_v58  ;;  %v5144_v31 = vpop.xlane.xlu2 %1922  ;;  %v1247_v27 = vsel %vm1246_vm2, %v4208_v14, %v1243_v61  ;;  %v1484_v14 = vand.u32 2147483648, %v5130_v60  ;;  %v1482_v58 = vand.u32 2147483647, %v5130_v60 }
 0x4e5   : > { %v1238_v45 = vsel %vm1235_vm15, %v1237_v1, %v1233_v19  ;;  %v1252_v10 = vsel %vm1249_vm3, %v1251_v30, %v1247_v27  ;;  %v1490_v19 = vmul.f32 %v4214_v17, %v1489_v26  ;;  %v1498_v60 = vand.u32 2147483648, %v5135_v37 }
 0x4e6   : > { %v1255_v28 = vmul.f32 %v5046_v40, %v1238_v45  ;;  %v1477_v40 = vadd.f32 %v5133_v44, %v1476_v41  ;;  %v1485_v1 = vor.u32 1.1754944e-38, %v1484_v14  ;;  %vm1483_vm7 = vcmp.eq.f32.partialorder %v1482_v58, 8.507059e+37  ;;  %v5166_v45 = vpop.xlane.xlu1 %1928 }
 0x4e7   : > { %v1499_v30 = vor.u32 1.1754944e-38, %v1498_v60  ;;  %vm1497_vm11 = vcmp.eq.f32.partialorder %v1496_v29, 8.507059e+37 }
 0x4e8   : > { %3866 = vmatmul.msk.f32.vlgmr.msra.gmra.mxu3 %vm858_vm13, %v1255_v28  ;;  %v1481_v63 = vsel %vm1480_vm6, %v5133_v44, %v1477_v40  ;;  %vm1966_vm6 = vweird.f32 %v5166_v45 }
 0x4e9   : > { %1810 = vmatpush.msra.mxu3 %v4028_v9  ;;  %v1486_v61 = vsel %vm1483_vm7, %v1485_v1, %v1481_v63  ;;  %v1491_v9 = vadd.f32 %v4214_v17, %v1490_v19  ;;  %v2398_v19 = vsub.f32 %v4889_v42, %v5088_v39  ;;  %v2644_v42 = vsub.f32 %v5032_v33, %v5159_v25 }
 0x4ea   : > { %4061 = vrot.lane.b32.xlu0 %v4624_v13, %s4360_s22  ;;  %4051 = vrot.lane.b32.xlu2 %v4624_v13, %s4359_s25  ;;  %v1256_v13 = vmul.f32 %v5012_v47, %v1252_v10  ;;  %v1503_v47 = vmul.f32 %v4971_v15, %v1486_v61  ;;  %v5173_v44 = vpop.xlane.xlu0 %1931 }
 0x4eb   : > { %1811 = vmatpush.msra.mxu3 %v4029_v32  ;;  %v1495_v32 = vsel %vm1494_vm10, %v4214_v17, %v1491_v9  ;;  %v2403_v39 = vmul.f32 1.442695, %v2398_v19  ;;  %vm1980_vm10 = vweird.f32 %v5173_v44 }
 0x4ec   : > { %v1685_v18 = vpop.xlane.xlu2 %1684  ;;  %v1500_v40 = vsel %vm1497_vm11, %v1499_v30, %v1495_v32  ;;  %v2651_v30 = vmul.f32 1.442695, %v2644_v42 }
 0x4ed   : > { %4215 = vrcp.f32 %v1685_v18  ;;  %v1728_v58 = vand.u32 2147483648, %v1685_v18  ;;  %vm1722_vm14 = vweird.f32 %v1685_v18  ;;  %v1726_v63 = vand.u32 2147483647, %v1685_v18 }
 0x4ee   : > { %v1504_v17 = vmul.f32 %v5024_v34, %v1500_v40 }
 0x4ef   : > { %vm1727_vm0 = vcmp.eq.f32.partialorder %v1726_v63, 8.507059e+37 }
 0x4f0   : > { %3867 = vmatmul.msk.f32.gmra.mxu3 %vm858_vm13, %v1256_v13 }
 0x4f3   : > { %v4216_v5 = vpop.eup %4215  ;;  %v5186_v1 = vpop.xlane.xlu0 %2172 }
 0x4f4   : > { %v1718_v28 = vmul.f32 %v4216_v5, %v1685_v18  ;;  %v5168_v62 = vpop.xlane.xlu2 %1687  ;;  %vm1723_vm12 = vweird.f32 %v4216_v5  ;;  %v1729_v18 = vor.u32 1.1754944e-38, %v1728_v58 }
 0x4f5   : > { %4217 = vrcp.f32 %v5168_v62  ;;  %vm1724_vm15 = vmor %vm1722_vm14, %vm1723_vm12  ;;  %vm1736_vm2 = vweird.f32 %v5168_v62  ;;  %v1740_v25 = vand.u32 2147483647, %v5168_v62 }
 0x4f6   : > { %v1719_v41 = vsub.f32 1.0, %v1718_v28  ;;  %4219 = vrcp.f32 %v5166_v45 }
 0x4f7   : > { %4221 = vrcp.f32 %v5173_v44  ;;  %vm1741_vm4 = vcmp.eq.f32.partialorder %v1740_v25, 8.507059e+37 }
 0x4f8   : > { %v1720_v27 = vmul.f32 %v4216_v5, %v1719_v41  ;;  %3878 = vmatmul.msk.f32.vlgmr.msrb.gmra.mxu3 %vm858_vm13, %v1503_v47 }
 0x4fa   : > { %v1721_v10 = vadd.f32 %v4216_v5, %v1720_v27 }
 0x4fb   : > { %v5179_v15 = vpop.eup %4217 }
 0x4fc   : > { %v1414_v14 = vpop.xlane.xlu2 %1413  ;;  %v5181_v26 = vpop.eup %4219  ;;  %v1732_v37 = vmul.f32 %v5179_v15, %v5168_v62  ;;  %v1725_v60 = vsel %vm1724_vm15, %v4216_v5, %v1721_v10  ;;  %vm1737_vm1 = vweird.f32 %v5179_v15 }
 0x4fd   : > { %v1422_v13 = vsub.f32 %v5090_v0, %v1414_v14  ;;  %v1962_v9 = vmul.f32 %v5181_v26, %v5166_v45  ;;  %v2400_v0 = vsub.f32 %v4906_v35, %v5102_v24  ;;  %v1730_v47 = vsel %vm1727_vm0, %v1729_v18, %v1725_v60  ;;  %v5202_v5 = vpop.eup %4221  ;;  %vm5214_vm3 = vmor %vm1736_vm2, %vm1737_vm1 }
 0x4fe   : > { %v1733_v61 = vsub.f32 1.0, %v1732_v37  ;;  %v1742_v35 = vand.u32 2147483648, %v5168_v62  ;;  %v1747_v33 = vmul.f32 %v5067_v59, %v1730_v47  ;;  %v2399_v14 = vsub.f32 %v4891_v49, %v5096_v23 }
 0x4ff   : > { %v1427_v28 = vmul.f32 1.442695, %v1422_v13  ;;  %v1963_v41 = vsub.f32 1.0, %v1962_v9  ;;  %v2407_v32 = vmul.f32 1.442695, %v2400_v0  ;;  %v1976_v59 = vmul.f32 %v5202_v5, %v5173_v44 }
 0x500   : > { %3879 = vmatmul.msk.f32.gmra.mxu3 %vm858_vm13, %v1504_v17  ;;  %v1734_v34 = vmul.f32 %v5179_v15, %v1733_v61  ;;  %v1743_v62 = vor.u32 1.1754944e-38, %v1742_v35  ;;  %v2405_v19 = vmul.f32 1.442695, %v2399_v14  ;;  %vm1967_vm5 = vweird.f32 %v5181_v26 }
 0x501   : > { %4223 = vpow2.f32 %v1427_v28  ;;  %v1964_v63 = vmul.f32 %v5181_v26, %v1963_v41  ;;  %v1977_v9 = vsub.f32 1.0, %v1976_v59  ;;  %v1970_v0 = vand.u32 2147483647, %v5166_v45  ;;  %vm1968_vm7 = vmor %vm1966_vm6, %vm1967_vm5 }
 0x502   : > { %v1735_v27 = vadd.f32 %v5179_v15, %v1734_v34  ;;  %4225 = vpow2.f32 %v2403_v39  ;;  %vm1981_vm9 = vweird.f32 %v5202_v5  ;;  %v1986_v35 = vand.u32 2147483648, %v5173_v44 }
 0x503   : > { %4227 = vpow2.f32 %v2407_v32  ;;  %v1965_v28 = vadd.f32 %v5181_v26, %v1964_v63  ;;  %v1978_v47 = vmul.f32 %v5202_v5, %v1977_v9  ;;  %vm1971_vm8 = vcmp.eq.f32.partialorder %v1970_v0, 8.507059e+37  ;;  %vm1982_vm11 = vmor %vm1980_vm10, %vm1981_vm9 }
 0x504   : > { %v4032_v29 = vpop.permute.xlu2 %4031  ;;  %v1739_v23 = vsel %vm5214_vm3, %v5179_v15, %v1735_v27  ;;  %4229 = vpow2.f32 %v2651_v30  ;;  %v1972_v15 = vand.u32 2147483648, %v5166_v45  ;;  %v1984_v30 = vand.u32 2147483647, %v5173_v44 }
 0x505   : > { %v4033_v24 = vunpack.i.l.bf16 %v4032_v29  ;;  %v4034_v58 = vunpack.i.h.bf16 %v4032_v29  ;;  %v1744_v61 = vsel %vm1741_vm4, %v1743_v62, %v1739_v23  ;;  %4231 = vpow2.f32 %v2405_v19 }
 0x506   : > { %v4037_v40 = vpop.permute.xlu0 %4036  ;;  %v1748_v18 = vmul.f32 %v5080_v6, %v1744_v61  ;;  %v1969_v39 = vsel %vm1968_vm7, %v5181_v26, %v1965_v28  ;;  %v1973_v29 = vor.u32 1.1754944e-38, %v1972_v15  ;;  %v1979_v26 = vadd.f32 %v5202_v5, %v1978_v47 }
 0x507   : > { %v5208_v10 = vpop.eup %4223  ;;  %v4038_v37 = vunpack.i.l.bf16 %v4037_v40  ;;  %2019 = vmatpush.msrb.mxu2 %v4033_v24  ;;  %v4039_v17 = vunpack.i.h.bf16 %v4037_v40  ;;  %v1987_v25 = vor.u32 1.1754944e-38, %v1986_v35  ;;  %vm1985_vm12 = vcmp.eq.f32.partialorder %v1984_v30, 8.507059e+37 }
 0x508   : > { %3890 = vmatmul.msk.f32.vlgmr.msra.gmra.mxu3 %vm858_vm13, %v1747_v33  ;;  %v1436_v49 = vsel %vm858_vm13, %v5208_v10, 0.0  ;;  %v5229_v60 = vpop.eup %4225  ;;  %v1974_v45 = vsel %vm1971_vm8, %v1973_v29, %v1969_v39  ;;  %v1983_v33 = vsel %vm1982_vm11, %v5202_v5, %v1979_v26  ;;  %vm1694_vm3 = vweird.f32 %v5120_v7 }
 0x509   : > { %1437 = vadd.xlane.f32.xlu1 %v1436_v49  ;;  %2020 = vmatpush.msrb.mxu2 %v4034_v58  ;;  %v5235_v34 = vpop.eup %4227  ;;  %v2412_v41 = vsel %vm858_vm13, %v5229_v60, 0.0  ;;  %v1991_v24 = vmul.f32 %v4990_v48, %v1974_v45  ;;  %v1988_v14 = vsel %vm1985_vm12, %v1987_v25, %v1983_v33  ;;  %v2642_v48 = vsub.f32 %v4916_v22, %v5104_v43 }
 0x50a   : > { %2054 = vmatpush.msrb.mxu3 %v4038_v37  ;;  %v5237_v42 = vpop.eup %4229  ;;  %v2418_v6 = vsel %vm858_vm13, %v5235_v34, 0.0  ;;  %v1992_v58 = vmul.f32 %v5042_v52, %v1988_v14  ;;  %v5272_v52 = vpop.xlane.xlu1 %2169  ;;  %v1698_v26 = vand.u32 2147483647, %v5120_v7  ;;  %vm1708_vm7 = vweird.f32 %v5137_v54 }
 0x50b   : > { %v2662_v27 = vsel %vm858_vm13, %v5237_v42, 0.0  ;;  %v5250_v32 = vpop.eup %4231  ;;  %v2647_v44 = vmul.f32 1.442695, %v2642_v48  ;;  %vm1938_vm12 = vweird.f32 %v5144_v31 }
 0x50c   : > { %2055 = vmatpush.msrb.mxu3 %v4039_v17  ;;  %v2415_v40 = vsel %vm858_vm13, %v5250_v32, 0.0  ;;  %vm1699_vm5 = vcmp.eq.f32.partialorder %v1698_v26, 8.507059e+37  ;;  %v1944_v26 = vand.u32 2147483648, %v5144_v31 }
 0x50d   : > { %4233 = vpow2.f32 %v2647_v44 }
 0x50e   : > { %4235 = vrcp.f32 %v5120_v7  ;;  %v5281_v13 = vpop.permute.xlu0 %4041 }
 0x510   : > { %3891 = vmatmul.msk.f32.gmra.mxu3 %vm858_vm13, %v1748_v18 }
 0x511   : > { %2413 = vadd.xlane.f32.xlu1 %v2412_v41 }
 0x513   : > { %2419 = vadd.xlane.f32.xlu2 %v2418_v6  ;;  %v5268_v5 = vpop.eup %4233 }
 0x514   : > { %2663 = vadd.xlane.f32.xlu0 %v2662_v27  ;;  %v2656_v37 = vsel %vm858_vm13, %v5268_v5, 0.0  ;;  %v4236_v22 = vpop.eup %4235  ;;  %v1700_v27 = vand.u32 2147483648, %v5120_v7 }
 0x515   : > { %v1690_v43 = vmul.f32 %v4236_v22, %v5120_v7  ;;  %vm1695_vm2 = vweird.f32 %v4236_v22 }
 0x516   : > { %vm1696_vm4 = vmor %vm1694_vm3, %vm1695_vm2  ;;  %v1701_v14 = vor.u32 1.1754944e-38, %v1700_v27  ;;  %vm1952_vm3 = vweird.f32 %v5128_v55 }
 0x517   : > { %v1691_v23 = vsub.f32 1.0, %v1690_v43 }
 0x518   : > { %3902 = vmatmul.msk.f32.vlgmr.msrb.gmra.mxu3 %vm858_vm13, %v1991_v24 }
 0x519   : > { %2416 = vadd.xlane.f32.xlu1 %v2415_v40  ;;  %v1692_v19 = vmul.f32 %v4236_v22, %v1691_v23 }
 0x51b   : > { %v1693_v41 = vadd.f32 %v4236_v22, %v1692_v19 }
 0x51d   : > { %v1697_v30 = vsel %vm1696_vm4, %v4236_v22, %v1693_v41 }
 0x520   : > { %3903 = vmatmul.msk.f32.gmra.mxu3 %vm858_vm13, %v1992_v58 }
 0x52b   : > { %4066 = vrot.lane.b32.xlu2 %v4937_v36, %s4360_s22 }
 0x532   : > { %4046 = vrot.lane.b32.xlu1 %v4937_v36, %s4358_s17 }
 0x539   : > { %v5291_v28 = vpop.xlane.xlu0 %2175 }
 0x53d   : > { %v5283_v63 = vpop.xlane.xlu2 %2410 }
 0x541   : > { %v5316_v7 = vpop.xlane.xlu0 %2660 }
 0x545   : > { %v5293_v15 = vpop.xlane.xlu2 %2654 }
 0x554   : > { %v5351_v41 = vpop.permute.xlu0 %4056 }
 0x55c   : > { %2657 = vadd.xlane.f32.xlu1 %v2656_v37  ;;  %v5320_v37 = vpop.permute.xlu2 %4051 }
 0x575   : > { %4071 = vrot.lane.b32.xlu1 %v4070_v16, %s4360_s22 }
 0x57c   : > { %v1438_v36 = vpop.xlane.xlu1 %1437 }
 0x57d   : > { %4237 = vrcp.f32 %v1438_v36  ;;  %v1470_v38 = vand.u32 2147483648, %v1438_v36  ;;  %v1468_v16 = vand.u32 2147483647, %v1438_v36  ;;  %vm1464_vm15 = vweird.f32 %v1438_v36 }
 0x57e   : > { %4239 = vrcp.f32 %v5137_v54 }
 0x57f   : > { %4241 = vrcp.f32 %v5144_v31  ;;  %v1471_v0 = vor.u32 1.1754944e-38, %v1470_v38  ;;  %vm1469_vm1 = vcmp.eq.f32.partialorder %v1468_v16, 8.507059e+37  ;;  %v4043_v16 = vunpack.i.l.bf16 %v5281_v13 }
 0x580   : > { %4243 = vrcp.f32 %v5186_v1 }
 0x581   : > { %4245 = vrcp.f32 %v5150_v21 }
 0x582   : > { %4247 = vrcp.f32 %v5128_v55 }
 0x583   : > { %v4238_v59 = vpop.eup %4237  ;;  %4249 = vrcp.f32 %v5291_v28 }
 0x584   : > { %v1460_v49 = vmul.f32 %v4238_v59, %v1438_v36  ;;  %v5285_v17 = vpop.eup %4239  ;;  %vm1465_vm14 = vweird.f32 %v4238_v59  ;;  %v5295_v18 = vpop.xlane.xlu1 %2413 }
 0x585   : > { %v1704_v61 = vmul.f32 %v5285_v17, %v5137_v54  ;;  %vm1466_vm0 = vmor %vm1464_vm15, %vm1465_vm14  ;;  %v5298_v47 = vpop.eup %4241  ;;  %vm1709_vm6 = vweird.f32 %v5285_v17  ;;  %vm2210_vm15 = vweird.f32 %v5186_v1 }
 0x586   : > { %v1461_v62 = vsub.f32 1.0, %v1460_v49  ;;  %v5300_v45 = vpop.eup %4243  ;;  %v1934_v24 = vmul.f32 %v5298_v47, %v5144_v31  ;;  %v1714_v49 = vand.u32 2147483648, %v5137_v54  ;;  %vm5339_vm8 = vmor %vm1708_vm7, %vm1709_vm6  ;;  %vm1939_vm10 = vweird.f32 %v5298_v47 }
 0x587   : > { %v1705_v29 = vsub.f32 1.0, %v1704_v61  ;;  %v2206_v33 = vmul.f32 %v5300_v45, %v5186_v1  ;;  %v5314_v25 = vpop.eup %4245  ;;  %vm2211_vm11 = vweird.f32 %v5300_v45  ;;  %vm5366_vm14 = vmor %vm1938_vm12, %vm1939_vm10  ;;  %vm2224_vm7 = vweird.f32 %v5291_v28 }
 0x588   : > { %v1462_v50 = vmul.f32 %v4238_v59, %v1461_v62  ;;  %v1935_v58 = vsub.f32 1.0, %v1934_v24  ;;  %v5318_v48 = vpop.eup %4247  ;;  %v1712_v62 = vand.u32 2147483647, %v5137_v54  ;;  %v5358_v24 = vpop.xlane.xlu2 %2419  ;;  %vm2182_vm12 = vweird.f32 %v5150_v21 }
 0x589   : > { %v1706_v40 = vmul.f32 %v5285_v17, %v1705_v29  ;;  %v2207_v44 = vsub.f32 1.0, %v2206_v33  ;;  %v5326_v43 = vpop.eup %4249  ;;  %v2216_v33 = vand.u32 2147483648, %v5186_v1 }
 0x58a   : > { %v1463_v9 = vadd.f32 %v4238_v59, %v1462_v50  ;;  %v1948_v50 = vmul.f32 %v5318_v48, %v5128_v55  ;;  %v1936_v38 = vmul.f32 %v5298_v47, %v1935_v58  ;;  %vm1713_vm9 = vcmp.eq.f32.partialorder %v1712_v62, 8.507059e+37 }
 0x58b   : > { %v1707_v22 = vadd.f32 %v5285_v17, %v1706_v40  ;;  %v2208_v61 = vmul.f32 %v5300_v45, %v2207_v44  ;;  %v1942_v40 = vand.u32 2147483647, %v5144_v31  ;;  %v1958_v62 = vand.u32 2147483648, %v5128_v55 }
 0x58c   : > { %v1467_v39 = vsel %vm1466_vm0, %v4238_v59, %v1463_v9  ;;  %v5322_v36 = vpop.xlane.xlu1 %2416  ;;  %v2178_v59 = vmul.f32 %v5314_v25, %v5150_v21  ;;  %v1949_v29 = vsub.f32 1.0, %v1948_v50  ;;  %vm5380_vm0 = vmor %vm2210_vm15, %vm2211_vm11  ;;  %vm2225_vm6 = vweird.f32 %v5326_v43 }
 0x58d   : > { %v1472_v6 = vsel %vm1469_vm1, %v1471_v0, %v1467_v39  ;;  %4251 = vrcp.f32 %v5322_v36  ;;  %v1711_v54 = vsel %vm5339_vm8, %v5285_v17, %v1707_v22  ;;  %v1715_v0 = vor.u32 1.1754944e-38, %v1714_v49 }
 0x58e   : > { %v1502_v35 = vmul.f32 %v5208_v10, %v1472_v6  ;;  %v1702_v10 = vsel %vm1699_vm5, %v1701_v14, %v1697_v30  ;;  %v2179_v9 = vsub.f32 1.0, %v2178_v59  ;;  %v4044_v39 = vunpack.i.h.bf16 %v5281_v13 }
 0x58f   : > { %v1745_v23 = vmul.f32 %v5034_v51, %v1702_v10  ;;  %v2220_v51 = vmul.f32 %v5326_v43, %v5291_v28  ;;  %v1937_v6 = vadd.f32 %v5298_v47, %v1936_v38  ;;  %v1716_v27 = vsel %vm1713_vm9, %v1715_v0, %v1711_v54  ;;  %vm5433_vm9 = vmor %vm2224_vm7, %vm2225_vm6 }
 0x590   : > { %3877 = vmatmul.msk.f32.gmra.mxu2 %vm858_vm13, %v1502_v35  ;;  %v2209_v35 = vadd.f32 %v5300_v45, %v2208_v61  ;;  %v2180_v30 = vmul.f32 %v5314_v25, %v2179_v9  ;;  %4253 = vrcp.f32 %v5272_v52  ;;  %v2214_v10 = vand.u32 2147483647, %v5186_v1 }
 0x591   : > { %v2221_v17 = vsub.f32 1.0, %v2220_v51  ;;  %v1746_v58 = vmul.f32 %v5052_v57, %v1716_v27  ;;  %v1950_v44 = vmul.f32 %v5318_v48, %v1949_v29  ;;  %v1941_v31 = vsel %vm5366_vm14, %v5298_v47, %v1937_v6  ;;  %v5402_v51 = vpop.permute.xlu0 %4061 }
 0x592   : > { %4255 = vrcp.f32 %v5358_v24  ;;  %v1945_v59 = vor.u32 1.1754944e-38, %v1944_v26  ;;  %v2213_v1 = vsel %vm5380_vm0, %v5300_v45, %v2209_v35  ;;  %v5393_v47 = vadd.f32 %v5314_v25, %v2180_v30 }
 0x593   : > { %v5360_v13 = vpop.eup %4251  ;;  %v2222_v57 = vmul.f32 %v5326_v43, %v2221_v17  ;;  %vm2183_vm1 = vweird.f32 %v5314_v25  ;;  %vm1943_vm2 = vcmp.eq.f32.partialorder %v1942_v40, 8.507059e+37  ;;  %vm2215_vm4 = vcmp.eq.f32.partialorder %v2214_v10, 8.507059e+37 }
 0x594   : > { %v2450_v49 = vmul.f32 %v5360_v13, %v5322_v36  ;;  %v1946_v50 = vsel %vm1943_vm2, %v1945_v59, %v1941_v31  ;;  %v1951_v19 = vadd.f32 %v5318_v48, %v1950_v44  ;;  %vm1953_vm5 = vweird.f32 %v5318_v48  ;;  %vm5455_vm14 = vmor %vm2182_vm12, %vm2183_vm1 }
 0x595   : > { %v1956_v9 = vand.u32 2147483647, %v5128_v55  ;;  %v2223_v0 = vadd.f32 %v5326_v43, %v2222_v57  ;;  %v2230_v29 = vand.u32 2147483648, %v5291_v28  ;;  %4257 = vrcp.f32 %v5283_v63  ;;  %vm5419_vm8 = vmor %vm1952_vm3, %vm1953_vm5 }
 0x596   : > { %v5400_v61 = vpop.eup %4253  ;;  %v2451_v54 = vsub.f32 1.0, %v2450_v49  ;;  %v1989_v27 = vmul.f32 %v5058_v2, %v1946_v50  ;;  %4259 = vrcp.f32 %v5316_v7  ;;  %v2228_v17 = vand.u32 2147483647, %v5291_v28 }
 0x597   : > { %v2192_v30 = vmul.f32 %v5400_v61, %v5272_v52  ;;  %v4053_v2 = vunpack.i.l.bf16 %v5320_v37  ;;  %v4058_v40 = vunpack.i.l.bf16 %v5351_v41  ;;  %v1959_v28 = vor.u32 1.1754944e-38, %v1958_v62 }
 0x598   : > { %3888 = vmatmul.msk.f32.vlgmr.msra.gmra.mxu2 %vm858_vm13, %v1745_v23  ;;  %v2217_v23 = vor.u32 1.1754944e-38, %v2216_v33  ;;  %v4067_v33 = vpop.permute.xlu2 %4066  ;;  %v2452_v10 = vmul.f32 %v5360_v13, %v2451_v54  ;;  %v4054_v44 = vunpack.i.h.bf16 %v5320_v37  ;;  %v4059_v31 = vunpack.i.h.bf16 %v5351_v41 }
 0x599   : > { %2263 = vmatpush.msra.mxu2 %v4043_v16  ;;  %vm1957_vm10 = vcmp.eq.f32.partialorder %v1956_v9, 8.507059e+37  ;;  %v4068_v22 = vunpack.i.l.bf16 %v4067_v33  ;;  %vm2229_vm11 = vcmp.eq.f32.partialorder %v2228_v17, 8.507059e+37  ;;  %v2188_v57 = vand.u32 2147483648, %v5150_v21  ;;  %v5459_v62 = vpop.xlane.xlu0 %2663 }
 0x59a   : > { %v2218_v38 = vsel %vm2215_vm4, %v2217_v23, %v2213_v1  ;;  %v2193_v49 = vsub.f32 1.0, %v2192_v30  ;;  %v2453_v50 = vadd.f32 %v5360_v13, %v2452_v10  ;;  %vm2455_vm15 = vweird.f32 %v5360_v13 }
 0x59b   : > { %2264 = vmatpush.msra.mxu2 %v4044_v39  ;;  %v5407_v39 = vpop.eup %4255  ;;  %v2235_v26 = vmul.f32 %v5082_v53, %v2218_v38  ;;  %v1955_v53 = vsel %vm5419_vm8, %v5318_v48, %v1951_v19  ;;  %v2227_v48 = vsel %vm5433_vm9, %v5326_v43, %v2223_v0  ;;  %v2185_v38 = vsel %vm5455_vm14, %v5314_v25, %v5393_v47 }
 0x59c   : > { %v2464_v14 = vmul.f32 %v5407_v39, %v5358_v24  ;;  %v1960_v59 = vsel %vm1957_vm10, %v1959_v28, %v1955_v53  ;;  %v5447_v1 = vpop.eup %4257  ;;  %v2460_v19 = vand.u32 2147483648, %v5322_v36  ;;  %4261 = vrcp.f32 %v5295_v18 }
 0x59d   : > { %v5451_v23 = vpop.eup %4259  ;;  %v1990_v54 = vmul.f32 %v5018_v3, %v1960_v59  ;;  %vm2454_vm0 = vweird.f32 %v5322_v36  ;;  %v2458_v9 = vand.u32 2147483647, %v5322_v36  ;;  %v2422_v25 = vmul.f32 %v5447_v1, %v5283_v63 }
 0x59e   : > { %v2465_v41 = vsub.f32 1.0, %v2464_v14  ;;  %4263 = vrcp.f32 %v5459_v62  ;;  %vm2456_vm1 = vmor %vm2454_vm0, %vm2455_vm15  ;;  %v2189_v3 = vor.u32 1.1754944e-38, %v2188_v57  ;;  %vm2197_vm4 = vweird.f32 %v5400_v61 }
 0x59f   : > { %v2457_v36 = vsel %vm2456_vm1, %v5360_v13, %v2453_v50  ;;  %vm2459_vm3 = vcmp.eq.f32.partialorder %v2458_v9, 8.507059e+37  ;;  %vm2469_vm5 = vweird.f32 %v5407_v39  ;;  %vm2196_vm6 = vweird.f32 %v5272_v52 }
 0x5a0   : > { %3889 = vmatmul.msk.f32.gmra.mxu2 %vm858_vm13, %v1746_v58  ;;  %v2231_v58 = vor.u32 1.1754944e-38, %v2230_v29  ;;  %v2194_v29 = vmul.f32 %v5400_v61, %v2193_v49  ;;  %v2466_v47 = vmul.f32 %v5407_v39, %v2465_v41  ;;  %v2200_v55 = vand.u32 2147483647, %v5272_v52  ;;  %vm5504_vm8 = vmor %vm2196_vm6, %vm2197_vm4 }
 0x5a1   : > { %4265 = vrcp.f32 %v5293_v15  ;;  %vm2468_vm7 = vweird.f32 %v5358_v24  ;;  %v2472_v10 = vand.u32 2147483647, %v5358_v24  ;;  %vm2427_vm12 = vweird.f32 %v5447_v1 }
 0x5a2   : > { %v2232_v43 = vsel %vm2229_vm11, %v2231_v58, %v2227_v48  ;;  %v2195_v17 = vadd.f32 %v5400_v61, %v2194_v29  ;;  %v5488_v30 = vpop.eup %4261  ;;  %v2467_v13 = vadd.f32 %v5407_v39, %v2466_v47  ;;  %vm5517_vm9 = vmor %vm2468_vm7, %vm2469_vm5  ;;  %vm2201_vm10 = vcmp.eq.f32.partialorder %v2200_v55, 8.507059e+37 }
 0x5a3   : > { %v2236_v0 = vmul.f32 %v5110_v12, %v2232_v43  ;;  %v2461_v12 = vor.u32 1.1754944e-38, %v2460_v19  ;;  %vm2473_vm11 = vcmp.eq.f32.partialorder %v2472_v10, 8.507059e+37  ;;  %v2432_v43 = vand.u32 2147483648, %v5283_v63 }
 0x5a4   : > { %v4047_v45 = vpop.permute.xlu1 %4046  ;;  %v2199_v58 = vsel %vm5504_vm8, %v5400_v61, %v2195_v17  ;;  %v2471_v61 = vsel %vm5517_vm9, %v5407_v39, %v2467_v13  ;;  %vm2699_vm14 = vweird.f32 %v5451_v23  ;;  %vm2426_vm15 = vweird.f32 %v5283_v63 }
 0x5a5   : > { %v4048_v16 = vunpack.i.l.bf16 %v4047_v45  ;;  %v4049_v6 = vunpack.i.h.bf16 %v4047_v45  ;;  %v4069_v45 = vunpack.i.h.bf16 %v4067_v33  ;;  %v2462_v35 = vsel %vm2459_vm3, %v2461_v12, %v2457_v36  ;;  %vm5541_vm0 = vmor %vm2426_vm15, %vm2427_vm12 }
 0x5a6   : > { %v2474_v33 = vand.u32 2147483648, %v5358_v24  ;;  %v2479_v28 = vmul.f32 %v5250_v32, %v2462_v35  ;;  %v2436_v24 = vmul.f32 %v5488_v30, %v5295_v18  ;;  %vm2698_vm1 = vweird.f32 %v5316_v7 }
 0x5a7   : > { %2298 = vmatpush.msra.mxu3 %v4048_v16  ;;  %v2186_v16 = vand.u32 2147483647, %v5150_v21  ;;  %v2694_v21 = vmul.f32 %v5451_v23, %v5316_v7  ;;  %v2702_v19 = vand.u32 2147483647, %v5316_v7  ;;  %v2433_v29 = vor.u32 1.1754944e-38, %v2432_v43 }
 0x5a8   : > { %3900 = vmatmul.msk.f32.vlgmr.msrb.gmra.mxu2 %vm858_vm13, %v1989_v27  ;;  %v2423_v27 = vsub.f32 1.0, %v2422_v25  ;;  %v2475_v59 = vor.u32 1.1754944e-38, %v2474_v33  ;;  %vm2441_vm5 = vweird.f32 %v5488_v30  ;;  %vm2440_vm7 = vweird.f32 %v5295_v18 }
 0x5a9   : > { %2299 = vmatpush.msra.mxu3 %v4049_v6  ;;  %2507 = vmatpush.msrb.mxu2 %v4053_v2  ;;  %vm2187_vm2 = vcmp.eq.f32.partialorder %v2186_v16, 8.507059e+37  ;;  %v2202_v2 = vand.u32 2147483648, %v5272_v52  ;;  %v4063_v52 = vunpack.i.l.bf16 %v5402_v51  ;;  %vm2703_vm4 = vcmp.eq.f32.partialorder %v2702_v19, 8.507059e+37  ;;  %vm2442_vm9 = vmor %vm2440_vm7, %vm2441_vm5 }
 0x5aa   : > { %3914 = vmatmul.msk.f32.vlgmr.msra.gmra.mxu3 %vm858_vm13, %v2235_v26  ;;  %v2190_v6 = vsel %vm2187_vm2, %v2189_v3, %v2185_v38  ;;  %v2695_v26 = vsub.f32 1.0, %v2694_v21  ;;  %v2424_v48 = vmul.f32 %v5447_v1, %v2423_v27  ;;  %v2476_v37 = vsel %vm2473_vm11, %v2475_v59, %v2471_v61  ;;  %vm2700_vm2 = vmor %vm2698_vm1, %vm2699_vm14 }
 0x5ab   : > { %2542 = vmatpush.msrb.mxu3 %v4058_v40  ;;  %2508 = vmatpush.msrb.mxu2 %v4054_v44  ;;  %v5493_v40 = vpop.eup %4263  ;;  %v2233_v53 = vmul.f32 %v4977_v46, %v2190_v6  ;;  %v2203_v44 = vor.u32 1.1754944e-38, %v2202_v2  ;;  %v2704_v38 = vand.u32 2147483648, %v5316_v7  ;;  %v2480_v9 = vmul.f32 %v5235_v34, %v2476_v37 }
 0x5ac   : > { %v2696_v46 = vmul.f32 %v5451_v23, %v2695_v26  ;;  %v2425_v49 = vadd.f32 %v5447_v1, %v2424_v48  ;;  %v5534_v41 = vpop.eup %4265  ;;  %vm2713_vm6 = vweird.f32 %v5493_v40  ;;  %v2446_v36 = vand.u32 2147483648, %v5295_v18 }
 0x5ad   : > { %2543 = vmatpush.msrb.mxu3 %v4059_v31  ;;  %v2708_v31 = vmul.f32 %v5493_v40, %v5459_v62  ;;  %v2204_v57 = vsel %vm2201_vm10, %v2203_v44, %v2199_v58  ;;  %v2718_v12 = vand.u32 2147483648, %v5459_v62  ;;  %vm2712_vm8 = vweird.f32 %v5459_v62 }
 0x5ae   : > { %v2697_v50 = vadd.f32 %v5451_v23, %v2696_v46  ;;  %v2444_v26 = vand.u32 2147483647, %v5295_v18  ;;  %v2716_v35 = vand.u32 2147483647, %v5459_v62  ;;  %vm2714_vm10 = vmor %vm2712_vm8, %vm2713_vm6  ;;  %v2447_v13 = vor.u32 1.1754944e-38, %v2446_v36 }
 0x5af   : > { %2786 = vmatpush.msra.mxu3 %v4068_v22  ;;  %v4064_v22 = vunpack.i.h.bf16 %v5402_v51  ;;  %v2437_v51 = vsub.f32 1.0, %v2436_v24  ;;  %v2709_v39 = vsub.f32 1.0, %v2708_v31  ;;  %v2719_v33 = vor.u32 1.1754944e-38, %v2718_v12 }
 0x5b0   : > { %3901 = vmatmul.msk.f32.gmra.mxu2 %vm858_vm13, %v1990_v54  ;;  %v2234_v54 = vmul.f32 %v5071_v4, %v2204_v57  ;;  %v2701_v25 = vsel %vm2700_vm2, %v5451_v23, %v2697_v50  ;;  %v2705_v4 = vor.u32 1.1754944e-38, %v2704_v38  ;;  %vm2445_vm11 = vcmp.eq.f32.partialorder %v2444_v26, 8.507059e+37 }
 0x5b1   : > { %2787 = vmatpush.msra.mxu3 %v4069_v45  ;;  %v2430_v45 = vand.u32 2147483647, %v5283_v63  ;;  %v2666_v63 = vmul.f32 %v5534_v41, %v5293_v15  ;;  %v2438_v21 = vmul.f32 %v5488_v30, %v2437_v51  ;;  %v2710_v3 = vmul.f32 %v5493_v40, %v2709_v39 }
 0x5b2   : > { %3915 = vmatmul.msk.f32.gmra.mxu3 %vm858_vm13, %v2236_v0  ;;  %v2429_v0 = vsel %vm5541_vm0, %v5447_v1, %v2425_v49  ;;  %v2706_v7 = vsel %vm2703_vm4, %v2705_v4, %v2701_v25  ;;  %vm2717_vm12 = vcmp.eq.f32.partialorder %v2716_v35, 8.507059e+37  ;;  %vm2671_vm14 = vweird.f32 %v5534_v41 }
 0x5b3   : > { %vm2431_vm3 = vcmp.eq.f32.partialorder %v2430_v45, 8.507059e+37  ;;  %v2667_v1 = vsub.f32 1.0, %v2666_v63  ;;  %v2439_v47 = vadd.f32 %v5488_v30, %v2438_v21  ;;  %v2711_v23 = vadd.f32 %v5493_v40, %v2710_v3 }
 0x5b4   : > { %v2434_v34 = vsel %vm2431_vm3, %v2433_v29, %v2429_v0  ;;  %v2723_v27 = vmul.f32 %v5118_v56, %v2706_v7  ;;  %vm2670_vm15 = vweird.f32 %v5293_v15  ;;  %v2676_v62 = vand.u32 2147483648, %v5293_v15 }
 0x5b5   : > { %v2477_v6 = vmul.f32 %v5114_v11, %v2434_v34  ;;  %v2668_v17 = vmul.f32 %v5534_v41, %v2667_v1  ;;  %v2443_v2 = vsel %vm2442_vm9, %v5488_v30, %v2439_v47  ;;  %v2715_v11 = vsel %vm2714_vm10, %v5493_v40, %v2711_v23  ;;  %vm2672_vm0 = vmor %vm2670_vm15, %vm2671_vm14 }
 0x5b6   : > { %v2448_v56 = vsel %vm2445_vm11, %v2447_v13, %v2443_v2  ;;  %v2677_v10 = vor.u32 1.1754944e-38, %v2676_v62  ;;  %v2953_v62 = vld [vmem:[%s4467_s19 + $0x60] sm:$0xff]  ;;  %vm2911_vm6 = vcmask 261120   ;;  %vm2916_vm7 = vcmask 392192  }
 0x5b7   : > { %v2669_v18 = vadd.f32 %v5534_v41, %v2668_v17  ;;  %v2478_v30 = vmul.f32 %v5229_v60, %v2448_v56  ;;  %v2955_v56 = vld [vmem:[%s4467_s19 + $0x70] sm:$0xff]  ;;  %vm2921_vm8 = vcmask 523264   ;;  %vm2926_vm9 = vcmask 654336  }
 0x5b8   : > { %3912 = vmatmul.msk.f32.vlgmr.msra.gmra.mxu2 %vm858_vm13, %v2233_v53  ;;  %v2720_v53 = vsel %vm2717_vm12, %v2719_v33, %v2715_v11  ;;  %v2956_v33 = vld [vmem:[%s4467_s19 + $0x78] sm:$0xff]  ;;  %vm2931_vm10 = vcmask 785408   ;;  %vm2936_vm11 = vcmask 916480  }
 0x5b9   : > { %2751 = vmatpush.msra.mxu2 %v4063_v52  ;;  %v2724_v40 = vmul.f32 %v5237_v42, %v2720_v53  ;;  %v2673_v14 = vsel %vm2672_vm0, %v5534_v41, %v2669_v18  ;;  %v5586_v52 = vpop.f32.mrf.mxu3  ;;  %v1534_v41 = vpop.f32.mrf.mxu2  ;;  %2961 = vmatpush.msrb.mxu0 %v2956_v33  ;;  %v2954_v53 = vld [vmem:[%s4467_s19 + $0x68] sm:$0xff] }
 0x5ba   : > { %3926 = vmatmul.msk.f32.vlgmr.msrb.gmra.mxu3 %vm858_vm13, %v2479_v28  ;;  %v2674_v28 = vand.u32 2147483647, %v5293_v15 }
 0x5bb   : > { %2752 = vmatpush.msra.mxu2 %v4064_v22  ;;  %2962 = vmatpush.msrb.mxu0 %v2955_v56 }
 0x5bc   : > { %vm2675_vm1 = vcmp.eq.f32.partialorder %v2674_v28, 8.507059e+37  ;;  %v2951_v28 = vld [vmem:[%s4467_s19 + $0x50] sm:$0xff] }
 0x5bd   : > { %v2678_v48 = vsel %vm2675_vm1, %v2677_v10, %v2673_v14  ;;  %2963 = vmatpush.msrb.mxu0 %v2954_v53  ;;  %v2948_v14 = vld [vmem:[%s4467_s19 + $0x38] sm:$0xff]  ;;  %v2947_v10 = vld [vmem:[%s4467_s19 + $0x30] sm:$0xff] }
 0x5be   : > { %v2721_v15 = vmul.f32 %v5124_v8, %v2678_v48  ;;  %v2946_v48 = vld [vmem:[%s4467_s19 + $0x28] sm:$0xff] }
 0x5bf   : > { %2964 = vmatpush.msrb.mxu0 %v2953_v62 }
 0x5c0   : > { %3913 = vmatmul.msk.f32.gmra.mxu2 %vm858_vm13, %v2234_v54 }
 0x5c1   : > { %v5590_v59 = vpop.f32.mrf.mxu3 }
 0x5c2   : > { %3927 = vmatmul.msk.f32.gmra.mxu3 %vm858_vm13, %v2480_v9 }
 0x5c8   : > { %3924 = vmatmul.msk.f32.vlgmr.msrb.gmra.mxu2 %vm858_vm13, %v2477_v6 }
 0x5c9   : > { %v5594_v8 = vpop.f32.mrf.mxu3 }
 0x5ca   : > { %3938 = vmatmul.msk.f32.vlgmr.msra.gmra.mxu3 %vm858_vm13, %v2723_v27 }
 0x5cf   : > { %v2658_v55 = vpop.xlane.xlu1 %2657 }
 0x5d0   : > { %4267 = vrcp.f32 %v2658_v55  ;;  %3925 = vmatmul.msk.f32.gmra.mxu2 %vm858_vm13, %v2478_v30  ;;  %v2690_v60 = vand.u32 2147483648, %v2658_v55  ;;  %v2688_v44 = vand.u32 2147483647, %v2658_v55  ;;  %vm2684_vm3 = vweird.f32 %v2658_v55  ;;  %v2950_v30 = vld [vmem:[%s4467_s19 + $0x48] sm:$0xff] }
 0x5d1   : > { %v5596_v49 = vpop.f32.mrf.mxu3 }
 0x5d2   : > { %3939 = vmatmul.msk.f32.gmra.mxu3 %vm858_vm13, %v2724_v40  ;;  %v2691_v31 = vor.u32 1.1754944e-38, %v2690_v60  ;;  %vm2689_vm5 = vcmp.eq.f32.partialorder %v2688_v44, 8.507059e+37  ;;  %v2949_v40 = vld [vmem:[%s4467_s19 + $0x40] sm:$0xff] }
 0x5d3   : > { %v2941_v44 = vld [vmem:[%s4467_s19] sm:$0xff] }
 0x5d6   : > { %v4268_v46 = vpop.eup %4267 }
 0x5d7   : > { %v2680_v58 = vmul.f32 %v4268_v46, %v2658_v55  ;;  %vm2685_vm2 = vweird.f32 %v4268_v46  ;;  %v2952_v55 = vld [vmem:[%s4467_s19 + $0x58] sm:$0xff] }
 0x5d8   : > { %3936 = vmatmul.msk.f32.vlgmr.msra.gmra.mxu2 %vm858_vm13, %v2721_v15  ;;  %vm2686_vm4 = vmor %vm2684_vm3, %vm2685_vm2  ;;  %2965 = vmatpush.msrb.mxu0 %v2952_v55  ;;  %v2943_v15 = vld [vmem:[%s4467_s19 + $0x10] sm:$0xff] }
 0x5d9   : > { %v2681_v32 = vsub.f32 1.0, %v2680_v58  ;;  %v1325_v43 = vpop.f32.mrf.mxu3  ;;  %v2944_v58 = vld [vmem:[%s4467_s19 + $0x18] sm:$0xff] }
 0x5da   : > { %2966 = vmatpush.msrb.mxu0 %v2951_v28 }
 0x5db   : > { %v2682_v42 = vmul.f32 %v4268_v46, %v2681_v32 }
 0x5dc   : > { %2967 = vmatpush.msrb.mxu0 %v2950_v30 }
 0x5dd   : > { %v2683_v24 = vadd.f32 %v4268_v46, %v2682_v42  ;;  %v2942_v42 = vld [vmem:[%s4467_s19 + $0x8] sm:$0xff] }
 0x5de   : > { %2968 = vmatpush.msrb.mxu0 %v2949_v40 }
 0x5df   : > { %v2687_v61 = vsel %vm2686_vm4, %v4268_v46, %v2683_v24  ;;  %v2945_v46 = vld [vmem:[%s4467_s19 + $0x20] sm:$0xff] }
 0x5e0   : > { %v2692_v22 = vsel %vm2689_vm5, %v2691_v31, %v2687_v61  ;;  %2969 = vmatpush.msrb.mxu0 %v2948_v14 }
 0x5e1   : > { %v2722_v57 = vmul.f32 %v5268_v5, %v2692_v22  ;;  %v1328_v37 = vpop.f32.mrf.mxu3 }
 0x5e2   : > { %v4100_v47 = vpack.i.bf16 %v1328_v37, %v1325_v43  ;;  %2970 = vmatpush.msrb.mxu0 %v2947_v10 }
 0x5e3   : > { %3937 = vmatmul.msk.f32.gmra.mxu2 %vm858_vm13, %v2722_v57 }
 0x5e4   : > { %2971 = vmatpush.msrb.mxu0 %v2946_v48 }
 0x5e6   : > { %2972 = vmatpush.msrb.mxu0 %v2945_v46 }
 0x5e7   : > { %v4072_v32 = vpop.permute.xlu1 %4071 }
 0x5e8   : > { %2973 = vmatpush.msrb.mxu0 %v2944_v58  ;;  %v4073_v57 = vunpack.i.l.bf16 %v4072_v32 }
 0x5e9   : > { %v1569_v50 = vpop.f32.mrf.mxu3 }
 0x5ea   : > { %2974 = vmatpush.msrb.mxu0 %v2943_v15 }
 0x5ec   : > { %2975 = vmatpush.msrb.mxu0 %v2942_v42 }
 0x5ee   : > { %2976 = vmatpush.msrb.mxu0 %v2941_v44 }
 0x5f1   : > { %v1572_v45 = vpop.f32.mrf.mxu3 }
 0x5f2   : > { %v4105_v21 = vpack.i.bf16 %v1572_v45, %v1569_v50  ;;  %v4074_v45 = vunpack.i.h.bf16 %v4072_v32 }
 0x5f9   : > { %v1813_v16 = vpop.f32.mrf.mxu3 }
 0x601   : > { %v1816_v5 = vpop.f32.mrf.mxu3 }
 0x602   : > { %v4110_v12 = vpack.i.bf16 %v1816_v5, %v1813_v16 }
 0x609   : > { %v2057_v29 = vpop.f32.mrf.mxu3 }
 0x611   : > { %v2060_v3 = vpop.f32.mrf.mxu3 }
 0x612   : > { %v4120_v11 = vpack.i.bf16 %v2060_v3, %v2057_v29 }
 0x613   : > { %v1537_v51 = vpop.f32.mrf.mxu2 }
 0x614   : > { %v4075_v39 = vpack.i.bf16 %v1537_v51, %v1534_v41  ;;  %v2907_v51 = vsel %vm858_vm13, %v5586_v52, %v4073_v57  ;;  %v2908_v52 = vsel %vm858_vm13, %v5590_v59, %v4074_v45 }
 0x616   : > { %4076 = vrot.lane.b32.xlu2 %v4075_v39, %s4359_s25 }
 0x61b   : > { %v1778_v38 = vpop.f32.mrf.mxu2 }
 0x623   : > { %v1781_v19 = vpop.f32.mrf.mxu2 }
 0x624   : > { %v4080_v54 = vpack.i.bf16 %v1781_v19, %v1778_v38 }
 0x626   : > { %4081 = vrot.lane.b32.xlu1 %v4080_v54, %s4358_s17 }
 0x62b   : > { %v2022_v9 = vpop.f32.mrf.mxu2 }
 0x62d   : > { %v2301_v7 = vpop.f32.mrf.mxu3 }
 0x633   : > { %v2025_v0 = vpop.f32.mrf.mxu2 }
 0x634   : > { %v4085_v63 = vpack.i.bf16 %v2025_v0, %v2022_v9 }
 0x635   : > { %v2304_v23 = vpop.f32.mrf.mxu3 }
 0x636   : > { %4086 = vrot.lane.b32.xlu2 %v4085_v63, %s4357_s27 }
 0x63b   : > { %v2266_v25 = vpop.f32.mrf.mxu2 }
 0x63d   : > { %v2545_v27 = vpop.f32.mrf.mxu3 }
 0x63e   : > { %4106 = vrot.lane.b32.xlu2 %v4105_v21, %s4359_s25 }
 0x643   : > { %v2269_v4 = vpop.f32.mrf.mxu2 }
 0x644   : > { %v4090_v34 = vpack.i.bf16 %v2269_v4, %v2266_v25 }
 0x645   : > { %v2548_v17 = vpop.f32.mrf.mxu3 }
 0x646   : > { %4091 = vrot.lane.b32.xlu1 %v4090_v34, %s4356_s20 }
 0x64b   : > { %v2510_v1 = vpop.f32.mrf.mxu2 }
 0x64d   : > { %v2789_v13 = vpop.f32.mrf.mxu3 }
 0x64e   : > { %4101 = vrot.lane.b32.xlu1 %v4100_v47, %s4360_s22 }
 0x653   : > { %v2513_v36 = vpop.f32.mrf.mxu2 }
 0x654   : > { %v4095_v6 = vpack.i.bf16 %v2513_v36, %v2510_v1 }
 0x655   : > { %v2792_v18 = vpop.f32.mrf.mxu3 }
 0x656   : > { %4096 = vrot.lane.b32.xlu0 %v4095_v6, %s4355_s28  ;;  %4111 = vrot.lane.b32.xlu1 %v4110_v12, %s4358_s17 }
 0x65b   : > { %v2754_v26 = vpop.f32.mrf.mxu2 }
 0x65e   : > { %2867 = vrot.lane.b32.xlu0 %v2301_v7, %s4356_s20  ;;  %2883 = vrot.lane.b32.xlu1 %v2545_v27, %s4355_s28 }
 0x666   : > { %v2757_v35 = vpop.f32.mrf.mxu2  ;;  %2869 = vrot.lane.b32.xlu0 %v2304_v23, %s4356_s20  ;;  %2885 = vrot.lane.b32.xlu1 %v2548_v17, %s4355_s28 }
 0x667   : > { %v4115_v2 = vpack.i.bf16 %v2757_v35, %v2754_v26 }
 0x669   : > { %4116 = vrot.lane.b32.xlu2 %v4115_v2, %s4354_s18 }
 0x670   : > { %v4077_v60 = vpop.permute.xlu2 %4076 }
 0x671   : > { %4121 = vrot.lane.b32.xlu2 %v4120_v11, %s4357_s27  ;;  %v4078_v37 = vunpack.i.l.bf16 %v4077_v60  ;;  %v4079_v19 = vunpack.i.h.bf16 %v4077_v60 }
 0x673   : > { %v2912_v39 = vsel %vm2911_vm6, %v2907_v51, %v4078_v37  ;;  %v2913_v3 = vsel %vm2911_vm6, %v2908_v52, %v4079_v19  ;;  %v4294_v51 = vld [vmem:[#allocation2] sm:$0xff]  ;;  %v3121_v52 = vld [vmem:[%s4490_s4 + $0xf8] sm:$0xff] }
 0x674   : > { %3157 = vmatpush.msrb.mxu2 %v3121_v52 }
 0x679   : > { %2899 = vrot.lane.b32.xlu2 %v2789_v13, %s4354_s18 }
 0x681   : > { %2901 = vrot.lane.b32.xlu2 %v2792_v18, %s4354_s18  ;;  %s6148_s18 = scalar_lea.vmem %s6109_s7, %s4452_s26 }
 0x690   : > { %v4087_v31 = vpop.permute.xlu2 %4086 }
 0x691   : > { %v4088_v54 = vunpack.i.l.bf16 %v4087_v31  ;;  %v4089_v23 = vunpack.i.h.bf16 %v4087_v31 }
 0x698   : > { %v4082_v24 = vpop.permute.xlu1 %4081  ;;  %v4107_v22 = vpop.permute.xlu2 %4106 }
 0x699   : > { %v4083_v41 = vunpack.i.l.bf16 %v4082_v24  ;;  %v4084_v5 = vunpack.i.h.bf16 %v4082_v24  ;;  %v4108_v35 = vunpack.i.l.bf16 %v4107_v22  ;;  %v4109_v14 = vunpack.i.h.bf16 %v4107_v22 }
 0x69b   : > { %v2917_v38 = vsel %vm2916_vm7, %v2912_v39, %v4083_v41  ;;  %v2918_v34 = vsel %vm2916_vm7, %v2913_v3, %v4084_v5 }
 0x69c   : > { %v2922_v0 = vsel %vm2921_vm8, %v2917_v38, %v4088_v54  ;;  %v2923_v59 = vsel %vm2921_vm8, %v2918_v34, %v4089_v23 }
 0x6b8   : > { %v4092_v61 = vpop.permute.xlu1 %4091 }
 0x6b9   : > { %v4093_v16 = vunpack.i.l.bf16 %v4092_v61  ;;  %v4094_v7 = vunpack.i.h.bf16 %v4092_v61  ;;  %v4127_v61 = vld [vmem:[%s6147_s15] ss:$0 sm:$0xff] }
 0x6bb   : > { %v2927_v29 = vsel %vm2926_vm9, %v2922_v0, %v4093_v16  ;;  %v2928_v26 = vsel %vm2926_vm9, %v2923_v59, %v4094_v7  ;;  %v4295_v16 = vld [vmem:[#allocation2 + $0x18] sm:$0xff] }
 0x6c0   : > { %v4102_v43 = vpop.permute.xlu1 %4101 }
 0x6c1   : > { %v4103_v1 = vunpack.i.l.bf16 %v4102_v43  ;;  %v4104_v56 = vunpack.i.h.bf16 %v4102_v43  ;;  %v4293_v43 = vld [vmem:[#allocation2 + $0x10] sm:$0xff] }
 0x6c3   : > { %v4117_v50 = vpop.permute.xlu2 %4116  ;;  %v2909_v6 = vsel %vm858_vm13, %v5594_v8, %v4103_v1  ;;  %v2910_v30 = vsel %vm858_vm13, %v5596_v49, %v4104_v56  ;;  %v3112_v56 = vld [vmem:[%s4490_s4 + $0xb0] sm:$0xff] }
 0x6c4   : > { %v4118_v25 = vunpack.i.l.bf16 %v4117_v50  ;;  %v4119_v13 = vunpack.i.h.bf16 %v4117_v50  ;;  %v2914_v33 = vsel %vm2911_vm6, %v2909_v6, %v4108_v35  ;;  %v2915_v46 = vsel %vm2911_vm6, %v2910_v30, %v4109_v14  ;;  %v3107_v30 = vld [vmem:[%s4490_s4 + $0x88] sm:$0xff]  ;;  %v3105_v14 = vld [vmem:[%s4490_s4 + $0x78] sm:$0xff] }
 0x6c8   : > { %v4097_v9 = vpop.permute.xlu0 %4096  ;;  %v4112_v21 = vpop.permute.xlu1 %4111 }
 0x6c9   : > { %v4098_v63 = vunpack.i.l.bf16 %v4097_v9  ;;  %v4099_v36 = vunpack.i.h.bf16 %v4097_v9  ;;  %v4113_v27 = vunpack.i.l.bf16 %v4112_v21  ;;  %v4114_v40 = vunpack.i.h.bf16 %v4112_v21  ;;  %v4296_v9 = vld [vmem:[#allocation2 + $0x8] sm:$0xff] }
 0x6ca   : > { %v3119_v21 = vld [vmem:[%s4490_s4 + $0xe8] sm:$0xff] }
 0x6cb   : > { %v2932_v4 = vsel %vm2931_vm10, %v2927_v29, %v4098_v63  ;;  %v4122_v12 = vpop.permute.xlu2 %4121  ;;  %v2933_v11 = vsel %vm2931_vm10, %v2928_v26, %v4099_v36  ;;  %v2919_v53 = vsel %vm2916_vm7, %v2914_v33, %v4113_v27  ;;  %v2920_v15 = vsel %vm2916_vm7, %v2915_v46, %v4114_v40  ;;  %v3120_v63 = vld [vmem:[%s4490_s4 + $0xf0] sm:$0xff]  ;;  %v3118_v29 = vld [vmem:[%s4490_s4 + $0xe0] sm:$0xff]  ;;  %3158 = vmatpush.msrb.mxu2 %v3119_v21  ;;  %v3115_v33 = vld [vmem:[%s4490_s4 + $0xc8] sm:$0xff] }
 0x6cc   : > { %v2937_v47 = vsel %vm2936_vm11, %v2932_v4, %v4118_v25  ;;  %v4123_v17 = vunpack.i.l.bf16 %v4122_v12  ;;  %v2938_v62 = vsel %vm2936_vm11, %v2933_v11, %v4119_v13  ;;  %v4124_v10 = vunpack.i.h.bf16 %v4122_v12  ;;  %3128 = vmatpush.msrb.mxu1 %v3120_v63  ;;  %v3117_v11 = vld [vmem:[%s4490_s4 + $0xd8] sm:$0xff]  ;;  %v3114_v13 = vld [vmem:[%s4490_s4 + $0xc0] sm:$0xff]  ;;  %v3104_v40 = vld [vmem:[%s4490_s4 + $0x70] sm:$0xff] }
 0x6cd   : > { %2977 = vmatmul.f32.vlgmr.msrb.gmra.mxu0 %v2937_v47  ;;  %3159 = vmatpush.msrb.mxu2 %v3117_v11  ;;  %v3100_v46 = vld [vmem:[%s4490_s4 + $0x50] sm:$0xff] }
 0x6ce   : > { %v2924_v55 = vsel %vm2921_vm8, %v2919_v53, %v4123_v17  ;;  %v2925_v60 = vsel %vm2921_vm8, %v2920_v15, %v4124_v10  ;;  %3129 = vmatpush.msrb.mxu1 %v3118_v29  ;;  %v3113_v53 = vld [vmem:[%s4490_s4 + $0xb8] sm:$0xff]  ;;  %v3102_v10 = vld [vmem:[%s4490_s4 + $0x60] sm:$0xff] }
 0x6cf   : > { %3160 = vmatpush.msrb.mxu2 %v3115_v33  ;;  %v3098_v15 = vld [vmem:[%s4490_s4 + $0x40] sm:$0xff] }
 0x6d0   : > { %v2868_v2 = vpop.permute.xlu0 %2867  ;;  %v2884_v18 = vpop.permute.xlu1 %2883 }
 0x6d1   : > { %v2929_v8 = vsel %vm2926_vm9, %v2924_v55, %v2868_v2  ;;  %v3116_v2 = vld [vmem:[%s4490_s4 + $0xd0] sm:$0xff]  ;;  %3161 = vmatpush.msrb.mxu2 %v3113_v53 }
 0x6d2   : > { %v2934_v48 = vsel %vm2931_vm10, %v2929_v8, %v2884_v18  ;;  %3130 = vmatpush.msrb.mxu1 %v3116_v2  ;;  %v3110_v18 = vld [vmem:[%s4490_s4 + $0xa0] sm:$0xff]  ;;  %v3108_v55 = vld [vmem:[%s4490_s4 + $0x90] sm:$0xff]  ;;  %v3109_v8 = vld [vmem:[%s4490_s4 + $0x98] sm:$0xff] }
 0x6d3   : > { %v2900_v28 = vpop.permute.xlu2 %2899 }
 0x6d4   : > { %v2939_v32 = vsel %vm2936_vm11, %v2934_v48, %v2900_v28  ;;  %3131 = vmatpush.msrb.mxu1 %v3114_v13  ;;  %v3106_v28 = vld [vmem:[%s4490_s4 + $0x80] sm:$0xff]  ;;  %v3103_v48 = vld [vmem:[%s4490_s4 + $0x68] sm:$0xff] }
 0x6d5   : > { %2980 = vmatmul.f32.gmra.mxu0 %v2938_v62  ;;  %v3111_v62 = vld [vmem:[%s4490_s4 + $0xa8] sm:$0xff] }
 0x6d6   : > { %3132 = vmatpush.msrb.mxu1 %v3112_v56  ;;  %3162 = vmatpush.msrb.mxu2 %v3111_v62 }
 0x6d8   : > { %v2870_v58 = vpop.permute.xlu0 %2869  ;;  %v2886_v44 = vpop.permute.xlu1 %2885  ;;  %3133 = vmatpush.msrb.mxu1 %v3110_v18  ;;  %3163 = vmatpush.msrb.mxu2 %v3109_v8 }
 0x6d9   : > { %v2930_v42 = vsel %vm2926_vm9, %v2925_v60, %v2870_v58  ;;  %v3101_v58 = vld [vmem:[%s4490_s4 + $0x58] sm:$0xff]  ;;  %v3096_v60 = vld [vmem:[%s4490_s4 + $0x30] sm:$0xff] }
 0x6da   : > { %v2935_v49 = vsel %vm2931_vm10, %v2930_v42, %v2886_v44  ;;  %3134 = vmatpush.msrb.mxu1 %v3108_v55  ;;  %3164 = vmatpush.msrb.mxu2 %v3107_v30  ;;  %v3097_v42 = vld [vmem:[%s4490_s4 + $0x38] sm:$0xff]  ;;  %v3094_v44 = vld [vmem:[%s4490_s4 + $0x20] sm:$0xff] }
 0x6db   : > { %v2902_v24 = vpop.permute.xlu2 %2901 }
 0x6dc   : > { %v2940_v31 = vsel %vm2936_vm11, %v2935_v49, %v2902_v24  ;;  %3135 = vmatpush.msrb.mxu1 %v3106_v28  ;;  %3165 = vmatpush.msrb.mxu2 %v3105_v14  ;;  %v3095_v49 = vld [vmem:[%s4490_s4 + $0x28] sm:$0xff]  ;;  %v3092_v24 = vld [vmem:[%s4490_s4 + $0x10] sm:$0xff] }
 0x6dd   : > { %2983 = vmatmul.f32.gmra.mxu0 %v2939_v32  ;;  %v3099_v32 = vld [vmem:[%s4490_s4 + $0x48] sm:$0xff] }
 0x6de   : > { %3136 = vmatpush.msrb.mxu1 %v3104_v40  ;;  %3166 = vmatpush.msrb.mxu2 %v3103_v48 }
 0x6e0   : > { %3137 = vmatpush.msrb.mxu1 %v3102_v10  ;;  %3167 = vmatpush.msrb.mxu2 %v3101_v58 }
 0x6e2   : > { %3138 = vmatpush.msrb.mxu1 %v3100_v46  ;;  %3168 = vmatpush.msrb.mxu2 %v3099_v32 }
 0x6e4   : > { %3139 = vmatpush.msrb.mxu1 %v3098_v15  ;;  %3169 = vmatpush.msrb.mxu2 %v3097_v42 }
 0x6e5   : > { %2986 = vmatmul.f32.gmra.mxu0 %v2940_v31  ;;  %v3093_v31 = vld [vmem:[%s4490_s4 + $0x18] sm:$0xff] }
 0x6e6   : > { %3140 = vmatpush.msrb.mxu1 %v3096_v60  ;;  %3170 = vmatpush.msrb.mxu2 %v3095_v49 }
 0x6e8   : > { %3141 = vmatpush.msrb.mxu1 %v3094_v44  ;;  %3171 = vmatpush.msrb.mxu2 %v3093_v31 }
 0x6ea   : > { %3142 = vmatpush.msrb.mxu1 %v3092_v24 }
 0x74a   : > { %v2978_v22 = vpop.f32.mrf.mxu0 }
 0x74b   : > { %v2979_v57 = vadd.f32 %v4127_v61, %v2978_v22  ;;  %v3091_v22 = vld [vmem:[%s4490_s4 + $0x8] sm:$0xff] }
 0x74c   : > { %3172 = vmatpush.msrb.mxu2 %v3091_v22 }
 0x74d   : > { %v5667_v37 = vadd.f32 %v4293_v43, %v2979_v57 }
 0x74f   : > { %2996 = vadd.xlane.f32.xlu0 %v5667_v37 }
 0x752   : > { %v2981_v41 = vpop.f32.mrf.mxu0 }
 0x753   : > { %v2982_v50 = vadd.f32 %v4127_v61, %v2981_v41 }
 0x755   : > { %v5670_v39 = vadd.f32 %v4294_v51, %v2982_v50 }
 0x757   : > { %2998 = vadd.xlane.f32.xlu1 %v5670_v39 }
 0x75a   : > { %v2984_v45 = vpop.f32.mrf.mxu0 }
 0x75b   : > { %v2985_v38 = vadd.f32 %v4127_v61, %v2984_v45 }
 0x75d   : > { %v5673_v19 = vadd.f32 %v4295_v16, %v2985_v38 }
 0x75f   : > { %3000 = vadd.xlane.f32.xlu2 %v5673_v19 }
 0x762   : > { %v2987_v54 = vpop.f32.mrf.mxu0 }
 0x763   : > { %v2988_v5 = vadd.f32 %v4127_v61, %v2987_v54  ;;  %v3090_v61 = vld [vmem:[%s4490_s4] sm:$0xff] }
 0x764   : > { %3143 = vmatpush.msrb.mxu1 %v3090_v61  ;;  %v3553_v61 = vld [vmem:[%s4501_s12 + $0x78] sm:$0xff] }
 0x765   : > { %v5676_v0 = vadd.f32 %v4296_v9, %v2988_v5  ;;  %3574 = vmatpush.msrb.mxu3 %v3553_v61  ;;  %v3546_v61 = vld [vmem:[%s4501_s12 + $0x40] sm:$0xff] }
 0x767   : > { %3002 = vadd.xlane.f32.xlu0 %v5676_v0 }
 0x7c2   : > { %v2997_v25 = vpop.xlane.xlu0 %2996 }
 0x7c3   : > { %v3004_v3 = vmul.f32 %v2997_v25, %v4526_v20 }
 0x7c5   : > { %v5685_v4 = vsub.f32 %v5667_v37, %v3004_v3 }
 0x7c7   : > { %v3012_v34 = vmul.f32 %v5685_v4, %v5685_v4 }
 0x7c9   : > { %3016 = vadd.xlane.f32.xlu1 %v3012_v34  ;;  %v4128_v34 = vld [vmem:[%s582_s30] ss:$0 sm:$0xff] }
 0x7ca   : > { %v2999_v7 = vpop.xlane.xlu1 %2998 }
 0x7cb   : > { %v3005_v1 = vmul.f32 %v2999_v7, %v4526_v20 }
 0x7cd   : > { %v5691_v47 = vsub.f32 %v5670_v39, %v3005_v1 }
 0x7cf   : > { %v3013_v23 = vmul.f32 %v5691_v47, %v5691_v47 }
 0x7d1   : > { %3018 = vadd.xlane.f32.xlu2 %v3013_v23 }
 0x7d2   : > { %v3001_v36 = vpop.xlane.xlu2 %3000 }
 0x7d3   : > { %v3006_v12 = vmul.f32 %v3001_v36, %v4526_v20  ;;  %v4129_v36 = vld [vmem:[%s6148_s18] ss:$0 sm:$0xff] }
 0x7d5   : > { %v5697_v59 = vsub.f32 %v5673_v19, %v3006_v12 }
 0x7d7   : > { %v3014_v6 = vmul.f32 %v5697_v59, %v5697_v59 }
 0x7d9   : > { %3020 = vadd.xlane.f32.xlu0 %v3014_v6 }
 0x7da   : > { %v3003_v27 = vpop.xlane.xlu0 %3002 }
 0x7db   : > { %v3007_v26 = vmul.f32 %v3003_v27, %v4526_v20 }
 0x7dd   : > { %v5703_v35 = vsub.f32 %v5676_v0, %v3007_v26 }
 0x7df   : > { %v3015_v17 = vmul.f32 %v5703_v35, %v5703_v35 }
 0x7e1   : > { %3022 = vadd.xlane.f32.xlu1 %v3015_v17 }
 0x83c   : > { %v3017_v57 = vpop.xlane.xlu1 %3016 }
 0x83d   : > { %v3024_v43 = vmul.f32 %v3017_v57, %v4526_v20 }
 0x83f   : > { %v3028_v41 = vadd.f32 1e-05, %v3024_v43 }
 0x841   : > { %4269 = vrsqrt.f32 %v3028_v41  ;;  %vm3038_vm12 = vweird.f32 %v3028_v41 }
 0x844   : > { %v3019_v50 = vpop.xlane.xlu2 %3018 }
 0x845   : > { %v3025_v51 = vmul.f32 %v3019_v50, %v4526_v20 }
 0x847   : > { %v4270_v45 = vpop.eup %4269  ;;  %v3029_v38 = vadd.f32 1e-05, %v3025_v51 }
 0x848   : > { %v3033_v16 = vmul.f32 %v4270_v45, %v3028_v41  ;;  %vm3039_vm13 = vweird.f32 %v4270_v45 }
 0x849   : > { %4271 = vrsqrt.f32 %v3029_v38  ;;  %vm3040_vm14 = vmor %vm3038_vm12, %vm3039_vm13  ;;  %vm3048_vm0 = vweird.f32 %v3029_v38 }
 0x84a   : > { %v3034_v54 = vmul.f32 %v4270_v45, %v3033_v16 }
 0x84c   : > { %v3035_v5 = vmul.f32 0.5, %v3034_v54  ;;  %v3021_v9 = vpop.xlane.xlu0 %3020 }
 0x84d   : > { %v3026_v63 = vmul.f32 %v3021_v9, %v4526_v20 }
 0x84e   : > { %v3036_v52 = vsub.f32 1.5, %v3035_v5 }
 0x84f   : > { %v4272_v29 = vpop.eup %4271  ;;  %v3030_v25 = vadd.f32 1e-05, %v3026_v63  ;;  %v3551_v63 = vld [vmem:[%s4501_s12 + $0x68] sm:$0xff] }
 0x850   : > { %v3037_v21 = vmul.f32 %v4270_v45, %v3036_v52  ;;  %v3043_v3 = vmul.f32 %v4272_v29, %v3029_v38  ;;  %vm3049_vm15 = vweird.f32 %v4272_v29  ;;  %v3552_v38 = vld [vmem:[%s4501_s12 + $0x70] sm:$0xff] }
 0x851   : > { %4273 = vrsqrt.f32 %v3030_v25  ;;  %vm3050_vm1 = vmor %vm3048_vm0, %vm3049_vm15  ;;  %vm3058_vm3 = vweird.f32 %v3030_v25  ;;  %3575 = vmatpush.msrb.mxu3 %v3552_v38 }
 0x852   : > { %v3041_v7 = vsel %vm3040_vm14, %v4270_v45, %v3037_v21  ;;  %v3044_v1 = vmul.f32 %v4272_v29, %v3043_v3  ;;  %v3550_v3 = vld [vmem:[%s4501_s12 + $0x60] sm:$0xff] }
 0x853   : > { %v3072_v23 = vmul.f32 %v3041_v7, %v5685_v4  ;;  %3576 = vmatpush.msrb.mxu3 %v3551_v63  ;;  %v3545_v63 = vld [vmem:[%s4501_s12 + $0x38] sm:$0xff] }
 0x854   : > { %v3045_v12 = vmul.f32 0.5, %v3044_v1  ;;  %v3023_v6 = vpop.xlane.xlu1 %3022 }
 0x855   : > { %v3027_v27 = vmul.f32 %v3023_v6, %v4526_v20  ;;  %v3079_v26 = vmul.f32 %v4128_v34, %v3072_v23  ;;  %3577 = vmatpush.msrb.mxu3 %v3550_v3 }
 0x856   : > { %v3046_v17 = vsub.f32 1.5, %v3045_v12 }
 0x857   : > { %v4274_v2 = vpop.eup %4273  ;;  %v3031_v11 = vadd.f32 1e-05, %v3027_v27  ;;  %v3086_v13 = vadd.f32 %v4129_v36, %v3079_v26 }
 0x858   : > { %v3047_v33 = vmul.f32 %v4272_v29, %v3046_v17  ;;  %v3053_v56 = vmul.f32 %v4274_v2, %v3030_v25  ;;  %vm3059_vm2 = vweird.f32 %v4274_v2 }
 0x859   : > { %4275 = vrsqrt.f32 %v3031_v11  ;;  %3144 = vmatmul.f32.vlgmr.msrb.gmra.mxu1 %v3086_v13  ;;  %3173 = vmatmul.f32.vlgmr.msrb.gmra.mxu2 %v3086_v13  ;;  %vm3060_vm4 = vmor %vm3058_vm3, %vm3059_vm2  ;;  %vm3068_vm6 = vweird.f32 %v3031_v11 }
 0x85a   : > { %v3054_v4 = vmul.f32 %v4274_v2, %v3053_v56  ;;  %v3051_v53 = vsel %vm3050_vm1, %v4272_v29, %v3047_v33 }
 0x85b   : > { %v3073_v18 = vmul.f32 %v3051_v53, %v5691_v47 }
 0x85c   : > { %v3055_v62 = vmul.f32 0.5, %v3054_v4 }
 0x85d   : > { %v3080_v55 = vmul.f32 %v4128_v34, %v3073_v18 }
 0x85e   : > { %v3056_v20 = vsub.f32 1.5, %v3055_v62 }
 0x85f   : > { %v4276_v8 = vpop.eup %4275  ;;  %v3087_v28 = vadd.f32 %v4129_v36, %v3080_v55  ;;  %v3549_v55 = vld [vmem:[%s4501_s12 + $0x58] sm:$0xff] }
 0x860   : > { %v3057_v30 = vmul.f32 %v4274_v2, %v3056_v20  ;;  %v3063_v40 = vmul.f32 %v4276_v8, %v3031_v11  ;;  %vm3069_vm5 = vweird.f32 %v4276_v8  ;;  %v3568_v20 = vld [vmem:[%s4501_s12 + $0xf0] sm:$0xff]  ;;  %3578 = vmatpush.msrb.mxu3 %v3549_v55 }
 0x861   : > { %3147 = vmatmul.f32.gmra.mxu1 %v3087_v28  ;;  %3176 = vmatmul.f32.gmra.mxu2 %v3087_v28  ;;  %vm3070_vm7 = vmor %vm3068_vm6, %vm3069_vm5 }
 0x862   : > { %v3064_v14 = vmul.f32 %v4276_v8, %v3063_v40  ;;  %v3061_v10 = vsel %vm3060_vm4, %v4274_v2, %v3057_v30 }
 0x863   : > { %v3074_v48 = vmul.f32 %v3061_v10, %v5697_v59  ;;  %v3122_v59 = vld [vmem:[%s4496_s24] sm:$0x3]  ;;  %v3567_v10 = vld [vmem:[%s4501_s12 + $0xe8] sm:$0xff] }
 0x864   : > { %v3065_v46 = vmul.f32 0.5, %v3064_v14  ;;  %v5754_v24 = vperm.slane %v3122_v59, 0  ;;  %v5763_v43 = vperm.slane %v3122_v59, 1  ;;  %v3548_v14 = vld [vmem:[%s4501_s12 + $0x50] sm:$0xff] }
 0x865   : > { %v3081_v58 = vmul.f32 %v4128_v34, %v3074_v48  ;;  %3579 = vmatpush.msrb.mxu3 %v3548_v14 }
 0x866   : > { %v3066_v47 = vsub.f32 1.5, %v3065_v46 }
 0x867   : > { %v3088_v15 = vadd.f32 %v4129_v36, %v3081_v58 }
 0x868   : > { %v3067_v32 = vmul.f32 %v4276_v8, %v3066_v47 }
 0x869   : > { %3150 = vmatmul.f32.gmra.mxu1 %v3088_v15  ;;  %3179 = vmatmul.f32.gmra.mxu2 %v3088_v15  ;;  %v3547_v15 = vld [vmem:[%s4501_s12 + $0x48] sm:$0xff] }
 0x86a   : > { %v3071_v60 = vsel %vm3070_vm7, %v4276_v8, %v3067_v32  ;;  %v3566_v32 = vld [vmem:[%s4501_s12 + $0xe0] sm:$0xff]  ;;  %3580 = vmatpush.msrb.mxu3 %v3547_v15 }
 0x86b   : > { %v3075_v42 = vmul.f32 %v3071_v60, %v5703_v35 }
 0x86c   : > { %3581 = vmatpush.msrb.mxu3 %v3546_v61 }
 0x86d   : > { %v3082_v44 = vmul.f32 %v4128_v34, %v3075_v42  ;;  %v3569_v34 = vld [vmem:[%s4501_s12 + $0xf8] sm:$0xff] }
 0x86e   : > { %3603 = vmatpush.msra.mxu0 %v3569_v34  ;;  %3582 = vmatpush.msrb.mxu3 %v3545_v63 }
 0x86f   : > { %v3089_v49 = vadd.f32 %v4129_v36, %v3082_v44 }
 0x870   : > { %3604 = vmatpush.msra.mxu0 %v3568_v20 }
 0x871   : > { %3153 = vmatmul.f32.gmra.mxu1 %v3089_v49  ;;  %3182 = vmatmul.f32.gmra.mxu2 %v3089_v49 }
 0x872   : > { %3605 = vmatpush.msra.mxu0 %v3567_v10  ;;  %v3541_v10 = vld [vmem:[%s4501_s12 + $0x18] sm:$0xff] }
 0x874   : > { %3606 = vmatpush.msra.mxu0 %v3566_v32 }
 0x8d6   : > { %v3145_v31 = vpop.f32.mrf.mxu1 }
 0x8d7   : > { %v5758_v22 = vadd.f32 %v3145_v31, %v5754_v24 }
 0x8d9   : > { %v5761_v57 = vmul.f32 0.70710677, %v5758_v22 }
 0x8db   : > { %v3202_v35 = vmul.f32 %v5761_v57, %v5761_v57 }
 0x8dc   : > { %v3174_v41 = vpop.f32.mrf.mxu2 }
 0x8dd   : > { %v5767_v50 = vmin.f32 %v3202_v35, 16.0  ;;  %v5770_v51 = vadd.f32 %v3174_v41, %v5763_v43  ;;  %v3565_v35 = vld [vmem:[%s4501_s12 + $0xd8] sm:$0xff] }
 0x8de   : > { %v3148_v45 = vpop.f32.mrf.mxu1  ;;  %3607 = vmatpush.msra.mxu0 %v3565_v35  ;;  %v5877_v35 = vmul.f32 0.5, %v5758_v22 }
 0x8df   : > { %v3204_v16 = vmul.f32 2.1237322e-06, %v5767_v50  ;;  %v3215_v54 = vmul.f32 3.8918573e-05, %v5767_v50  ;;  %v5776_v5 = vadd.f32 %v3148_v45, %v5754_v24  ;;  %v5779_v9 = vmul.f32 0.70710677, %v5770_v51 }
 0x8e1   : > { %v3205_v52 = vadd.f32 0.00028619796, %v3204_v16  ;;  %v3216_v29 = vadd.f32 0.001143296, %v3215_v54  ;;  %v3242_v25 = vmul.f32 %v5779_v9, %v5779_v9  ;;  %v5785_v21 = vmul.f32 0.70710677, %v5776_v5 }
 0x8e3   : > { %v3206_v7 = vmul.f32 %v3205_v52, %v5767_v50  ;;  %v3217_v1 = vmul.f32 %v3216_v29, %v5767_v50  ;;  %v5791_v23 = vmin.f32 %v3242_v25, 16.0  ;;  %v3282_v27 = vmul.f32 %v5785_v21, %v5785_v21  ;;  %v3564_v25 = vld [vmem:[%s4501_s12 + $0xd0] sm:$0xff] }
 0x8e4   : > { %v3177_v36 = vpop.f32.mrf.mxu2  ;;  %3608 = vmatpush.msra.mxu0 %v3564_v25 }
 0x8e5   : > { %v3207_v12 = vadd.f32 0.0036580483, %v3206_v7  ;;  %v3218_v6 = vadd.f32 0.014752088, %v3217_v1  ;;  %v3244_v26 = vmul.f32 2.1237322e-06, %v5791_v23  ;;  %v5798_v2 = vadd.f32 %v3177_v36, %v5763_v43 }
 0x8e6   : > { %v3255_v17 = vmul.f32 3.8918573e-05, %v5791_v23  ;;  %v3151_v11 = vpop.f32.mrf.mxu1  ;;  %v5805_v62 = vmin.f32 %v3282_v27, 16.0  ;;  %v3544_v1 = vld [vmem:[%s4501_s12 + $0x30] sm:$0xff]  ;;  %v3563_v36 = vld [vmem:[%s4501_s12 + $0xc8] sm:$0xff] }
 0x8e7   : > { %v3208_v13 = vmul.f32 %v3207_v12, %v5767_v50  ;;  %v3219_v33 = vmul.f32 %v3218_v6, %v5767_v50  ;;  %v3245_v56 = vadd.f32 0.00028619796, %v3244_v26  ;;  %v5803_v53 = vadd.f32 %v3151_v11, %v5754_v24  ;;  %3583 = vmatpush.msrb.mxu3 %v3544_v1  ;;  %3609 = vmatpush.msra.mxu0 %v3563_v36  ;;  %v3538_v1 = vld [vmem:[%s4501_s12] sm:$0xff]  ;;  %v3557_v36 = vld [vmem:[%s4501_s12 + $0x98] sm:$0xff] }
 0x8e8   : > { %v3256_v4 = vadd.f32 0.001143296, %v3255_v17  ;;  %v5812_v40 = vmul.f32 0.70710677, %v5798_v2  ;;  %v3284_v42 = vmul.f32 2.1237322e-06, %v5805_v62 }
 0x8e9   : > { %v3220_v18 = vadd.f32 0.112945676, %v3219_v33  ;;  %v3209_v8 = vadd.f32 0.05243302, %v3208_v13  ;;  %v3246_v28 = vmul.f32 %v3245_v56, %v5791_v23  ;;  %v5818_v46 = vmul.f32 0.70710677, %v5803_v53 }
 0x8ea   : > { %v3257_v30 = vmul.f32 %v3256_v4, %v5791_v23  ;;  %v3322_v31 = vmul.f32 %v5812_v40, %v5812_v40  ;;  %v3285_v29 = vadd.f32 0.00028619796, %v3284_v42  ;;  %v3543_v17 = vld [vmem:[%s4501_s12 + $0x28] sm:$0xff]  ;;  %v3562_v13 = vld [vmem:[%s4501_s12 + $0xc0] sm:$0xff]  ;;  %v3540_v42 = vld [vmem:[%s4501_s12 + $0x10] sm:$0xff] }
 0x8eb   : > { %v3221_v48 = vmul.f32 %v3220_v18, %v5767_v50  ;;  %v3247_v58 = vadd.f32 0.0036580483, %v3246_v28  ;;  %v3362_v44 = vmul.f32 %v5818_v46, %v5818_v46  ;;  %v3210_v49 = vmul.f32 %v3209_v8, %v5767_v50  ;;  %3584 = vmatpush.msrb.mxu3 %v3543_v17  ;;  %3610 = vmatpush.msra.mxu0 %v3562_v13  ;;  %v3542_v4 = vld [vmem:[%s4501_s12 + $0x20] sm:$0xff]  ;;  %v3561_v18 = vld [vmem:[%s4501_s12 + $0xb8] sm:$0xff] }
 0x8ec   : > { %v3258_v47 = vadd.f32 0.014752088, %v3257_v30  ;;  %v3180_v54 = vpop.f32.mrf.mxu2  ;;  %v5840_v7 = vmin.f32 %v3322_v31, 16.0  ;;  %v3286_v11 = vmul.f32 %v3285_v29, %v5805_v62 }
 0x8ed   : > { %v3222_v60 = vadd.f32 0.4994258, %v3221_v48  ;;  %v3248_v45 = vmul.f32 %v3247_v58, %v5791_v23  ;;  %v5833_v38 = vmin.f32 %v3362_v44, 16.0  ;;  %v3211_v3 = vadd.f32 0.18741608, %v3210_v49  ;;  %3585 = vmatpush.msrb.mxu3 %v3542_v4  ;;  %3611 = vmatpush.msra.mxu0 %v3561_v18  ;;  %v3560_v48 = vld [vmem:[%s4501_s12 + $0xb0] sm:$0xff] }
 0x8ee   : > { %v3259_v59 = vmul.f32 %v3258_v47, %v5791_v23  ;;  %v5847_v27 = vadd.f32 %v3180_v54, %v5763_v43  ;;  %v3324_v56 = vmul.f32 2.1237322e-06, %v5840_v7  ;;  %v3154_v14 = vpop.f32.mrf.mxu1  ;;  %v3287_v47 = vadd.f32 0.0036580483, %v3286_v11  ;;  %v3559_v44 = vld [vmem:[%s4501_s12 + $0xa8] sm:$0xff]  ;;  %v3558_v54 = vld [vmem:[%s4501_s12 + $0xa0] sm:$0xff] }
 0x8ef   : > { %v3223_v41 = vmul.f32 %v3222_v60, %v5767_v50  ;;  %v3249_v12 = vadd.f32 0.05243302, %v3248_v45  ;;  %v3375_v6 = vmul.f32 3.8918573e-05, %v5833_v38  ;;  %v3212_v55 = vmul.f32 %v3211_v3, %v5767_v50  ;;  %3586 = vmatpush.msrb.mxu3 %v3541_v10  ;;  %3612 = vmatpush.msra.mxu0 %v3560_v48  ;;  %v3556_v4 = vld [vmem:[%s4501_s12 + $0x90] sm:$0xff]  ;;  %v3555_v10 = vld [vmem:[%s4501_s12 + $0x88] sm:$0xff] }
 0x8f0   : > { %v3260_v16 = vadd.f32 0.112945676, %v3259_v59  ;;  %v5859_v28 = vmul.f32 0.70710677, %v5847_v27  ;;  %v3364_v60 = vmul.f32 2.1237322e-06, %v5833_v38  ;;  %v5874_v61 = vadd.f32 %v3154_v14, %v5754_v24 }
 0x8f1   : > { %v5836_v52 = vadd.f32 1.0, %v3223_v41  ;;  %v3250_v20 = vmul.f32 %v3249_v12, %v5791_v23  ;;  %v3376_v8 = vadd.f32 0.001143296, %v3375_v6  ;;  %v3213_v49 = vadd.f32 1.1283791, %v3212_v55  ;;  %3587 = vmatpush.msrb.mxu3 %v3540_v42  ;;  %3613 = vmatpush.msra.mxu0 %v3559_v44 }
 0x8f2   : > { %v3261_v34 = vmul.f32 %v3260_v16, %v5791_v23  ;;  %v3402_v50 = vmul.f32 %v5859_v28, %v5859_v28  ;;  %v3325_v31 = vadd.f32 0.00028619796, %v3324_v56  ;;  %v3539_v16 = vld [vmem:[%s4501_s12 + $0x8] sm:$0xff]  ;;  %v5884_v25 = vmul.f32 %v3287_v47, %v5805_v62 }
 0x8f3   : > { %4277 = vrcp.f32 %v5836_v52  ;;  %v3377_v15 = vmul.f32 %v3376_v8, %v5833_v38  ;;  %v3251_v59 = vadd.f32 0.18741608, %v3250_v20  ;;  %v3234_v63 = vand.u32 2147483647, %v5836_v52  ;;  %3588 = vmatpush.msrb.mxu3 %v3539_v16  ;;  %3614 = vmatpush.msra.mxu0 %v3558_v54 }
 0x8f4   : > { %v3262_v26 = vadd.f32 0.4994258, %v3261_v34  ;;  %v3236_v29 = vand.u32 2147483648, %v5836_v52  ;;  %v5886_v24 = vmin.f32 %v3402_v50, 16.0  ;;  %v3365_v22 = vadd.f32 0.00028619796, %v3364_v60  ;;  %v3183_v20 = vpop.f32.mrf.mxu2 }
 0x8f5   : > { %v3378_v45 = vadd.f32 0.014752088, %v3377_v15  ;;  %v3214_v12 = vmul.f32 %v3213_v49, %v5761_v57  ;;  %v3326_v6 = vmul.f32 %v3325_v31, %v5840_v7  ;;  %v5895_v17 = vmul.f32 0.70710677, %v5874_v61  ;;  %3589 = vmatpush.msrb.mxu3 %v3538_v1  ;;  %3615 = vmatpush.msra.mxu0 %v3557_v36 }
 0x8f6   : > { %v3263_v33 = vmul.f32 %v3262_v26, %v5791_v23  ;;  %v3404_v26 = vmul.f32 2.1237322e-06, %v5886_v24  ;;  %vm3230_vm9 = vweird.f32 %v5836_v52  ;;  %vm3235_vm11 = vcmp.eq.f32.partialorder %v3234_v63, 8.507059e+37 }
 0x8f7   : > { %v3379_v34 = vmul.f32 %v3378_v45, %v5833_v38  ;;  %v3237_v57 = vor.u32 1.1754944e-38, %v3236_v29  ;;  %v3442_v55 = vmul.f32 %v5895_v17, %v5895_v17  ;;  %3616 = vmatpush.msra.mxu0 %v3556_v4  ;;  %v5911_v44 = vadd.f32 %v3183_v20, %v5763_v43 }
 0x8f8   : > { %v5861_v30 = vadd.f32 1.0, %v3263_v33  ;;  %v3252_v33 = vmul.f32 %v3251_v59, %v5791_v23  ;;  %v3366_v23 = vmul.f32 %v3365_v22, %v5833_v38  ;;  %v3405_v15 = vadd.f32 0.00028619796, %v3404_v26 }
 0x8f9   : > { %v4278_v58 = vpop.eup %4277  ;;  %v3380_v56 = vadd.f32 0.112945676, %v3379_v34  ;;  %v5908_v50 = vmin.f32 %v3442_v55, 16.0  ;;  %3617 = vmatpush.msra.mxu0 %v3555_v10  ;;  %v5923_v34 = vmul.f32 0.70710677, %v5911_v44 }
 0x8fa   : > { %v3226_v32 = vmul.f32 %v4278_v58, %v5836_v52  ;;  %4279 = vrcp.f32 %v5861_v30  ;;  %vm3231_vm8 = vweird.f32 %v4278_v58  ;;  %v3276_v52 = vand.u32 2147483648, %v5861_v30 }
 0x8fb   : > { %vm3232_vm10 = vmor %vm3230_vm9, %vm3231_vm8  ;;  %v3381_v14 = vmul.f32 %v3380_v56, %v5833_v38  ;;  %v3253_v60 = vadd.f32 1.1283791, %v3252_v33  ;;  %v3274_v59 = vand.u32 2147483647, %v5861_v30  ;;  %v3455_v31 = vmul.f32 3.8918573e-05, %v5908_v50 }
 0x8fc   : > { %v3227_v41 = vsub.f32 1.0, %v3226_v32  ;;  %vm3270_vm12 = vweird.f32 %v5861_v30  ;;  %v3277_v45 = vor.u32 1.1754944e-38, %v3276_v52  ;;  %v3406_v63 = vmul.f32 %v3405_v15, %v5886_v24 }
 0x8fd   : > { %v3382_v42 = vadd.f32 0.4994258, %v3381_v14  ;;  %v3444_v43 = vmul.f32 2.1237322e-06, %v5908_v50  ;;  %v3456_v29 = vadd.f32 0.001143296, %v3455_v31  ;;  %v3482_v20 = vmul.f32 %v5923_v34, %v5923_v34 }
 0x8fe   : > { %v3228_v3 = vmul.f32 %v4278_v58, %v3227_v41  ;;  %v3295_v1 = vmul.f32 3.8918573e-05, %v5805_v62  ;;  %vm3275_vm15 = vcmp.eq.f32.partialorder %v3274_v59, 8.507059e+37  ;;  %v3327_v33 = vadd.f32 0.0036580483, %v3326_v6 }
 0x8ff   : > { %v3383_v16 = vmul.f32 %v3382_v42, %v5833_v38  ;;  %v3367_v56 = vadd.f32 0.0036580483, %v3366_v23  ;;  %v3289_v52 = vadd.f32 0.05243302, %v5884_v25  ;;  %v3415_v15 = vmul.f32 3.8918573e-05, %v5886_v24 }
 0x900   : > { %v4280_v11 = vpop.eup %4279  ;;  %v3229_v13 = vadd.f32 %v4278_v58, %v3228_v3 }
 0x901   : > { %v3266_v18 = vmul.f32 %v4280_v11, %v5861_v30  ;;  %vm3271_vm13 = vweird.f32 %v4280_v11  ;;  %v5920_v22 = vadd.f32 1.0, %v3383_v16  ;;  %v3254_v30 = vmul.f32 %v3253_v60, %v5779_v9 }
 0x902   : > { %v3233_v8 = vsel %vm3232_vm10, %v4278_v58, %v3229_v13  ;;  %v3554_v58 = vld [vmem:[%s4501_s12 + $0x80] sm:$0xff]  ;;  %vm3272_vm14 = vmor %vm3270_vm12, %vm3271_vm13  ;;  %v3296_v9 = vadd.f32 0.001143296, %v3295_v1  ;;  %v3368_v6 = vmul.f32 %v3367_v56, %v5833_v38  ;;  %v5942_v60 = vmin.f32 %v3482_v20, 16.0 }
 0x903   : > { %v3238_v48 = vsel %vm3235_vm11, %v3237_v57, %v3233_v8  ;;  %v3267_v47 = vsub.f32 1.0, %v3266_v18  ;;  %3618 = vmatpush.msra.mxu0 %v3554_v58  ;;  %v3407_v57 = vadd.f32 0.0036580483, %v3406_v63  ;;  %v3445_v18 = vadd.f32 0.00028619796, %v3444_v43 }
 0x904   : > { %v3239_v32 = vmul.f32 %v3238_v48, %v3214_v12  ;;  %v3457_v12 = vmul.f32 %v3456_v29, %v5908_v50  ;;  %4281 = vrcp.f32 %v5920_v22  ;;  %v3297_v14 = vmul.f32 %v3296_v9, %v5805_v62 }
 0x905   : > { %v3268_v49 = vmul.f32 %v4280_v11, %v3267_v47  ;;  %v3446_v48 = vmul.f32 %v3445_v18, %v5908_v50  ;;  %v3335_v47 = vmul.f32 3.8918573e-05, %v5840_v7  ;;  %v3290_v42 = vmul.f32 %v3289_v52, %v5805_v62 }
 0x906   : > { %v3940_v41 = vclamps-f32 %v3239_v32, 1.0  ;;  %v3458_v55 = vadd.f32 0.014752088, %v3457_v12  ;;  %v3369_v59 = vadd.f32 0.05243302, %v3368_v6  ;;  %vm3390_vm1 = vweird.f32 %v5920_v22 }
 0x907   : > { %v3269_v54 = vadd.f32 %v4280_v11, %v3268_v49  ;;  %v3336_v16 = vadd.f32 0.001143296, %v3335_v47  ;;  %v3484_v29 = vmul.f32 2.1237322e-06, %v5942_v60  ;;  %v3495_v12 = vmul.f32 3.8918573e-05, %v5942_v60 }
 0x908   : > { %v3522_v3 = vadd.f32 1.0, %v3940_v41  ;;  %v3459_v23 = vmul.f32 %v3458_v55, %v5908_v50  ;;  %v3298_v41 = vadd.f32 0.014752088, %v3297_v14  ;;  %v3370_v20 = vmul.f32 %v3369_v59, %v5833_v38 }
 0x909   : > { %v3273_v36 = vsel %vm3272_vm14, %v4280_v11, %v3269_v54  ;;  %v3187_v11 = vmul.f32 0.5, %v5770_v51  ;;  %v3408_v51 = vmul.f32 %v3407_v57, %v5886_v24  ;;  %v3416_v54 = vadd.f32 0.001143296, %v3415_v15 }
 0x90a   : > { %v3530_v26 = vmul.f32 %v3522_v3, %v5877_v35  ;;  %v3278_v13 = vsel %vm3275_vm15, %v3277_v45, %v3273_v36  ;;  %v3328_v35 = vmul.f32 %v3327_v33, %v5840_v7  ;;  %v3460_v32 = vadd.f32 0.112945676, %v3459_v23  ;;  %v5945_v58 = vpop.eup %4281 }
 0x90b   : > { %v3279_v4 = vmul.f32 %v3278_v13, %v3254_v30  ;;  %v3447_v45 = vadd.f32 0.0036580483, %v3446_v48  ;;  %v3409_v63 = vadd.f32 0.05243302, %v3408_v51  ;;  %v3299_v3 = vmul.f32 %v3298_v41, %v5805_v62 }
 0x90c   : > { %3590 = vmatmul.f32.vlgmr.msrb.gmra.mxu3 %v3530_v26  ;;  %v3329_v49 = vadd.f32 0.05243302, %v3328_v35  ;;  %v3461_v31 = vmul.f32 %v3460_v32, %v5908_v50  ;;  %v3386_v1 = vmul.f32 %v5945_v58, %v5920_v22  ;;  %v3337_v30 = vmul.f32 %v3336_v16, %v5840_v7 }
 0x90d   : > { %v3941_v8 = vclamps-f32 %v3279_v4, 1.0  ;;  %v3417_v36 = vmul.f32 %v3416_v54, %v5886_v24  ;;  %v3291_v26 = vadd.f32 0.18741608, %v3290_v42  ;;  %v3300_v56 = vadd.f32 0.112945676, %v3299_v3 }
 0x90e   : > { %v3462_v43 = vadd.f32 0.4994258, %v3461_v31  ;;  %v3330_v13 = vmul.f32 %v3329_v49, %v5840_v7  ;;  %v3448_v4 = vmul.f32 %v3447_v45, %v5908_v50  ;;  %v3338_v57 = vadd.f32 0.014752088, %v3337_v30 }
 0x90f   : > { %v3523_v10 = vadd.f32 1.0, %v3941_v8  ;;  %v3418_v18 = vadd.f32 0.014752088, %v3417_v36  ;;  %v3496_v55 = vadd.f32 0.001143296, %v3495_v12  ;;  %v3410_v9 = vmul.f32 %v3409_v63, %v5886_v24 }
 0x910   : > { %v3463_v33 = vmul.f32 %v3462_v43, %v5908_v50  ;;  %v3301_v8 = vmul.f32 %v3300_v56, %v5805_v62  ;;  %v3387_v52 = vsub.f32 1.0, %v3386_v1  ;;  %v3485_v35 = vadd.f32 0.00028619796, %v3484_v29 }
 0x911   : > { %v3531_v25 = vmul.f32 %v3523_v10, %v3187_v11  ;;  %v3339_v6 = vmul.f32 %v3338_v57, %v5840_v7  ;;  %v3419_v23 = vmul.f32 %v3418_v18, %v5886_v24  ;;  %v3497_v14 = vmul.f32 %v3496_v55, %v5942_v60 }
 0x912   : > { %v5960_v11 = vadd.f32 1.0, %v3463_v33  ;;  %v3331_v10 = vadd.f32 0.18741608, %v3330_v13  ;;  %v3449_v48 = vadd.f32 0.05243302, %v3448_v4  ;;  %v3292_v47 = vmul.f32 %v3291_v26, %v5805_v62 }
 0x913   : > { %3619 = vmatmul.f32.vlgmr.msra.gmra.mxu0 %v3531_v25  ;;  %v3302_v15 = vadd.f32 0.4994258, %v3301_v8  ;;  %v3340_v51 = vadd.f32 0.112945676, %v3339_v6  ;;  %v3420_v32 = vadd.f32 0.112945676, %v3419_v23  ;;  %v3388_v42 = vmul.f32 %v5945_v58, %v3387_v52 }
 0x914   : > { %4283 = vrcp.f32 %v5960_v11  ;;  %v3371_v25 = vadd.f32 0.18741608, %v3370_v20  ;;  %v3411_v49 = vadd.f32 0.18741608, %v3410_v9  ;;  %v3486_v59 = vmul.f32 %v3485_v35, %v5942_v60 }
 0x915   : > { %v3303_v31 = vmul.f32 %v3302_v15, %v5805_v62  ;;  %v3341_v41 = vmul.f32 %v3340_v51, %v5840_v7  ;;  %v3421_v45 = vmul.f32 %v3420_v32, %v5886_v24  ;;  %v3498_v16 = vadd.f32 0.014752088, %v3497_v14 }
 0x916   : > { %v3450_v54 = vmul.f32 %v3449_v48, %v5908_v50  ;;  %v3293_v30 = vadd.f32 1.1283791, %v3292_v47  ;;  %v3332_v36 = vmul.f32 %v3331_v10, %v5840_v7  ;;  %v3372_v62 = vmul.f32 %v3371_v25, %v5833_v38 }
 0x917   : > { %v5974_v63 = vadd.f32 1.0, %v3303_v31  ;;  %v3342_v43 = vadd.f32 0.4994258, %v3341_v41  ;;  %v3422_v29 = vadd.f32 0.4994258, %v3421_v45  ;;  %v3499_v3 = vmul.f32 %v3498_v16, %v5942_v60 }
 0x918   : > { %v3412_v12 = vmul.f32 %v3411_v49, %v5886_v24  ;;  %v3389_v26 = vadd.f32 %v5945_v58, %v3388_v42  ;;  %vm3391_vm0 = vweird.f32 %v5945_v58  ;;  %v3487_v13 = vadd.f32 0.0036580483, %v3486_v59 }
 0x919   : > { %4285 = vrcp.f32 %v5974_v63  ;;  %v3396_v33 = vand.u32 2147483648, %v5920_v22  ;;  %v3343_v56 = vmul.f32 %v3342_v43, %v5840_v7  ;;  %v3423_v4 = vmul.f32 %v3422_v29, %v5886_v24  ;;  %vm5995_vm2 = vmor %vm3390_vm1, %vm3391_vm0 }
 0x91a   : > { %v5977_v1 = vpop.eup %4283  ;;  %v3394_v57 = vand.u32 2147483647, %v5920_v22  ;;  %v3451_v38 = vadd.f32 0.18741608, %v3450_v54  ;;  %v3500_v55 = vadd.f32 0.112945676, %v3499_v3  ;;  %v3393_v22 = vsel %vm5995_vm2, %v5945_v58, %v3389_v26 }
 0x91b   : > { %v3466_v18 = vmul.f32 %v5977_v1, %v5960_v11  ;;  %v5993_v20 = vmul.f32 0.5, %v5776_v5  ;;  %v3333_v9 = vadd.f32 1.1283791, %v3332_v36  ;;  %v5999_v52 = vadd.f32 1.0, %v3343_v56 }
 0x91c   : > { %v6001_v7 = vadd.f32 1.0, %v3423_v4  ;;  %v3373_v24 = vadd.f32 1.1283791, %v3372_v62  ;;  %v3413_v35 = vadd.f32 1.1283791, %v3412_v12  ;;  %v3488_v6 = vmul.f32 %v3487_v13, %v5942_v60 }
 0x91d   : > { %v3294_v5 = vmul.f32 %v3293_v30, %v5785_v21  ;;  %v3397_v23 = vor.u32 1.1754944e-38, %v3396_v33  ;;  %4287 = vrcp.f32 %v5999_v52  ;;  %v3501_v14 = vmul.f32 %v3500_v55, %v5942_v60 }
 0x91e   : > { %vm3395_vm3 = vcmp.eq.f32.partialorder %v3394_v57, 8.507059e+37  ;;  %v3452_v48 = vmul.f32 %v3451_v38, %v5908_v50  ;;  %v3467_v47 = vsub.f32 1.0, %v3466_v18  ;;  %4289 = vrcp.f32 %v6001_v7 }
 0x91f   : > { %v4286_v10 = vpop.eup %4285  ;;  %v6013_v15 = vmul.f32 %v3333_v9, %v5812_v40  ;;  %v3398_v58 = vsel %vm3395_vm3, %v3397_v23, %v3393_v22  ;;  %v3476_v51 = vand.u32 2147483648, %v5960_v11  ;;  %v3374_v32 = vmul.f32 %v3373_v24, %v5818_v46 }
 0x920   : > { %v3306_v21 = vmul.f32 %v4286_v10, %v5974_v63  ;;  %v6019_v25 = vmul.f32 %v3413_v35, %v5859_v28  ;;  %v3474_v42 = vand.u32 2147483647, %v5960_v11  ;;  %v3489_v49 = vadd.f32 0.05243302, %v3488_v6 }
 0x921   : > { %v3314_v59 = vand.u32 2147483647, %v5974_v63  ;;  %v3316_v31 = vand.u32 2147483648, %v5974_v63  ;;  %v3502_v40 = vadd.f32 0.4994258, %v3501_v14  ;;  %v6024_v41 = vmul.f32 %v3398_v58, %v3374_v32 }
 0x922   : > { %v3307_v50 = vsub.f32 1.0, %v3306_v21  ;;  %v3453_v45 = vadd.f32 1.1283791, %v3452_v48  ;;  %v3468_v16 = vmul.f32 %v5977_v1, %v3467_v47  ;;  %vm3470_vm4 = vweird.f32 %v5960_v11 }
 0x923   : > { %v4288_v46 = vpop.eup %4287  ;;  %v3477_v54 = vor.u32 1.1754944e-38, %v3476_v51  ;;  %vm3311_vm5 = vweird.f32 %v4286_v10  ;;  %v3503_v43 = vmul.f32 %v3502_v40, %v5942_v60  ;;  %vm3471_vm6 = vweird.f32 %v5977_v1 }
 0x924   : > { %v3308_v28 = vmul.f32 %v4286_v10, %v3307_v50  ;;  %v4290_v29 = vpop.eup %4289  ;;  %v3490_v3 = vmul.f32 %v3489_v49, %v5942_v60  ;;  %vm3310_vm7 = vweird.f32 %v5974_v63  ;;  %v3346_v30 = vmul.f32 %v4288_v46, %v5999_v52  ;;  %vm6050_vm12 = vmor %vm3470_vm4, %vm3471_vm6 }
 0x925   : > { %vm6033_vm8 = vcmp.eq.f32.partialorder %v3474_v42, 8.507059e+37  ;;  %vm3315_vm9 = vcmp.eq.f32.partialorder %v3314_v59, 8.507059e+37  ;;  %v3317_v12 = vor.u32 1.1754944e-38, %v3316_v31  ;;  %v3426_v26 = vmul.f32 %v4290_v29, %v6001_v7  ;;  %vm3312_vm10 = vmor %vm3310_vm7, %vm3311_vm5 }
 0x926   : > { %v3309_v62 = vadd.f32 %v4286_v10, %v3308_v28  ;;  %v3469_v13 = vadd.f32 %v5977_v1, %v3468_v16  ;;  %v3347_v33 = vsub.f32 1.0, %v3346_v30  ;;  %v3354_v56 = vand.u32 2147483647, %v5999_v52 }
 0x927   : > { %v6040_v4 = vadd.f32 1.0, %v3503_v43  ;;  %v3356_v57 = vand.u32 2147483648, %v5999_v52  ;;  %v3427_v38 = vsub.f32 1.0, %v3426_v26  ;;  %v3436_v18 = vand.u32 2147483648, %v6001_v7 }
 0x928   : > { %v3313_v63 = vsel %vm3312_vm10, %v4286_v10, %v3309_v62  ;;  %v3348_v9 = vmul.f32 %v4288_v46, %v3347_v33  ;;  %vm3351_vm11 = vweird.f32 %v4288_v46  ;;  %vm3431_vm13 = vweird.f32 %v4290_v29 }
 0x929   : > { %v3318_v55 = vsel %vm3315_vm9, %v3317_v12, %v3313_v63  ;;  %4291 = vrcp.f32 %v6040_v4  ;;  %v3428_v24 = vmul.f32 %v4290_v29, %v3427_v38  ;;  %v3434_v22 = vand.u32 2147483647, %v6001_v7 }
 0x92a   : > { %v3319_v8 = vmul.f32 %v3318_v55, %v3294_v5  ;;  %v3491_v6 = vadd.f32 0.18741608, %v3490_v3  ;;  %v3349_v23 = vadd.f32 %v4288_v46, %v3348_v9  ;;  %vm3350_vm14 = vweird.f32 %v5999_v52 }
 0x92b   : > { %vm3430_vm15 = vweird.f32 %v6001_v7  ;;  %v3473_v5 = vsel %vm6050_vm12, %v5977_v1, %v3469_v13  ;;  %vm3352_vm0 = vmor %vm3350_vm14, %vm3351_vm11  ;;  %v3357_v10 = vor.u32 1.1754944e-38, %v3356_v57  ;;  %v3429_v48 = vadd.f32 %v4290_v29, %v3428_v24 }
 0x92c   : > { %v3942_v14 = vclamps-f32 %v3319_v8, 1.0  ;;  %v3353_v47 = vsel %vm3352_vm0, %v4288_v46, %v3349_v23  ;;  %vm3355_vm1 = vcmp.eq.f32.partialorder %v3354_v56, 8.507059e+37  ;;  %v3944_v11 = vclamps-f32 %v6024_v41, 1.0  ;;  %vm3432_vm2 = vmor %vm3430_vm15, %vm3431_vm13 }
 0x92d   : > { %v3437_v58 = vor.u32 1.1754944e-38, %v3436_v18  ;;  %v3358_v21 = vsel %vm3355_vm1, %v3357_v10, %v3353_v47  ;;  %v3433_v52 = vsel %vm3432_vm2, %v4290_v29, %v3429_v48  ;;  %vm3435_vm3 = vcmp.eq.f32.partialorder %v3434_v22, 8.507059e+37 }
 0x92e   : > { %v3524_v51 = vadd.f32 1.0, %v3942_v14  ;;  %v3454_v32 = vmul.f32 %v3453_v45, %v5895_v17  ;;  %v3478_v1 = vsel %vm6033_vm8, %v3477_v54, %v3473_v5  ;;  %v3359_v42 = vmul.f32 %v3358_v21, %v6013_v15 }
 0x92f   : > { %v4292_v7 = vpop.eup %4291  ;;  %v3438_v49 = vsel %vm3435_vm3, %v3437_v58, %v3433_v52  ;;  %v3492_v50 = vmul.f32 %v3491_v6, %v5942_v60  ;;  %v3189_v16 = vmul.f32 0.5, %v5798_v2  ;;  %v3526_v17 = vadd.f32 1.0, %v3944_v11 }
 0x930   : > { %v3532_v59 = vmul.f32 %v3524_v51, %v5993_v20  ;;  %v3439_v31 = vmul.f32 %v3438_v49, %v6019_v25  ;;  %v3506_v40 = vmul.f32 %v4292_v7, %v6040_v4  ;;  %v3943_v41 = vclamps-f32 %v3359_v42, 1.0 }
 0x931   : > { %v3479_v46 = vmul.f32 %v3478_v1, %v3454_v32  ;;  %v3190_v54 = vmul.f32 0.5, %v5803_v53  ;;  %v3516_v43 = vand.u32 2147483648, %v6040_v4  ;;  %v3493_v60 = vadd.f32 1.1283791, %v3492_v50 }
 0x932   : > { %3593 = vmatmul.f32.gmra.mxu3 %v3532_v59  ;;  %v3507_v45 = vsub.f32 1.0, %v3506_v40  ;;  %v3525_v28 = vadd.f32 1.0, %v3943_v41  ;;  %v3945_v15 = vclamps-f32 %v3439_v31, 1.0  ;;  %vm3511_vm4 = vweird.f32 %v4292_v7 }
 0x933   : > { %v3514_v20 = vand.u32 2147483647, %v6040_v4  ;;  %v3534_v3 = vmul.f32 %v3526_v17, %v3190_v54  ;;  %v3946_v30 = vclamps-f32 %v3479_v46, 1.0  ;;  %vm3510_vm5 = vweird.f32 %v6040_v4 }
 0x934   : > { %v3508_v29 = vmul.f32 %v4292_v7, %v3507_v45  ;;  %v3533_v25 = vmul.f32 %v3525_v28, %v3189_v16  ;;  %v3527_v2 = vadd.f32 1.0, %v3945_v15  ;;  %vm3512_vm6 = vmor %vm3510_vm5, %vm3511_vm4  ;;  %v3517_v62 = vor.u32 1.1754944e-38, %v3516_v43 }
 0x935   : > { %v3494_v53 = vmul.f32 %v3493_v60, %v5923_v34  ;;  %vm3515_vm7 = vcmp.eq.f32.partialorder %v3514_v20, 8.507059e+37  ;;  %v3191_v26 = vmul.f32 0.5, %v5847_v27  ;;  %v3528_v33 = vadd.f32 1.0, %v3946_v30  ;;  %v4130_v27 = vld [vmem:[%s602_s13] ss:$0 sm:$0xff] }
 0x936   : > { %v3509_v36 = vadd.f32 %v4292_v7, %v3508_v29  ;;  %3622 = vmatmul.f32.gmra.mxu0 %v3533_v25  ;;  %v3192_v57 = vmul.f32 0.5, %v5874_v61  ;;  %v3193_v55 = vmul.f32 0.5, %v5911_v44 }
 0x937   : > { %v3535_v63 = vmul.f32 %v3527_v2, %v3191_v26 }
 0x938   : > { %v3513_v12 = vsel %vm3512_vm6, %v4292_v7, %v3509_v36  ;;  %v3536_v4 = vmul.f32 %v3528_v33, %v3192_v57 }
 0x939   : > { %v3518_v13 = vsel %vm3515_vm7, %v3517_v62, %v3513_v12 }
 0x93a   : > { %3596 = vmatmul.f32.gmra.mxu3 %v3534_v3  ;;  %v3519_v56 = vmul.f32 %v3518_v13, %v3494_v53 }
 0x93c   : > { %v3947_v38 = vclamps-f32 %v3519_v56, 1.0 }
 0x93e   : > { %3625 = vmatmul.f32.gmra.mxu0 %v3535_v63  ;;  %v3529_v18 = vadd.f32 1.0, %v3947_v38 }
 0x940   : > { %v3537_v34 = vmul.f32 %v3529_v18, %v3193_v55 }
 0x942   : > { %3599 = vmatmul.f32.gmra.mxu3 %v3536_v4 }
 0x946   : > { %3628 = vmatmul.f32.gmra.mxu0 %v3537_v34 }
 0x98f   : > { %v3591_v9 = vpop.f32.mrf.mxu3 }
 0x990   : > { %v3592_v8 = vadd.f32 %v4130_v27, %v3591_v9  ;;  %v3620_v24 = vpop.f32.mrf.mxu0 }
 0x992   : > { %v3621_v22 = vadd.f32 %v3620_v24, %v3592_v8 }
 0x994   : > { %v3632_v61 = vadd.f32 %v3621_v22, %v5667_v37 }
 0x996   : > { %3636 = vst [vmem:[#allocation2 + $0x10] sm:$0xff] %v3632_v61 }
 0x9b3   : > { %v3623_v35 = vpop.f32.mrf.mxu0 }
 0x9b5   : > { %v3594_v6 = vpop.f32.mrf.mxu3 }
 0x9b6   : > { %v3595_v23 = vadd.f32 %v4130_v27, %v3594_v6 }
 0x9b8   : > { %v3624_v5 = vadd.f32 %v3623_v35, %v3595_v23 }
 0x9ba   : > { %v3633_v44 = vadd.f32 %v3624_v5, %v5670_v39 }
 0x9bb   : > { %v3626_v10 = vpop.f32.mrf.mxu0 }
 0x9bc   : > { %3637 = vst [vmem:[#allocation2] sm:$0xff] %v3633_v44 }
 0x9bd   : > { %v3597_v14 = vpop.f32.mrf.mxu3 }
 0x9be   : > { %v3598_v48 = vadd.f32 %v4130_v27, %v3597_v14 }
 0x9c0   : > { %v3627_v47 = vadd.f32 %v3626_v10, %v3598_v48 }
 0x9c2   : > { %v3634_v11 = vadd.f32 %v3627_v47, %v5673_v19 }
 0x9c3   : > { %v3629_v21 = vpop.f32.mrf.mxu0 }
 0x9c4   : > { %3638 = vst [vmem:[#allocation2 + $0x18] sm:$0xff] %v3634_v11 }
 0x9c5   : > { %v3600_v58 = vpop.f32.mrf.mxu3 }
 0x9c6   : > { %v3601_v51 = vadd.f32 %v4130_v27, %v3600_v58 }
 0x9c8   : > { %v3630_v52 = vadd.f32 %v3629_v21, %v3601_v51  ;;  %3643 = sbr.rel (%p3948_p6) target bundleno = 2513 (0x9d1), region = 76 }
 0x9ca   : > { %v3635_v37 = vadd.f32 %v3630_v52, %v5676_v0 }
 0x9cc   : > { %3639 = vst [vmem:[#allocation2 + $0x8] sm:$0xff] %v3635_v37 }
 0x9cd   : > { %3644 = vst [vmem:[#allocation3] sm:$0xff] %v3632_v61 }
 0x9ce   : > { %3645 = vst [vmem:[#allocation3 + $0x8] sm:$0xff] %v3633_v44 }
 0x9cf   : > { %3646 = vst [vmem:[#allocation3 + $0x10] sm:$0xff] %v3634_v11 }
 0x9d0   : > { %3647 = vst [vmem:[#allocation3 + $0x18] sm:$0xff] %v3635_v37 }
 0x9d1 PF: > { %s6155_s26 = sld [smem:[#allocation7_spill]]  ;;  %s4361_s17 = smov [#allocation3]  }
 0x9d2   : > { %s6157_s20 = sld [smem:[#allocation10_spill]]  ;;  %s3657_s25 = sshll.u32 %s4361_s17, 4  ;;  %s3658_s25 = int_to_ptr.vmem [resolvable:$true] %s3657_s25 }
 0x9d3   : > { %s4362_s22 = smov 128   ;;  %s4363_s19 = smov 8  }
 0x9d7   : > { %s6156_s12 = sadd.s32 4294967295, %s6155_s26  }
 0x9d8   : > { %p3963_p7 = scmp.eq.s32.totalorder %s6156_s12, 1  ;;  %s3659_s27 = sshll.u32 %s6157_s20, 4  ;;  %s3660_s27 = int_to_ptr.hbm [resolvable:$true] %s3659_s27 }
 0x9da   : > { %3960 = dma.vmem_to_hbm [thread:$0]  (%p3963_p7), %s3658_s25, 512, %s3660_s27, [#allocation4], %s4362_s22, %s4362_s22, %s4363_s19  }
 0x9db   : > { %4338 = dma.done.wait (%p3963_p7), [#allocation4], 512  }
 0x9dc   : > { %4340 = vsyncadd (%p3963_p7), [#allocation4], 4294966784 }
 0x9dd PF: > { %s6158_s21 = sld [smem:[#allocation7_spill]] }
 0x9de   : > { %s6160_s22 = sld [smem:[#allocation8_spill]] }
 0x9e3   : > { %s23_s23 = sadd.s32 1, %s6158_s21   ;;  %s6159_s21 = sld [smem:[#allocation6_spill]] }
 0x9e4   : > { %p20_p8 = scmp.ge.s32.totalorder %s23_s23, 4  }
 0x9e6   :  { %22 = sbr.rel (!%p20_p8) target bundleno = 5 (0x5), region = 137 }
 0x9eb   :  { %3676 = vsyncpa [#allocation4], 1 }
 0x9ec   :  { %3678 = vsyncpa [#allocation4 + $0x1], 1 }

</bundles_post_ra>
